<compile_context>
chip_gen: v5e
topology: v5e:2x2
jax: 0.10.0
libtpu: 0.0.40
codegen_flags: <defaults>
</compile_context>

<pallas_src>
import jax
import jax.numpy as jnp
from jax.experimental import pallas as pl
from jax.experimental.pallas import tpu as pltpu

EPS = 1e-5


def _basic_block_kernel(x_ref, w1_ref, s1_ref, b1_ref, w2_ref, s2_ref, b2_ref,
                        out_ref, xp_ref, yp_ref, col_ref):
    """One batch image per grid step, channels-first.

    x_ref   : (C, H, W)      input image (batch dim squeezed by BlockSpec)
    w*_ref  : (C, 9*C)       conv weights; rows = Cout, cols = (kh, kw, cin)
    s*/b*   : (C, 1)         folded inference-BN scale / bias
    out_ref : (C, H*W)       lane-dense output (H*W = 256 lanes)
    xp_ref, yp_ref : (C, H+2, W+2) VMEM padded-activation scratch
    col_ref : (9*C, H*W)     VMEM im2col scratch
    """
    C, H, W = x_ref.shape
    HW = H * W

    x_img = x_ref[...].astype(jnp.float32)                  # (C, H, W)

    def conv_bn(pad_ref, img_3d, w_ref, s_ref, b_ref):
        # Zero-pad the activation inside VMEM (no HBM traffic for the halo).
        pad_ref[...] = jnp.zeros_like(pad_ref)
        pad_ref[:, 1:H + 1, 1:W + 1] = img_3d
        xpad = pad_ref[...]                                  # (C, H+2, W+2)
        # im2col once -> a single MXU matmul with K = 9*C.
        for kh in range(3):
            for kw in range(3):
                t = kh * 3 + kw
                col_ref[t * C:(t + 1) * C, :] = (
                    xpad[:, kh:kh + H, kw:kw + W].reshape(C, HW))
        y = jnp.dot(w_ref[...], col_ref[...],
                    preferred_element_type=jnp.float32)      # (C, HW)
        return y * s_ref[...] + b_ref[...]

    # conv1 + bn1 + relu
    y1 = jnp.maximum(conv_bn(xp_ref, x_img, w1_ref, s1_ref, b1_ref), 0.0)
    # conv2 + bn2 + identity residual + relu   (residual is still in VMEM)
    y2 = conv_bn(yp_ref, y1.reshape(C, H, W), w2_ref, s2_ref, b2_ref)
    y2 = y2 + x_img.reshape(C, HW)
    out_ref[...] = jnp.maximum(y2, 0.0).astype(out_ref.dtype)


def _fold_bn(gamma, beta, mean, var):
    scale = gamma / jnp.sqrt(var + EPS)
    bias = beta - mean * scale
    return scale, bias


def basic_block_forward(x_nchw, params):
    """BasicBlock(inplanes=planes, stride=1, downsample=None) forward, NCHW."""
    N, C, H, W = x_nchw.shape
    HW = H * W
    assert params["w1"].shape == (3, 3, C, C), (
        "stride=1 / downsample=None path requires inplanes == planes")
    # TODO(synk): downsample branch (strided conv + torch.cat with zeros) not
    # implemented; the default instantiation uses downsample=None, stride=1.

    s1, b1 = _fold_bn(params["gamma1"], params["beta1"],
                      params["mean1"], params["var1"])
    s2, b2 = _fold_bn(params["gamma2"], params["beta2"],
                      params["mean2"], params["var2"])

    # HWIO -> (Cout, kh, kw, Cin) -> (Cout, 9*Cin): matches the im2col row
    # ordering (kh, kw, cin) built inside the kernel.
    w1r = jnp.transpose(params["w1"], (3, 0, 1, 2)).reshape(C, 9 * C)
    w2r = jnp.transpose(params["w2"], (3, 0, 1, 2)).reshape(C, 9 * C)

    args = (
        x_nchw,
        w1r.astype(jnp.float32), s1.reshape(C, 1).astype(jnp.float32),
        b1.reshape(C, 1).astype(jnp.float32),
        w2r.astype(jnp.float32), s2.reshape(C, 1).astype(jnp.float32),
        b2.reshape(C, 1).astype(jnp.float32),
    )

    def const2(shape):
        return pl.BlockSpec(shape, lambda b: (0, 0))

    out_flat = pl.pallas_call(
        _basic_block_kernel,
        out_shape=jax.ShapeDtypeStruct((N, C, HW), x_nchw.dtype),
        grid=(N,),
        in_specs=[
            pl.BlockSpec((None, C, H, W), lambda b: (b, 0, 0, 0)),  # x (NCHW)
            const2((C, 9 * C)),                                     # w1
            const2((C, 1)),                                         # scale1
            const2((C, 1)),                                         # bias1
            const2((C, 9 * C)),                                     # w2
            const2((C, 1)),                                         # scale2
            const2((C, 1)),                                         # bias2
        ],
        out_specs=pl.BlockSpec((None, C, HW), lambda b: (b, 0, 0)),
        scratch_shapes=[
            pltpu.VMEM((C, H + 2, W + 2), jnp.float32),   # padded act, conv1
            pltpu.VMEM((C, H + 2, W + 2), jnp.float32),   # padded act, conv2
            pltpu.VMEM((9 * C, HW), jnp.float32),         # im2col matrix
        ],
        compiler_params=pltpu.CompilerParams(
            dimension_semantics=("parallel",)),            # v7x: 2 TCs split N
    )(*args)

    return out_flat.reshape(N, C, H, W)


def init_params(key, planes):
    ks = jax.random.split(key, 8)
    return {
        "w1": 0.1 * jax.random.normal(ks[0], (3, 3, planes, planes), jnp.float32),
        "w2": 0.1 * jax.random.normal(ks[1], (3, 3, planes, planes), jnp.float32),
        "gamma1": 1.0 + 0.1 * jax.random.normal(ks[2], (planes,), jnp.float32),
        "beta1": 0.1 * jax.random.normal(ks[3], (planes,), jnp.float32),
        "mean1": 0.1 * jax.random.normal(ks[4], (planes,), jnp.float32),
        "var1": jnp.abs(jax.random.normal(ks[5], (planes,), jnp.float32)) + 0.5,
        "gamma2": 1.0 + 0.1 * jax.random.normal(ks[6], (planes,), jnp.float32),
        "beta2": 0.1 * jax.random.normal(ks[7], (planes,), jnp.float32),
        "mean2": jnp.zeros((planes,), jnp.float32),
        "var2": jnp.ones((planes,), jnp.float32),
    }


def _reference_forward(x_nchw, params):
    """Pure-JAX reference (inference-mode BN) for validation."""
    x = jnp.transpose(x_nchw, (0, 2, 3, 1))   # NCHW -> NHWC
    dn = ("NHWC", "HWIO", "NHWC")

    def conv(a, w):
        return jax.lax.conv_general_dilated(
            a, w, (1, 1), "SAME", dimension_numbers=dn,
            precision=jax.lax.Precision.HIGHEST)

    s1, b1 = _fold_bn(params["gamma1"], params["beta1"],
                      params["mean1"], params["var1"])
    out = jnp.maximum(conv(x, params["w1"]) * s1 + b1, 0.0)
    s2, b2 = _fold_bn(params["gamma2"], params["beta2"],
                      params["mean2"], params["var2"])
    out = jnp.maximum(conv(out, params["w2"]) * s2 + b2 + x, 0.0)
    return jnp.transpose(out, (0, 3, 1, 2))   # NHWC -> NCHW


if __name__ == "__main__":
    key = jax.random.PRNGKey(0)
    k_x, k_p = jax.random.split(key)

    N, C, H, W = 2, 4, 16, 16                 # inplanes == planes, stride=1
    x = jax.random.normal(k_x, (N, C, H, W), jnp.float32)
    params = init_params(k_p, C)

    out = basic_block_forward(x, params)
    out = jax.block_until_ready(out)

    ref = _reference_forward(x, params)
    assert out.shape == (N, C, H, W)
    assert jnp.allclose(out, ref, atol=1e-4, rtol=1e-4), \
        float(jnp.max(jnp.abs(out - ref)))

    print("KERNEL_OK")
</pallas_src>

<mosaic_0001>
module attributes {stable_mosaic.version = 11 : i64} {
  func.func @_basic_block_kernel(%arg0: i32, %arg1: memref<1x4x16x16xf32, #tpu.memory_space<vmem>>, %arg2: memref<4x36xf32, #tpu.memory_space<vmem>>, %arg3: memref<4x1xf32, #tpu.memory_space<vmem>>, %arg4: memref<4x1xf32, #tpu.memory_space<vmem>>, %arg5: memref<4x36xf32, #tpu.memory_space<vmem>>, %arg6: memref<4x1xf32, #tpu.memory_space<vmem>>, %arg7: memref<4x1xf32, #tpu.memory_space<vmem>>, %arg8: memref<1x4x256xf32, #tpu.memory_space<vmem>>, %arg9: memref<4x18x18xf32, #tpu.memory_space<vmem>>, %arg10: memref<4x18x18xf32, #tpu.memory_space<vmem>>, %arg11: memref<36x256xf32, #tpu.memory_space<vmem>>) attributes {dimension_semantics = [#tpu.dimension_semantics<parallel>], iteration_bounds = array<i64: 2>, scalar_prefetch = 0 : i64, scratch_operands = 3 : i64, tpu.core_type = #tpu.core_type<tc>, window_params = [{transform_indices = @transform_0, window_bounds = array<i64: 1, 4, 16, 16>}, {pipeline_mode = #tpu.pipeline_mode<synchronous>, transform_indices = @transform_1, window_bounds = array<i64: 4, 36>}, {pipeline_mode = #tpu.pipeline_mode<synchronous>, transform_indices = @transform_2, window_bounds = array<i64: 4, 1>}, {pipeline_mode = #tpu.pipeline_mode<synchronous>, transform_indices = @transform_3, window_bounds = array<i64: 4, 1>}, {pipeline_mode = #tpu.pipeline_mode<synchronous>, transform_indices = @transform_4, window_bounds = array<i64: 4, 36>}, {pipeline_mode = #tpu.pipeline_mode<synchronous>, transform_indices = @transform_5, window_bounds = array<i64: 4, 1>}, {pipeline_mode = #tpu.pipeline_mode<synchronous>, transform_indices = @transform_6, window_bounds = array<i64: 4, 1>}, {transform_indices = @transform_7, window_bounds = array<i64: 1, 4, 256>}]} {
    %c0 = arith.constant 0 : index
    %c0_0 = arith.constant 0 : index
    %c0_1 = arith.constant 0 : index
    %c0_2 = arith.constant 0 : index
    %0 = vector.load %arg1[%c0, %c0_0, %c0_1, %c0_2] : memref<1x4x16x16xf32, #tpu.memory_space<vmem>>, vector<1x4x16x16xf32>
    %1 = vector.shape_cast %0 : vector<1x4x16x16xf32> to vector<4x16x16xf32>
    %cst = arith.constant 0.000000e+00 : f32
    %2 = vector.broadcast %cst : f32 to vector<4x18x18xf32>
    %c0_3 = arith.constant 0 : index
    %c0_4 = arith.constant 0 : index
    %c0_5 = arith.constant 0 : index
    %3 = vector.load %arg9[%c0_3, %c0_4, %c0_5] : memref<4x18x18xf32, #tpu.memory_space<vmem>>, vector<4x18x18xf32>
    tpu.vector_store %arg9[%c0_3, %c0_4, %c0_5], %2 {strides = array<i32>} : memref<4x18x18xf32, #tpu.memory_space<vmem>>, vector<4x18x18xf32>,
    %c0_6 = arith.constant 0 : index
    %c1 = arith.constant 1 : index
    %c1_7 = arith.constant 1 : index
    %4 = vector.load %arg9[%c0_6, %c1, %c1_7] : memref<4x18x18xf32, #tpu.memory_space<vmem>>, vector<4x16x16xf32>
    tpu.vector_store %arg9[%c0_6, %c1, %c1_7], %1 {strides = array<i32>} : memref<4x18x18xf32, #tpu.memory_space<vmem>>, vector<4x16x16xf32>,
    %c0_8 = arith.constant 0 : index
    %c0_9 = arith.constant 0 : index
    %c0_10 = arith.constant 0 : index
    %5 = vector.load %arg9[%c0_8, %c0_9, %c0_10] : memref<4x18x18xf32, #tpu.memory_space<vmem>>, vector<4x18x18xf32>
    %6 = vector.extract_strided_slice %5 {offsets = [0, 0, 0], sizes = [4, 16, 16], strides = [1, 1, 1]} : vector<4x18x18xf32> to vector<4x16x16xf32>
    %7 = vector.shape_cast %6 : vector<4x16x16xf32> to vector<4x256xf32>
    %c0_11 = arith.constant 0 : index
    %c0_12 = arith.constant 0 : index
    %8 = vector.load %arg11[%c0_11, %c0_12] : memref<36x256xf32, #tpu.memory_space<vmem>>, vector<4x256xf32>
    tpu.vector_store %arg11[%c0_11, %c0_12], %7 {strides = array<i32>} : memref<36x256xf32, #tpu.memory_space<vmem>>, vector<4x256xf32>,
    %9 = vector.extract_strided_slice %5 {offsets = [0, 0, 1], sizes = [4, 16, 16], strides = [1, 1, 1]} : vector<4x18x18xf32> to vector<4x16x16xf32>
    %10 = vector.shape_cast %9 : vector<4x16x16xf32> to vector<4x256xf32>
    %c4 = arith.constant 4 : index
    %c0_13 = arith.constant 0 : index
    %11 = vector.load %arg11[%c4, %c0_13] : memref<36x256xf32, #tpu.memory_space<vmem>>, vector<4x256xf32>
    tpu.vector_store %arg11[%c4, %c0_13], %10 {strides = array<i32>} : memref<36x256xf32, #tpu.memory_space<vmem>>, vector<4x256xf32>,
    %12 = vector.extract_strided_slice %5 {offsets = [0, 0, 2], sizes = [4, 16, 16], strides = [1, 1, 1]} : vector<4x18x18xf32> to vector<4x16x16xf32>
    %13 = vector.shape_cast %12 : vector<4x16x16xf32> to vector<4x256xf32>
    %c8 = arith.constant 8 : index
    %c0_14 = arith.constant 0 : index
    %14 = vector.load %arg11[%c8, %c0_14] : memref<36x256xf32, #tpu.memory_space<vmem>>, vector<4x256xf32>
    tpu.vector_store %arg11[%c8, %c0_14], %13 {strides = array<i32>} : memref<36x256xf32, #tpu.memory_space<vmem>>, vector<4x256xf32>,
    %15 = vector.extract_strided_slice %5 {offsets = [0, 1, 0], sizes = [4, 16, 16], strides = [1, 1, 1]} : vector<4x18x18xf32> to vector<4x16x16xf32>
    %16 = vector.shape_cast %15 : vector<4x16x16xf32> to vector<4x256xf32>
    %c12 = arith.constant 12 : index
    %c0_15 = arith.constant 0 : index
    %17 = vector.load %arg11[%c12, %c0_15] : memref<36x256xf32, #tpu.memory_space<vmem>>, vector<4x256xf32>
    tpu.vector_store %arg11[%c12, %c0_15], %16 {strides = array<i32>} : memref<36x256xf32, #tpu.memory_space<vmem>>, vector<4x256xf32>,
    %18 = vector.extract_strided_slice %5 {offsets = [0, 1, 1], sizes = [4, 16, 16], strides = [1, 1, 1]} : vector<4x18x18xf32> to vector<4x16x16xf32>
    %19 = vector.shape_cast %18 : vector<4x16x16xf32> to vector<4x256xf32>
    %c16 = arith.constant 16 : index
    %c0_16 = arith.constant 0 : index
    %20 = vector.load %arg11[%c16, %c0_16] : memref<36x256xf32, #tpu.memory_space<vmem>>, vector<4x256xf32>
    tpu.vector_store %arg11[%c16, %c0_16], %19 {strides = array<i32>} : memref<36x256xf32, #tpu.memory_space<vmem>>, vector<4x256xf32>,
    %21 = vector.extract_strided_slice %5 {offsets = [0, 1, 2], sizes = [4, 16, 16], strides = [1, 1, 1]} : vector<4x18x18xf32> to vector<4x16x16xf32>
    %22 = vector.shape_cast %21 : vector<4x16x16xf32> to vector<4x256xf32>
    %c20 = arith.constant 20 : index
    %c0_17 = arith.constant 0 : index
    %23 = vector.load %arg11[%c20, %c0_17] : memref<36x256xf32, #tpu.memory_space<vmem>>, vector<4x256xf32>
    tpu.vector_store %arg11[%c20, %c0_17], %22 {strides = array<i32>} : memref<36x256xf32, #tpu.memory_space<vmem>>, vector<4x256xf32>,
    %24 = vector.extract_strided_slice %5 {offsets = [0, 2, 0], sizes = [4, 16, 16], strides = [1, 1, 1]} : vector<4x18x18xf32> to vector<4x16x16xf32>
    %25 = vector.shape_cast %24 : vector<4x16x16xf32> to vector<4x256xf32>
    %c24 = arith.constant 24 : index
    %c0_18 = arith.constant 0 : index
    %26 = vector.load %arg11[%c24, %c0_18] : memref<36x256xf32, #tpu.memory_space<vmem>>, vector<4x256xf32>
    tpu.vector_store %arg11[%c24, %c0_18], %25 {strides = array<i32>} : memref<36x256xf32, #tpu.memory_space<vmem>>, vector<4x256xf32>,
    %27 = vector.extract_strided_slice %5 {offsets = [0, 2, 1], sizes = [4, 16, 16], strides = [1, 1, 1]} : vector<4x18x18xf32> to vector<4x16x16xf32>
    %28 = vector.shape_cast %27 : vector<4x16x16xf32> to vector<4x256xf32>
    %c28 = arith.constant 28 : index
    %c0_19 = arith.constant 0 : index
    %29 = vector.load %arg11[%c28, %c0_19] : memref<36x256xf32, #tpu.memory_space<vmem>>, vector<4x256xf32>
    tpu.vector_store %arg11[%c28, %c0_19], %28 {strides = array<i32>} : memref<36x256xf32, #tpu.memory_space<vmem>>, vector<4x256xf32>,
    %30 = vector.extract_strided_slice %5 {offsets = [0, 2, 2], sizes = [4, 16, 16], strides = [1, 1, 1]} : vector<4x18x18xf32> to vector<4x16x16xf32>
    %31 = vector.shape_cast %30 : vector<4x16x16xf32> to vector<4x256xf32>
    %c32 = arith.constant 32 : index
    %c0_20 = arith.constant 0 : index
    %32 = vector.load %arg11[%c32, %c0_20] : memref<36x256xf32, #tpu.memory_space<vmem>>, vector<4x256xf32>
    tpu.vector_store %arg11[%c32, %c0_20], %31 {strides = array<i32>} : memref<36x256xf32, #tpu.memory_space<vmem>>, vector<4x256xf32>,
    %c0_21 = arith.constant 0 : index
    %c0_22 = arith.constant 0 : index
    %33 = vector.load %arg2[%c0_21, %c0_22] : memref<4x36xf32, #tpu.memory_space<vmem>>, vector<4x36xf32>
    %c0_23 = arith.constant 0 : index
    %c0_24 = arith.constant 0 : index
    %34 = vector.load %arg11[%c0_23, %c0_24] : memref<36x256xf32, #tpu.memory_space<vmem>>, vector<36x256xf32>
    %cst_25 = arith.constant dense<0.000000e+00> : vector<4x256xf32>
    %35 = tpu.matmul %33, %34, %cst_25 {dimension_numbers = #tpu.dot_dimension_numbers<[1], [0], [0], [1], [0, 0, 1, 1], [], []>} : vector<4x36xf32>, vector<36x256xf32>, vector<4x256xf32> -> vector<4x256xf32>
    %c0_26 = arith.constant 0 : index
    %c0_27 = arith.constant 0 : index
    %36 = vector.load %arg3[%c0_26, %c0_27] : memref<4x1xf32, #tpu.memory_space<vmem>>, vector<4x1xf32>
    %37 = vector.broadcast %36 : vector<4x1xf32> to vector<4x256xf32>
    %38 = arith.mulf %35, %37 : vector<4x256xf32>
    %c0_28 = arith.constant 0 : index
    %c0_29 = arith.constant 0 : index
    %39 = vector.load %arg4[%c0_28, %c0_29] : memref<4x1xf32, #tpu.memory_space<vmem>>, vector<4x1xf32>
    %40 = vector.broadcast %39 : vector<4x1xf32> to vector<4x256xf32>
    %41 = arith.addf %38, %40 : vector<4x256xf32>
    %cst_30 = arith.constant 0.000000e+00 : f32
    %42 = vector.broadcast %cst_30 : f32 to vector<4x256xf32>
    %43 = arith.maximumf %41, %42 : vector<4x256xf32>
    %44 = vector.shape_cast %43 : vector<4x256xf32> to vector<4x16x16xf32>
    %cst_31 = arith.constant 0.000000e+00 : f32
    %45 = vector.broadcast %cst_31 : f32 to vector<4x18x18xf32>
    %c0_32 = arith.constant 0 : index
    %c0_33 = arith.constant 0 : index
    %c0_34 = arith.constant 0 : index
    %46 = vector.load %arg10[%c0_32, %c0_33, %c0_34] : memref<4x18x18xf32, #tpu.memory_space<vmem>>, vector<4x18x18xf32>
    tpu.vector_store %arg10[%c0_32, %c0_33, %c0_34], %45 {strides = array<i32>} : memref<4x18x18xf32, #tpu.memory_space<vmem>>, vector<4x18x18xf32>,
    %c0_35 = arith.constant 0 : index
    %c1_36 = arith.constant 1 : index
    %c1_37 = arith.constant 1 : index
    %47 = vector.load %arg10[%c0_35, %c1_36, %c1_37] : memref<4x18x18xf32, #tpu.memory_space<vmem>>, vector<4x16x16xf32>
    tpu.vector_store %arg10[%c0_35, %c1_36, %c1_37], %44 {strides = array<i32>} : memref<4x18x18xf32, #tpu.memory_space<vmem>>, vector<4x16x16xf32>,
    %c0_38 = arith.constant 0 : index
    %c0_39 = arith.constant 0 : index
    %c0_40 = arith.constant 0 : index
    %48 = vector.load %arg10[%c0_38, %c0_39, %c0_40] : memref<4x18x18xf32, #tpu.memory_space<vmem>>, vector<4x18x18xf32>
    %49 = vector.extract_strided_slice %48 {offsets = [0, 0, 0], sizes = [4, 16, 16], strides = [1, 1, 1]} : vector<4x18x18xf32> to vector<4x16x16xf32>
    %50 = vector.shape_cast %49 : vector<4x16x16xf32> to vector<4x256xf32>
    %c0_41 = arith.constant 0 : index
    %c0_42 = arith.constant 0 : index
    %51 = vector.load %arg11[%c0_41, %c0_42] : memref<36x256xf32, #tpu.memory_space<vmem>>, vector<4x256xf32>
    tpu.vector_store %arg11[%c0_41, %c0_42], %50 {strides = array<i32>} : memref<36x256xf32, #tpu.memory_space<vmem>>, vector<4x256xf32>,
    %52 = vector.extract_strided_slice %48 {offsets = [0, 0, 1], sizes = [4, 16, 16], strides = [1, 1, 1]} : vector<4x18x18xf32> to vector<4x16x16xf32>
    %53 = vector.shape_cast %52 : vector<4x16x16xf32> to vector<4x256xf32>
    %c4_43 = arith.constant 4 : index
    %c0_44 = arith.constant 0 : index
    %54 = vector.load %arg11[%c4_43, %c0_44] : memref<36x256xf32, #tpu.memory_space<vmem>>, vector<4x256xf32>
    tpu.vector_store %arg11[%c4_43, %c0_44], %53 {strides = array<i32>} : memref<36x256xf32, #tpu.memory_space<vmem>>, vector<4x256xf32>,
    %55 = vector.extract_strided_slice %48 {offsets = [0, 0, 2], sizes = [4, 16, 16], strides = [1, 1, 1]} : vector<4x18x18xf32> to vector<4x16x16xf32>
    %56 = vector.shape_cast %55 : vector<4x16x16xf32> to vector<4x256xf32>
    %c8_45 = arith.constant 8 : index
    %c0_46 = arith.constant 0 : index
    %57 = vector.load %arg11[%c8_45, %c0_46] : memref<36x256xf32, #tpu.memory_space<vmem>>, vector<4x256xf32>
    tpu.vector_store %arg11[%c8_45, %c0_46], %56 {strides = array<i32>} : memref<36x256xf32, #tpu.memory_space<vmem>>, vector<4x256xf32>,
    %58 = vector.extract_strided_slice %48 {offsets = [0, 1, 0], sizes = [4, 16, 16], strides = [1, 1, 1]} : vector<4x18x18xf32> to vector<4x16x16xf32>
    %59 = vector.shape_cast %58 : vector<4x16x16xf32> to vector<4x256xf32>
    %c12_47 = arith.constant 12 : index
    %c0_48 = arith.constant 0 : index
    %60 = vector.load %arg11[%c12_47, %c0_48] : memref<36x256xf32, #tpu.memory_space<vmem>>, vector<4x256xf32>
    tpu.vector_store %arg11[%c12_47, %c0_48], %59 {strides = array<i32>} : memref<36x256xf32, #tpu.memory_space<vmem>>, vector<4x256xf32>,
    %61 = vector.extract_strided_slice %48 {offsets = [0, 1, 1], sizes = [4, 16, 16], strides = [1, 1, 1]} : vector<4x18x18xf32> to vector<4x16x16xf32>
    %62 = vector.shape_cast %61 : vector<4x16x16xf32> to vector<4x256xf32>
    %c16_49 = arith.constant 16 : index
    %c0_50 = arith.constant 0 : index
    %63 = vector.load %arg11[%c16_49, %c0_50] : memref<36x256xf32, #tpu.memory_space<vmem>>, vector<4x256xf32>
    tpu.vector_store %arg11[%c16_49, %c0_50], %62 {strides = array<i32>} : memref<36x256xf32, #tpu.memory_space<vmem>>, vector<4x256xf32>,
    %64 = vector.extract_strided_slice %48 {offsets = [0, 1, 2], sizes = [4, 16, 16], strides = [1, 1, 1]} : vector<4x18x18xf32> to vector<4x16x16xf32>
    %65 = vector.shape_cast %64 : vector<4x16x16xf32> to vector<4x256xf32>
    %c20_51 = arith.constant 20 : index
    %c0_52 = arith.constant 0 : index
    %66 = vector.load %arg11[%c20_51, %c0_52] : memref<36x256xf32, #tpu.memory_space<vmem>>, vector<4x256xf32>
    tpu.vector_store %arg11[%c20_51, %c0_52], %65 {strides = array<i32>} : memref<36x256xf32, #tpu.memory_space<vmem>>, vector<4x256xf32>,
    %67 = vector.extract_strided_slice %48 {offsets = [0, 2, 0], sizes = [4, 16, 16], strides = [1, 1, 1]} : vector<4x18x18xf32> to vector<4x16x16xf32>
    %68 = vector.shape_cast %67 : vector<4x16x16xf32> to vector<4x256xf32>
    %c24_53 = arith.constant 24 : index
    %c0_54 = arith.constant 0 : index
    %69 = vector.load %arg11[%c24_53, %c0_54] : memref<36x256xf32, #tpu.memory_space<vmem>>, vector<4x256xf32>
    tpu.vector_store %arg11[%c24_53, %c0_54], %68 {strides = array<i32>} : memref<36x256xf32, #tpu.memory_space<vmem>>, vector<4x256xf32>,
    %70 = vector.extract_strided_slice %48 {offsets = [0, 2, 1], sizes = [4, 16, 16], strides = [1, 1, 1]} : vector<4x18x18xf32> to vector<4x16x16xf32>
    %71 = vector.shape_cast %70 : vector<4x16x16xf32> to vector<4x256xf32>
    %c28_55 = arith.constant 28 : index
    %c0_56 = arith.constant 0 : index
    %72 = vector.load %arg11[%c28_55, %c0_56] : memref<36x256xf32, #tpu.memory_space<vmem>>, vector<4x256xf32>
    tpu.vector_store %arg11[%c28_55, %c0_56], %71 {strides = array<i32>} : memref<36x256xf32, #tpu.memory_space<vmem>>, vector<4x256xf32>,
    %73 = vector.extract_strided_slice %48 {offsets = [0, 2, 2], sizes = [4, 16, 16], strides = [1, 1, 1]} : vector<4x18x18xf32> to vector<4x16x16xf32>
    %74 = vector.shape_cast %73 : vector<4x16x16xf32> to vector<4x256xf32>
    %c32_57 = arith.constant 32 : index
    %c0_58 = arith.constant 0 : index
    %75 = vector.load %arg11[%c32_57, %c0_58] : memref<36x256xf32, #tpu.memory_space<vmem>>, vector<4x256xf32>
    tpu.vector_store %arg11[%c32_57, %c0_58], %74 {strides = array<i32>} : memref<36x256xf32, #tpu.memory_space<vmem>>, vector<4x256xf32>,
    %c0_59 = arith.constant 0 : index
    %c0_60 = arith.constant 0 : index
    %76 = vector.load %arg5[%c0_59, %c0_60] : memref<4x36xf32, #tpu.memory_space<vmem>>, vector<4x36xf32>
    %c0_61 = arith.constant 0 : index
    %c0_62 = arith.constant 0 : index
    %77 = vector.load %arg11[%c0_61, %c0_62] : memref<36x256xf32, #tpu.memory_space<vmem>>, vector<36x256xf32>
    %cst_63 = arith.constant dense<0.000000e+00> : vector<4x256xf32>
    %78 = tpu.matmul %76, %77, %cst_63 {dimension_numbers = #tpu.dot_dimension_numbers<[1], [0], [0], [1], [0, 0, 1, 1], [], []>} : vector<4x36xf32>, vector<36x256xf32>, vector<4x256xf32> -> vector<4x256xf32>
    %c0_64 = arith.constant 0 : index
    %c0_65 = arith.constant 0 : index
    %79 = vector.load %arg6[%c0_64, %c0_65] : memref<4x1xf32, #tpu.memory_space<vmem>>, vector<4x1xf32>
    %80 = vector.broadcast %79 : vector<4x1xf32> to vector<4x256xf32>
    %81 = arith.mulf %78, %80 : vector<4x256xf32>
    %c0_66 = arith.constant 0 : index
    %c0_67 = arith.constant 0 : index
    %82 = vector.load %arg7[%c0_66, %c0_67] : memref<4x1xf32, #tpu.memory_space<vmem>>, vector<4x1xf32>
    %83 = vector.broadcast %82 : vector<4x1xf32> to vector<4x256xf32>
    %84 = arith.addf %81, %83 : vector<4x256xf32>
    %85 = vector.shape_cast %1 : vector<4x16x16xf32> to vector<4x256xf32>
    %86 = arith.addf %84, %85 : vector<4x256xf32>
    %cst_68 = arith.constant 0.000000e+00 : f32
    %87 = vector.broadcast %cst_68 : f32 to vector<4x256xf32>
    %88 = arith.maximumf %86, %87 : vector<4x256xf32>
    %c0_69 = arith.constant 0 : index
    %c0_70 = arith.constant 0 : index
    %c0_71 = arith.constant 0 : index
    %89 = vector.load %arg8[%c0_69, %c0_70, %c0_71] : memref<1x4x256xf32, #tpu.memory_space<vmem>>, vector<1x4x256xf32>
    %90 = vector.shape_cast %89 : vector<1x4x256xf32> to vector<4x256xf32>
    %91 = vector.shape_cast %88 : vector<4x256xf32> to vector<1x4x256xf32>
    tpu.vector_store %arg8[%c0_69, %c0_70, %c0_71], %91 {strides = array<i32>} : memref<1x4x256xf32, #tpu.memory_space<vmem>>, vector<1x4x256xf32>,
    return
  }
  func.func @transform_0(%arg0: i32) -> (i32, i32, i32, i32) {
    %c0_i32 = arith.constant 0 : i32
    %c0_i32_0 = arith.constant 0 : i32
    %c0_i32_1 = arith.constant 0 : i32
    %c0_i32_2 = arith.constant 0 : i32
    return %arg0, %c0_i32, %c0_i32_0, %c0_i32_1 : i32, i32, i32, i32
  }
  func.func @transform_1(%arg0: i32) -> (i32, i32) {
    %c0_i32 = arith.constant 0 : i32
    %c0_i32_0 = arith.constant 0 : i32
    %c0_i32_1 = arith.constant 0 : i32
    return %c0_i32, %c0_i32_0 : i32, i32
  }
  func.func @transform_2(%arg0: i32) -> (i32, i32) {
    %c0_i32 = arith.constant 0 : i32
    %c0_i32_0 = arith.constant 0 : i32
    %c0_i32_1 = arith.constant 0 : i32
    return %c0_i32, %c0_i32_0 : i32, i32
  }
  func.func @transform_3(%arg0: i32) -> (i32, i32) {
    %c0_i32 = arith.constant 0 : i32
    %c0_i32_0 = arith.constant 0 : i32
    %c0_i32_1 = arith.constant 0 : i32
    return %c0_i32, %c0_i32_0 : i32, i32
  }
  func.func @transform_4(%arg0: i32) -> (i32, i32) {
    %c0_i32 = arith.constant 0 : i32
    %c0_i32_0 = arith.constant 0 : i32
    %c0_i32_1 = arith.constant 0 : i32
    return %c0_i32, %c0_i32_0 : i32, i32
  }
  func.func @transform_5(%arg0: i32) -> (i32, i32) {
    %c0_i32 = arith.constant 0 : i32
    %c0_i32_0 = arith.constant 0 : i32
    %c0_i32_1 = arith.constant 0 : i32
    return %c0_i32, %c0_i32_0 : i32, i32
  }
  func.func @transform_6(%arg0: i32) -> (i32, i32) {
    %c0_i32 = arith.constant 0 : i32
    %c0_i32_0 = arith.constant 0 : i32
    %c0_i32_1 = arith.constant 0 : i32
    return %c0_i32, %c0_i32_0 : i32, i32
  }
  func.func @transform_7(%arg0: i32) -> (i32, i32, i32) {
    %c0_i32 = arith.constant 0 : i32
    %c0_i32_0 = arith.constant 0 : i32
    %c0_i32_1 = arith.constant 0 : i32
    return %arg0, %c0_i32, %c0_i32_0 : i32, i32, i32
  }
}

</mosaic_0001>

<bundles_post_ra>
// kernel: tpu_custom_call.1
= control target key start
LH: loop header
LB: loop body
LE: loop exit
PB: predicated region body
PF: predicated region fallthrough
CT: control target
= control target key end

     0   :  { %12 = vsyncpa [#allocation6], 0  ;;  %s8195_s0 = inlined_call_operand.hbm [shape: f32[2,4,16,16], index: 0, kind: input, shape index: {}]   ;;  %s8196_s1 = inlined_call_operand.vmem [shape: f32[4,36], index: 1, kind: input, shape index: {}]   ;;  %s8197_s2 = inlined_call_operand.vmem [shape: f32[4,1], index: 2, kind: input, shape index: {}]   ;;  %s8198_s3 = inlined_call_operand.vmem [shape: f32[4,1], index: 3, kind: input, shape index: {}]   ;;  %s8199_s4 = inlined_call_operand.vmem [shape: f32[4,36], index: 4, kind: input, shape index: {}]   ;;  %s8200_s5 = inlined_call_operand.vmem [shape: f32[4,1], index: 5, kind: input, shape index: {}]   ;;  %s8201_s6 = inlined_call_operand.vmem [shape: f32[4,1], index: 6, kind: input, shape index: {}]   ;;  %s8202_s7 = inlined_call_operand.hbm [shape: f32[2,4,256], index: 7, kind: output, shape index: {}]  }
   0x1   :  { %14 = vsyncpa [#allocation6 + $0x1], 0 }
   0x2   :  { %15 = vsyncpa [#allocation7], 0 }
   0x3   :  { %17 = vsyncpa [#allocation7 + $0x1], 0  ;;  %s5066_s24 = smov 0   ;;  %s5068_s25 = smov 0  }
   0x4   :  { %s5070_s26 = smov 0   ;;  %s5072_s27 = smov 0  }
   0x5 LB: > { %s5087_s28 = sadd.s32 4294967295, %s5008_s27   ;;  %s4823_s29 = sadd.s32 4294967294, %s5008_s27   ;;  %s5008_s27 = sphi %s5072_s27, %s8323_s27   ;;  %s5004_s26 = sphi %s5070_s26, %s8322_s26   ;;  %s5000_s25 = sphi %s5068_s25, %s8321_s25   ;;  %s4996_s24 = sphi %s5066_s24, %s8320_s24  }
   0x6   : > { %s5091_s30 = sadd.s32 1, %s5008_s27   ;;  %s30_s8 = sadd.s32 1, %s5004_s26 }
   0x7   : > { %s27_s9 = ssub.s32 %s5008_s27, %s5091_s30  ;;  %p37_p0 = scmp.ne.s32.totalorder %s5004_s26, %s5000_s25 }
   0x8   : > { %p28_p1 = scmp.eq.s32.totalorder %s27_s9, 0  ;;  %p38_p2 = scmp.eq.s32.totalorder %s5008_s27, 0 }
   0x9   : > { %p43_p3 = scmp.ne.s32.totalorder %s5000_s25, %s4996_s24  ;;  %p44_p4 = scmp.eq.s32.totalorder %s5087_s28, 0 }
   0xa   : > { %s5103_s10 = scalar_select %p28_p1, %s5004_s26, %s30_s8  }
   0xb   : > { %p5105_p5 = por %p38_p2, %p37_p0  ;;  %p5109_p6 = por %p44_p4, %p43_p3 }
   0xc   : > { %8232 = sst [smem:[#allocation11_spill]] %s5103_s10  ;;  %p193_p7 = scmp.eq.s32.totalorder %s5087_s28, 1 }
   0xd   : > { %p199_p8 = scmp.eq.s32.totalorder %s4823_s29, 1  ;;  %p4859_p10 = scmp.lt.s32.totalorder %s5008_s27, 2 }
   0xe   : > { %p5116_p11 = por %p193_p7, %p37_p0  ;;  %s237_s15 = sand.u32 1, %s5004_s26  }
   0xf   : > { %p5120_p12 = por %p199_p8, %p43_p3  ;;  %s4845_s16 = sshll.u32 %s5008_s27, 6 }
  0x10   : > { %s4826_s17 = sshll.u32 %s237_s15, 6  ;;  %s246_s20 = scalar_lea.hbm %s8195_s0, %s4845_s16 }
  0x11   : > { %s247_s21 = sshll.u32 %s246_s20, 4  ;;  %s241_s22 = scalar_lea.vmem [#allocation5], %s4826_s17  ;;  %s248_s21 = int_to_ptr.hbm [resolvable:$true] %s247_s21 }
  0x12   : > { %s249_s23 = sshll.u32 %s241_s22, 4  ;;  %p5131_p13 = pnand %p4859_p10, %p5105_p5  ;;  %s250_s23 = int_to_ptr.vmem [resolvable:$true] %s249_s23 }
  0x13   : > { %p4829_p0 = scmp.ge.s32.totalorder %s5008_s27, 1  ;;  %p257_p1 = scmp.lt.s32.totalorder %s5008_s27, 3 }
  0x14   : > { %s238_s8 = scalar_lea.sflag [#allocation6], %s237_s15  ;;  %s4912_s9 = sshra.s32 %s248_s21, 4  ;;  %s4913_s9 = int_to_ptr.hbm [resolvable:$true] %s4912_s9 }
  0x15   : > { %s4914_s10 = scalar_lea.hbm %s4913_s9, 64  ;;  %p4916_p3 = pneg %p5131_p13 }
  0x16   : > { %p4915_p2 = scmp.ne.s32.totalorder %s4913_s9, %s4914_s10  ;;  %s4919_s11 = scalar_lea.hbm %s8195_s0, 128 }
  0x17   : > { %p4920_p5 = scmp.lt.s32.totalorder %s4913_s9, %s8195_s0  ;;  %p4921_p8 = scmp.lt.s32.totalorder %s4919_s11, %s4914_s10 }
  0x18   : > { %p4917_p4 = pnand %p4916_p3, %p4915_p2 }
  0x19   : > { %p4922_p10 = por %p4921_p8, %p4920_p5 }
  0x1a   : > { %p4918_p7 = pneg %p4917_p4 }
  0x1c   : > { %p4923_p9 = pnand %p4922_p10, %p4918_p7 }
  0x1e   : > { %4926 = shalt.err (!%p4923_p9)
}
  0x1f   : > { %s5010_s15 = smov 128   ;;  %s5011_s20 = smov 8  }
  0x20   : > { %4854 = dma.hbm_to_vmem [thread:$0]  (!%p5131_p13), %s248_s21, 1024, %s250_s23, %s238_s8, %s5010_s15, %s5010_s15, %s5011_s20  }
  0x21   : > { %p258_p2 = pnand %p4829_p0, %p257_p1 }
  0x23   : > { %261 = sbr.rel (%p258_p2) target bundleno = 2267 (0x8db), region = 48 }
  0x28   : > { %s5152_s22 = sand.u32 1, %s5000_s25  }
  0x29   : > { %s4830_s10 = sshll.u32 %s5152_s22, 6  ;;  %s264_s9 = scalar_lea.sflag [#allocation6], %s5152_s22 }
  0x2a   : > { %s5156_s16 = scalar_lea.vmem [#allocation5], %s4830_s10 }
  0x2b   : > { %4987 = dma.done.wait (%p5109_p6), %s264_s9, 1024  }
  0x2c   : > { %4989 = vsyncadd (%p5109_p6), %s264_s9, 4294966272  ;;  %vm307_vm0 = vcmask 146432   ;;  %v5012_v0 = vmov 0.0   ;;  %v301_v1 = vld [vmem:[%s5156_s16 + $0x10] sm:$0xff]  ;;  %v299_v2 = vld [vmem:[%s5156_s16] sm:$0xff]  ;;  %s5013_s12 = smov 1  }
  0x2d   : > { %315 = vst.msk [vmem:[#allocation2 + $0x30] sm:$0xff] %vm307_vm0, %v5012_v0  ;;  %v302_v3 = vld [vmem:[%s5156_s16 + $0x18] sm:$0xff]  ;;  %333 = vrot.lane.b32.xlu1 %v301_v1, %s5013_s12  ;;  %v4558_v4 = vrot.slane %v301_v1, 4  ;;  %329 = vrot.lane.b32.xlu0 %v299_v2, %s5013_s12  ;;  %v4546_v5 = vrot.slane %v299_v2, 4  ;;  %v300_v7 = vld [vmem:[%s5156_s16 + $0x8] sm:$0xff]  ;;  %vm375_vm1 = vcmask 1047556  }
  0x2e   : > { %316 = vst.msk [vmem:[#allocation2 + $0x38] sm:$0xff] %vm307_vm0, %v5012_v0  ;;  %v4614_v6 = vrot.slane %v302_v3, 4  ;;  %v303_v8 = vld [vmem:[%s5156_s16 + $0x20] sm:$0xff]  ;;  %v4602_v9 = vrot.slane %v300_v7, 4  ;;  %v306_v11 = vld [vmem:[%s5156_s16 + $0x38] sm:$0xff]  ;;  %v305_v12 = vld [vmem:[%s5156_s16 + $0x30] sm:$0xff] }
  0x2f   : > { %308 = vst.msk [vmem:[#allocation2] sm:$0xff] %vm307_vm0, %v5012_v0  ;;  %337 = vrot.lane.b32.xlu2 %v303_v8, %s5013_s12  ;;  %v4544_v10 = vrot.slane %v303_v8, 4  ;;  %v5181_v13 = vsel %vm375_vm1, %v303_v8, %v4546_v5  ;;  %v4612_v14 = vrot.slane %v306_v11, 4  ;;  %v4556_v16 = vrot.slane %v305_v12, 4  ;;  %v304_v21 = vld [vmem:[%s5156_s16 + $0x28] sm:$0xff]  ;;  %s5014_s21 = smov 127  }
  0x30   : > { %309 = vst.msk [vmem:[#allocation2 + $0x8] sm:$0xff] %vm307_vm0, %v5012_v0  ;;  %v5184_v15 = vsel %vm375_vm1, %v306_v11, %v4614_v6  ;;  %v5191_v18 = vsel %vm375_vm1, %v305_v12, %v4558_v4  ;;  %v4600_v22 = vrot.slane %v304_v21, 4  ;;  %v5204_v23 = vsel %vm375_vm1, %v304_v21, %v4602_v9  ;;  %s5015_s23 = smov 126   ;;  %s5018_s29 = smov 32  }
  0x31   : > { %312 = vst.msk [vmem:[#allocation2 + $0x18] sm:$0xff] %vm307_vm0, %v5012_v0  ;;  %v5188_v17 = vsel %vm375_vm1, %v4544_v10, %v299_v2  ;;  %v5195_v19 = vsel %vm375_vm1, %v4612_v14, %v302_v3  ;;  %v5198_v20 = vsel %vm375_vm1, %v4556_v16, %v301_v1  ;;  %vm310_vm2 = vcmask 140288   ;;  %s5019_s8 = smov 96   ;;  %s5020_s17 = smov 64  }
  0x32   : > { %313 = vst.msk [vmem:[#allocation2 + $0x20] sm:$0xff] %vm307_vm0, %v5012_v0  ;;  %v5211_v24 = vsel %vm375_vm1, %v4600_v22, %v300_v7  ;;  %vm353_vm3 = vcmask 138248   ;;  %vm1641_vm4 = vcmask 1045504   ;;  %v5016_v54 = vmov 1983009808   ;;  %s5021_s11 = smov 80  }
  0x33   : > { %318 = vst.msk [vmem:[#allocation2 + $0x48] sm:$0xff] %vm307_vm0, %v5012_v0  ;;  %v380_v55 = vunpack.c.l.s4 %v5016_v54  ;;  %vm1000_vm5 = vcmask 1046528   ;;  %v5017_v6 = vmov 1934713408   ;;  %s5022_s18 = smov 48   ;;  %s5023_s19 = smov 16  }
  0x34   : > { %319 = vst.msk [vmem:[#allocation2 + $0x50] sm:$0xff] %vm307_vm0, %v5012_v0  ;;  %s5024_s15 = smov 112   ;;  %vm543_vm6 = vcmask 130048   ;;  %vm545_vm7 = vcmask 261120   ;;  %vm547_vm8 = vcmask 392192   ;;  %vm549_vm9 = vcmask 523264  }
  0x35   : > { %8238 = vst [vmem:[#allocation12_spill] sm:$0xff] %v5181_v13  ;;  %335 = vrot.lane.b32.xlu1 %v302_v3, %s5013_s12  ;;  %331 = vrot.lane.b32.xlu0 %v300_v7, %s5013_s12  ;;  %v5285_v57 = vunpack.c.0.s8 %v380_v55  ;;  %v404_v7 = vunpack.c.l.s4 %v5017_v6  ;;  %vm551_vm10 = vcmask 654336   ;;  %vm553_vm11 = vcmask 785408  }
  0x36   : > { %8239 = vst [vmem:[#allocation13_spill] sm:$0xff] %v5184_v15  ;;  %vm555_vm12 = vcmask 916480   ;;  %vm2291_vm13 = vcmask 1043456   ;;  %vm2287_vm14 = vcmask 293888  }
  0x37   : > { %2512 = vst.msk [vmem:[#allocation3] sm:$0xff] %vm307_vm0, %v5012_v0  ;;  %339 = vrot.lane.b32.xlu2 %v304_v21, %s5013_s12 }
  0x38   : > { %8240 = vst [vmem:[#allocation14_spill] sm:$0xff] %v5188_v17 }
  0x39   : > { %8241 = vst [vmem:[#allocation15_spill] sm:$0xff] %v5191_v18 }
  0x3a   : > { %2513 = vst.msk [vmem:[#allocation3 + $0x8] sm:$0xff] %vm307_vm0, %v5012_v0 }
  0x3b   : > { %8242 = vst [vmem:[#allocation16_spill] sm:$0xff] %v5195_v19 }
  0x3c   : > { %8243 = vst [vmem:[#allocation17_spill] sm:$0xff] %v5198_v20 }
  0x3d   : > { %2515 = vst.msk [vmem:[#allocation3 + $0x18] sm:$0xff] %vm307_vm0, %v5012_v0  ;;  %343 = vrot.lane.b32.xlu1 %v306_v11, %s5013_s12  ;;  %341 = vrot.lane.b32.xlu0 %v305_v12, %s5013_s12 }
  0x3e   : > { %2516 = vst.msk [vmem:[#allocation3 + $0x20] sm:$0xff] %vm307_vm0, %v5012_v0 }
  0x3f   : > { %8244 = vst [vmem:[#allocation18_spill] sm:$0xff] %v5204_v23 }
  0x40   : > { %2518 = vst.msk [vmem:[#allocation3 + $0x30] sm:$0xff] %vm307_vm0, %v5012_v0 }
  0x41   : > { %2519 = vst.msk [vmem:[#allocation3 + $0x38] sm:$0xff] %vm307_vm0, %v5012_v0 }
  0x42   : > { %8245 = vst [vmem:[#allocation19_spill] sm:$0xff] %v5211_v24 }
  0x43   : > { %2521 = vst.msk [vmem:[#allocation3 + $0x48] sm:$0xff] %vm307_vm0, %v5012_v0 }
  0x44   : > { %2522 = vst.msk [vmem:[#allocation3 + $0x50] sm:$0xff] %vm307_vm0, %v5012_v0 }
  0x45   : > { %317 = vst.msk [vmem:[#allocation2 + $0x40] sm:$0x3] %vm310_vm2, %v5012_v0 }
  0x46   : > { %311 = vst.msk [vmem:[#allocation2 + $0x10] sm:$0x3] %vm310_vm2, %v5012_v0 }
  0x47   : > { %314 = vst.msk [vmem:[#allocation2 + $0x28] sm:$0x3] %vm310_vm2, %v5012_v0 }
  0x48   : > { %320 = vst.msk [vmem:[#allocation2 + $0x58] sm:$0x3] %vm310_vm2, %v5012_v0 }
  0x49   : > { %2514 = vst.msk [vmem:[#allocation3 + $0x10] sm:$0x3] %vm310_vm2, %v5012_v0 }
  0x4a   : > { %2517 = vst.msk [vmem:[#allocation3 + $0x28] sm:$0x3] %vm310_vm2, %v5012_v0 }
  0x4b   : > { %2520 = vst.msk [vmem:[#allocation3 + $0x40] sm:$0x3] %vm310_vm2, %v5012_v0 }
  0x4c   : > { %2523 = vst.msk [vmem:[#allocation3 + $0x58] sm:$0x3] %vm310_vm2, %v5012_v0 }
  0x89   : > { %v338_v25 = vpop.permute.xlu2 %337 }
  0x8a   : > { %358 = vst.msk [vmem:[#allocation2 + $0x31] sm:$0xff] %vm353_vm3, %v338_v25 }
  0x91   : > { %v340_v26 = vpop.permute.xlu2 %339  ;;  %v5224_v30 = vld [vmem:[#allocation2 + $0x30] sm:$0xff] }
  0x92   : > { %359 = vst.msk [vmem:[#allocation2 + $0x39] sm:$0xff] %vm353_vm3, %v340_v26  ;;  %v1652_v33 = vrot.slane %v5224_v30, 2  ;;  %v374_v56 = vrot.slane %v5224_v30, 4 }
  0x99   : > { %v5222_v29 = vld [vmem:[#allocation2 + $0x38] sm:$0xff]  ;;  %v5226_v31 = vld [vmem:[#allocation2 + $0x40] sm:$0x3] }
  0x9a   : > { %v1653_v32 = vrot.slane %v5222_v29, 2  ;;  %v1655_v38 = vrot.slane %v5226_v31, 2  ;;  %v431_v8 = vrot.slane %v5222_v29, 4 }
  0x9c   : > { %v5242_v39 = vsel %vm1641_vm4, %v1652_v33, %v1653_v32  ;;  %v5245_v40 = vsel %vm1641_vm4, %v1653_v32, %v1655_v38 }
  0x9f   : > { %v334_v27 = vpop.permute.xlu1 %333  ;;  %v330_v28 = vpop.permute.xlu0 %329 }
  0xa0   : > { %356 = vst.msk [vmem:[#allocation2 + $0x19] sm:$0xff] %vm353_vm3, %v334_v27 }
  0xa1   : > { %354 = vst.msk [vmem:[#allocation2 + $0x1] sm:$0xff] %vm353_vm3, %v330_v28 }
  0xa7   : > { %v336_v34 = vpop.permute.xlu1 %335  ;;  %v332_v35 = vpop.permute.xlu0 %331  ;;  %v5230_v36 = vld [vmem:[#allocation2 + $0x18] sm:$0xff] }
  0xa8   : > { %357 = vst.msk [vmem:[#allocation2 + $0x21] sm:$0xff] %vm353_vm3, %v336_v34  ;;  %578 = vrot.lane.b32.xlu0 %v5230_v36, %s5014_s21  ;;  %v5235_v37 = vld [vmem:[#allocation2] sm:$0xff]  ;;  %v389_v61 = vrot.slane %v5230_v36, 4  ;;  %v1647_v10 = vrot.slane %v5230_v36, 2  ;;  %v1006_v11 = vrot.slane %v5230_v36, 1 }
  0xa9   : > { %355 = vst.msk [vmem:[#allocation2 + $0x9] sm:$0xff] %vm353_vm3, %v332_v35  ;;  %574 = vrot.lane.b32.xlu1 %v5235_v37, %s5014_s21  ;;  %v377_v58 = vrot.slane %v5235_v37, 4  ;;  %v376_v59 = vsel %vm375_vm1, %v374_v56, %v5235_v37  ;;  %v1642_v21 = vrot.slane %v5235_v37, 2 }
  0xaa   : > { %v5302_v1 = vperm.slane %v376_v59, %v5285_v57 }
  0xab   : > { %v378_v0 = vsel %vm375_vm1, %v5224_v30, %v377_v58 }
  0xac   : > { %v386_v12 = vperm.slane %v378_v0, %v5285_v57  ;;  %v401_v26 = vrot.slane %v5302_v1, 4 }
  0xaf   : > { %v344_v41 = vpop.permute.xlu1 %343  ;;  %v342_v42 = vpop.permute.xlu0 %341  ;;  %v5247_v43 = vld [vmem:[#allocation2 + $0x20] sm:$0xff]  ;;  %v5311_v9 = vld [vmem:[#allocation2 + $0x28] sm:$0x3] }
  0xb0   : > { %361 = vst.msk [vmem:[#allocation2 + $0x51] sm:$0xff] %vm353_vm3, %v344_v41  ;;  %584 = vrot.lane.b32.xlu0 %v5222_v29, %s5014_s21  ;;  %v5252_v44 = vld [vmem:[#allocation2 + $0x8] sm:$0xff]  ;;  %v364_v45 = vld [vmem:[#allocation2 + $0x10] sm:$0x3]  ;;  %v1007_v2 = vrot.slane %v5247_v43, 1  ;;  %v1648_v4 = vrot.slane %v5247_v43, 2 }
  0xb1   : > { %360 = vst.msk [vmem:[#allocation2 + $0x49] sm:$0xff] %vm353_vm3, %v342_v42  ;;  %580 = vrot.lane.b32.xlu1 %v5247_v43, %s5014_s21  ;;  %576 = vrot.lane.b32.xlu2 %v5252_v44, %s5014_s21  ;;  %v1643_v46 = vrot.slane %v5252_v44, 2  ;;  %v1645_v47 = vrot.slane %v364_v45, 2  ;;  %v1002_v62 = vrot.slane %v5252_v44, 1  ;;  %v1004_v63 = vrot.slane %v364_v45, 1 }
  0xb2   : > { %v445_v14 = vrot.slane %v5247_v43, 4  ;;  %v5334_v27 = vsel %vm1000_vm5, %v1006_v11, %v1007_v2  ;;  %v1650_v33 = vrot.slane %v5311_v9, 2  ;;  %v5350_v38 = vsel %vm1641_vm4, %v1647_v10, %v1648_v4 }
  0xb3   : > { %v5261_v48 = vsel %vm1641_vm4, %v1643_v46, %v1645_v47  ;;  %v5323_v22 = vsel %vm1000_vm5, %v1002_v62, %v1004_v63  ;;  %v413_v41 = vrot.slane %v386_v12, 4  ;;  %v433_v42 = vrot.slane %v5252_v44, 4 }
  0xb4   : > { %v5353_v45 = vunpack.c.0.s8 %v404_v7  ;;  %v1001_v10 = vrot.slane %v5235_v37, 1 }
  0xb7   : > { %v5317_v16 = vld [vmem:[#allocation2 + $0x58] sm:$0x3] }
  0xb8   : > { %790 = vrot.lane.b32.xlu0 %v5252_v44, %s5015_s23  ;;  %v5265_v49 = vld [vmem:[#allocation2 + $0x48] sm:$0xff]  ;;  %v5267_v50 = vld [vmem:[#allocation2 + $0x50] sm:$0xff]  ;;  %v1660_v35 = vrot.slane %v5317_v16, 2 }
  0xb9   : > { %582 = vrot.lane.b32.xlu2 %v5224_v30, %s5014_s21  ;;  %586 = vrot.lane.b32.xlu1 %v5265_v49, %s5014_s21  ;;  %v1657_v51 = vrot.slane %v5265_v49, 2  ;;  %v1658_v52 = vrot.slane %v5267_v50, 2  ;;  %v387_v60 = vrot.slane %v5265_v49, 4  ;;  %v390_v5 = vsel %vm375_vm1, %v5265_v49, %v389_v61 }
  0xba   : > { %v398_v28 = vperm.slane %v390_v5, %v5285_v57  ;;  %v446_v32 = vsel %vm375_vm1, %v5267_v50, %v445_v14  ;;  %v443_v34 = vrot.slane %v5267_v50, 4  ;;  %v434_v61 = vsel %vm375_vm1, %v5222_v29, %v433_v42 }
  0xbb   : > { %v5276_v53 = vsel %vm1641_vm4, %v1657_v51, %v1658_v52  ;;  %v388_v3 = vsel %vm375_vm1, %v387_v60, %v5230_v36  ;;  %v432_v51 = vsel %vm375_vm1, %v431_v8, %v5252_v44  ;;  %v454_v54 = vperm.slane %v446_v32, %v5285_v57 }
  0xbc   : > { %v5326_v25 = vperm.slane %v388_v3, %v5285_v57  ;;  %v414_v55 = vsel %vm375_vm1, %v398_v28, %v413_v41  ;;  %v444_v56 = vsel %vm375_vm1, %v443_v34, %v5247_v43  ;;  %v5367_v58 = vsel %vm1641_vm4, %v1658_v52, %v1660_v35 }
  0xbd   : > { %v438_v60 = vperm.slane %v432_v51, %v5285_v57  ;;  %v5374_v63 = vperm.slane %v414_v55, %v5353_v45  ;;  %v467_v0 = vrot.slane %v454_v54, 4  ;;  %v450_v3 = vperm.slane %v444_v56, %v5285_v57 }
  0xbe   : > { %v402_v47 = vsel %vm375_vm1, %v5326_v25, %v401_v26  ;;  %v442_v52 = vperm.slane %v434_v61, %v5285_v57  ;;  %v5395_v26 = vsel %vm1000_vm5, %v1001_v10, %v1002_v62  ;;  %v1016_v32 = vrot.slane %v5265_v49, 1 }
  0xbf   : > { %v410_v59 = vperm.slane %v402_v47, %v5353_v45  ;;  %v457_v5 = vrot.slane %v438_v60, 4  ;;  %v1017_v44 = vrot.slane %v5267_v50, 1  ;;  %v1043_v61 = vrot.slane %v5334_v27, 4 }
  0xc0   : > { %796 = vrot.lane.b32.xlu0 %v5224_v30, %s5015_s23  ;;  %v468_v6 = vsel %vm375_vm1, %v467_v0, %v442_v52  ;;  %v469_v51 = vrot.slane %v442_v52, 4  ;;  %v1014_v10 = vrot.slane %v5226_v31, 1 }
  0xc1   : > { %588 = vrot.lane.b32.xlu2 %v5267_v50, %s5014_s21  ;;  %792 = vrot.lane.b32.xlu1 %v5230_v36, %s5015_s23  ;;  %v5347_v36 = vsel %vm1641_vm4, %v1642_v21, %v1643_v46  ;;  %v5362_v46 = vsel %vm1641_vm4, %v1648_v4, %v1650_v33  ;;  %v411_v4 = vrot.slane %v398_v28, 4  ;;  %v458_v7 = vsel %vm375_vm1, %v450_v3, %v457_v5 }
  0xc2   : > { %v474_v11 = vperm.slane %v468_v6, %v5353_v45  ;;  %v5389_v14 = vperm.slane %v458_v7, %v5353_v45  ;;  %v455_v28 = vrot.slane %v450_v3, 4  ;;  %v1009_v33 = vrot.slane %v5311_v9, 1 }
  0xc3   : > { %v412_v8 = vsel %vm375_vm1, %v411_v4, %v386_v12  ;;  %v1011_v12 = vrot.slane %v5224_v30, 1  ;;  %v425_v34 = vrot.slane %v410_v59, 4  ;;  %v5409_v41 = vsel %vm1000_vm5, %v1016_v32, %v1017_v44 }
  0xc4   : > { %v418_v21 = vperm.slane %v412_v8, %v5353_v45  ;;  %v456_v35 = vsel %vm375_vm1, %v455_v28, %v438_v60  ;;  %v1041_v9 = vrot.slane %v5409_v41, 4  ;;  %v483_v56 = vrot.slane %v474_v11, 4 }
  0xc5   : > { %v5416_v30 = vperm.slane %v456_v35, %v5353_v45  ;;  %v1044_v5 = vsel %vm375_vm1, %v5409_v41, %v1043_v61  ;;  %v399_v8 = vrot.slane %v5326_v25, 4 }
  0xc6   : > { %v427_v62 = vrot.slane %v418_v21, 4  ;;  %v1042_v60 = vsel %vm375_vm1, %v1041_v9, %v5334_v27  ;;  %v484_v6 = vsel %vm375_vm1, 0.0, %v483_v56 }
  0xc7   : > { %v479_v55 = vrot.slane %v5416_v30, 4 }
  0xc8   : > { %802 = vrot.lane.b32.xlu0 %v5267_v50, %s5015_s23  ;;  %v426_v50 = vsel %vm375_vm1, 0.0, %v425_v34 }
  0xc9   : > { %788 = vrot.lane.b32.xlu2 %v5235_v37, %s5015_s23  ;;  %798 = vrot.lane.b32.xlu1 %v5222_v29, %s5015_s23  ;;  %v1012_v37 = vrot.slane %v5222_v29, 1  ;;  %v428_v29 = vsel %vm375_vm1, 0.0, %v427_v62  ;;  %v480_v4 = vsel %vm375_vm1, 0.0, %v479_v55 }
  0xcb   : > { %v5412_v42 = vsel %vm1000_vm5, %v1011_v12, %v1012_v37  ;;  %v1087_v12 = vrot.slane %v5323_v22, 4  ;;  %v5464_v34 = vsel %vm1000_vm5, %v1012_v37, %v1014_v10 }
  0xcc   : > { %v1029_v47 = vrot.slane %v5412_v42, 4 }
  0xcd   : > { %v1088_v9 = vsel %vm375_vm1, %v5464_v34, %v1087_v12 }
  0xd0   : > { %1221 = vrot.lane.b32.xlu0 %v5323_v22, %s5014_s21 }
  0xd1   : > { %794 = vrot.lane.b32.xlu2 %v5247_v43, %s5015_s23  ;;  %1223 = vrot.lane.b32.xlu1 %v5334_v27, %s5014_s21  ;;  %v1019_v43 = vrot.slane %v5317_v16, 1 }
  0xd3   : > { %v5440_v3 = vsel %vm1000_vm5, %v1017_v44, %v1019_v43  ;;  %v1052_v44 = vperm.slane %v1044_v5, %v5285_v57 }
  0xd4   : > { %v1097_v31 = vrot.slane %v5440_v3, 4 }
  0xd8   : > { %492 = vrot.lane.b32.xlu0 %v410_v59, %s5018_s29  ;;  %v470_v59 = vsel %vm375_vm1, %v454_v54, %v469_v51  ;;  %v1048_v54 = vperm.slane %v1042_v60, %v5285_v57  ;;  %v1096_v51 = vperm.slane %v1088_v9, %v5285_v57  ;;  %v1085_v60 = vrot.slane %v5464_v34, 4 }
  0xd9   : > { %800 = vrot.lane.b32.xlu2 %v5265_v49, %s5015_s23  ;;  %508 = vrot.lane.b32.xlu1 %v5374_v63, %s5019_s8  ;;  %v5421_v49 = vsel %vm1000_vm5, %v1007_v2, %v1009_v33  ;;  %v1030_v2 = vsel %vm375_vm1, %v1029_v47, %v5395_v26  ;;  %v478_v52 = vperm.slane %v470_v59, %v5353_v45 }
  0xda   : > { %v1036_v0 = vperm.slane %v1030_v2, %v5285_v57  ;;  %v1099_v16 = vrot.slane %v5421_v49, 4  ;;  %v1098_v43 = vsel %vm375_vm1, %v1097_v31, %v5421_v49 }
  0xdb   : > { %v485_v32 = vrot.slane %v478_v52, 4  ;;  %v1104_v59 = vperm.slane %v1098_v43, %v5285_v57 }
  0xdc   : > { %v1100_v7 = vsel %vm375_vm1, %v5440_v3, %v1099_v16  ;;  %v1055_v28 = vrot.slane %v1036_v0, 4 }
  0xdd   : > { %v1108_v33 = vperm.slane %v1100_v7, %v5285_v57  ;;  %v486_v35 = vsel %vm375_vm1, 0.0, %v485_v32  ;;  %v1123_v7 = vrot.slane %v1096_v51, 4 }
  0xde   : > { %v1056_v62 = vsel %vm375_vm1, %v1048_v54, %v1055_v28  ;;  %v429_v28 = vrot.slane %v5374_v63, 4 }
  0xdf   : > { %v1124_v10 = vsel %vm375_vm1, %v1108_v33, %v1123_v7 }
  0xe0   : > { %528 = vrot.lane.b32.xlu0 %v474_v11, %s5020_s17  ;;  %v1031_v11 = vrot.slane %v5395_v26, 4  ;;  %v1132_v32 = vperm.slane %v1124_v10, %v5353_v45  ;;  %v430_v31 = vsel %vm375_vm1, 0.0, %v429_v28 }
  0xe1   : > { %1219 = vrot.lane.b32.xlu2 %v5395_v26, %s5014_s21  ;;  %520 = vrot.lane.b32.xlu1 %v5389_v14, %s5018_s29 }
  0xe2   : > { %v1032_v25 = vsel %vm375_vm1, %v5412_v42, %v1031_v11 }
  0xe3   : > { %v1040_v47 = vperm.slane %v1032_v25, %v5285_v57 }
  0xe5   : > { %v1067_v63 = vrot.slane %v1040_v47, 4 }
  0xe7   : > { %v1068_v9 = vsel %vm375_vm1, %v1052_v44, %v1067_v63 }
  0xe8   : > { %504 = vrot.lane.b32.xlu0 %v428_v29, %s5021_s11  ;;  %v5471_v29 = vperm.slane %v1056_v62, %v5353_v45  ;;  %v1076_v43 = vperm.slane %v1068_v9, %v5353_v45 }
  0xe9   : > { %1225 = vrot.lane.b32.xlu2 %v5421_v49, %s5014_s21  ;;  %496 = vrot.lane.b32.xlu1 %v426_v50, %s5022_s18  ;;  %v1065_v50 = vrot.slane %v1052_v44, 4 }
  0xea   : > { %v1079_v28 = vrot.slane %v5471_v29, 4 }
  0xeb   : > { %v1066_v2 = vsel %vm375_vm1, %v1065_v50, %v1040_v47  ;;  %v481_v50 = vrot.slane %v5389_v14, 4 }
  0xec   : > { %v1072_v61 = vperm.slane %v1066_v2, %v5353_v45 }
  0xed   : > { %v482_v47 = vsel %vm375_vm1, 0.0, %v481_v50 }
  0xee   : > { %v1081_v11 = vrot.slane %v1072_v61, 4 }
  0xf0   : > { %516 = vrot.lane.b32.xlu0 %v480_v4, %s5023_s19  ;;  %v1086_v4 = vsel %vm375_vm1, %v1085_v60, %v5323_v22 }
  0xf1   : > { %500 = vrot.lane.b32.xlu2 %v418_v21, %s5020_s17  ;;  %532 = vrot.lane.b32.xlu1 %v484_v6, %s5021_s11  ;;  %v400_v21 = vsel %vm375_vm1, %v399_v8, %v5302_v1  ;;  %v1121_v1 = vrot.slane %v1108_v33, 4  ;;  %v1109_v6 = vrot.slane %v1104_v59, 4  ;;  %v1092_v8 = vperm.slane %v1086_v4, %v5285_v57 }
  0xf2   : > { %v5477_v37 = vperm.slane %v400_v21, %v5353_v45  ;;  %v1082_v21 = vsel %vm375_vm1, 0.0, %v1081_v11 }
  0xf3   : > { %v1122_v55 = vsel %vm375_vm1, %v1121_v1, %v1096_v51  ;;  %v1110_v12 = vsel %vm375_vm1, %v1109_v6, %v1092_v8  ;;  %v1111_v2 = vrot.slane %v1092_v8, 4  ;;  %v1139_v6 = vrot.slane %v1132_v32, 4 }
  0xf4   : > { %v423_v56 = vrot.slane %v5477_v37, 4  ;;  %v5493_v16 = vperm.slane %v1122_v55, %v5353_v45  ;;  %v5515_v33 = vperm.slane %v1110_v12, %v5353_v45 }
  0xf5   : > { %v1112_v14 = vsel %vm375_vm1, %v1104_v59, %v1111_v2  ;;  %v1140_v59 = vsel %vm375_vm1, 0.0, %v1139_v6 }
  0xf6   : > { %v424_v5 = vsel %vm375_vm1, 0.0, %v423_v56  ;;  %v1083_v56 = vrot.slane %v1076_v43, 4  ;;  %v1120_v60 = vperm.slane %v1112_v14, %v5353_v45 }
  0xf8   : > { %540 = vrot.lane.b32.xlu0 %v486_v35, %s5024_s15  ;;  %v1133_v35 = vrot.slane %v5515_v33, 4  ;;  %v1084_v44 = vsel %vm375_vm1, 0.0, %v1083_v56 }
  0xf9   : > { %536 = vrot.lane.b32.xlu2 %v478_v52, %s5019_s8  ;;  %1146 = vrot.lane.b32.xlu1 %v5471_v29, %s5018_s29  ;;  %v1053_v52 = vrot.slane %v1048_v54, 4 }
  0xfa   : > { %v1134_v51 = vsel %vm375_vm1, 0.0, %v1133_v35 }
  0xfb   : > { %v1054_v54 = vsel %vm375_vm1, %v1053_v52, %v1036_v0 }
  0xfc   : > { %v5509_v62 = vperm.slane %v1054_v54, %v5353_v45 }
  0xfe   : > { %v1077_v25 = vrot.slane %v5509_v62, 4 }
 0x100   : > { %1154 = vrot.lane.b32.xlu0 %v1072_v61, %s5020_s17  ;;  %v1078_v1 = vsel %vm375_vm1, 0.0, %v1077_v25 }
 0x101   : > { %1182 = vrot.lane.b32.xlu1 %v5493_v16, %s5020_s17  ;;  %488 = vrot.lane.b32.xlu2 %v424_v5, %s5023_s19  ;;  %v1135_v5 = vrot.slane %v1120_v60, 4 }
 0x103   : > { %v1136_v7 = vsel %vm375_vm1, 0.0, %v1135_v5 }
 0x108   : > { %1190 = vrot.lane.b32.xlu0 %v1132_v32, %s5019_s8 }
 0x109   : > { %1158 = vrot.lane.b32.xlu1 %v1082_v21, %s5021_s11  ;;  %512 = vrot.lane.b32.xlu2 %v430_v31, %s5024_s15  ;;  %v1080_v21 = vsel %vm375_vm1, 0.0, %v1079_v28 }
 0x10b   : > { %v5519_v0 = vpop.permute.xlu2 %576 }
 0x10c   : > { %v656_v2 = vrot.slane %v5519_v0, 4 }
 0x110   : > { %1142 = vrot.lane.b32.xlu0 %v1078_v1, %s5023_s19 }
 0x111   : > { %1170 = vrot.lane.b32.xlu1 %v1134_v51, %s5023_s19  ;;  %524 = vrot.lane.b32.xlu2 %v482_v47, %s5022_s18  ;;  %v1137_v51 = vrot.slane %v5493_v16, 4 }
 0x113   : > { %v583_v55 = vpop.permute.xlu2 %582  ;;  %v1138_v16 = vsel %vm375_vm1, 0.0, %v1137_v51 }
 0x114   : > { %v598_v54 = vrot.slane %v583_v55, 4 }
 0x118   : > { %1166 = vrot.lane.b32.xlu0 %v1084_v44, %s5024_s15 }
 0x119   : > { %1229 = vrot.lane.b32.xlu1 %v5464_v34, %s5014_s21  ;;  %1162 = vrot.lane.b32.xlu2 %v1076_v43, %s5019_s8 }
 0x11a   : > { %v579_v61 = vpop.permute.xlu0 %578 }
 0x11b   : > { %v575_v4 = vpop.permute.xlu1 %574  ;;  %v5539_v52 = vpop.permute.xlu2 %588  ;;  %v612_v63 = vrot.slane %v579_v61, 4 }
 0x11c   : > { %v599_v12 = vsel %vm375_vm1, %v598_v54, %v575_v4  ;;  %v600_v31 = vrot.slane %v575_v4, 4 }
 0x11d   : > { %v5560_v35 = vperm.slane %v599_v12, %v5285_v57 }
 0x11e   : > { %v601_v56 = vsel %vm375_vm1, %v583_v55, %v600_v31 }
 0x11f   : > { %v624_v44 = vrot.slane %v5560_v35, 4 }
 0x120   : > { %1178 = vrot.lane.b32.xlu0 %v1136_v7, %s5022_s18  ;;  %v609_v7 = vperm.slane %v601_v56, %v5285_v57 }
 0x121   : > { %1194 = vrot.lane.b32.xlu1 %v1140_v59, %s5024_s15  ;;  %1174 = vrot.lane.b32.xlu2 %v1120_v60, %s5018_s29 }
 0x122   : > { %v585_v8 = vpop.permute.xlu0 %584 }
 0x123   : > { %v5546_v10 = vpop.permute.xlu1 %580  ;;  %v5548_v11 = vpop.permute.xlu2 %788  ;;  %v657_v6 = vsel %vm375_vm1, %v585_v8, %v656_v2 }
 0x124   : > { %v668_v32 = vrot.slane %v5546_v10, 4  ;;  %v665_v28 = vperm.slane %v657_v6, %v5285_v57 }
 0x126   : > { %v669_v9 = vsel %vm375_vm1, %v5539_v52, %v668_v32 }
 0x127   : > { %v677_v60 = vperm.slane %v669_v9, %v5285_v57 }
 0x128   : > { %1227 = vrot.lane.b32.xlu0 %v5412_v42, %s5014_s21 }
 0x129   : > { %1150 = vrot.lane.b32.xlu2 %v1080_v21, %s5022_s18  ;;  %v690_v21 = vrot.slane %v677_v60, 4 }
 0x12a   : > { %v5557_v25 = vpop.permute.xlu0 %790 }
 0x12b   : > { %v5562_v29 = vpop.permute.xlu2 %794  ;;  %v587_v50 = vpop.permute.xlu1 %586  ;;  %v691_v2 = vsel %vm375_vm1, %v690_v21, %v665_v28 }
 0x12c   : > { %v610_v1 = vrot.slane %v587_v50, 4  ;;  %v613_v43 = vsel %vm375_vm1, %v587_v50, %v612_v63  ;;  %v654_v63 = vrot.slane %v585_v8, 4  ;;  %v814_v50 = vrot.slane %v5548_v11, 4 }
 0x12d   : > { %v621_v47 = vperm.slane %v613_v43, %v5285_v57  ;;  %v692_v43 = vrot.slane %v665_v28, 4  ;;  %v5612_v6 = vperm.slane %v691_v2, %v5353_v45 }
 0x12e   : > { %v611_v14 = vsel %vm375_vm1, %v610_v1, %v579_v61  ;;  %v655_v8 = vsel %vm375_vm1, %v654_v63, %v5519_v0 }
 0x12f   : > { %v5575_v4 = vperm.slane %v611_v14, %v5285_v57  ;;  %v634_v5 = vrot.slane %v621_v47, 4  ;;  %v666_v14 = vrot.slane %v5539_v52, 4  ;;  %v693_v21 = vsel %vm375_vm1, %v677_v60, %v692_v43 }
 0x130   : > { %1233 = vrot.lane.b32.xlu0 %v5440_v3, %s5014_s21  ;;  %v5626_v2 = vperm.slane %v693_v21, %v5353_v45 }
 0x131   : > { %1186 = vrot.lane.b32.xlu2 %v1138_v16, %s5021_s11  ;;  %v625_v55 = vsel %vm375_vm1, %v5575_v4, %v624_v44  ;;  %v635_v32 = vsel %vm375_vm1, %v634_v5, %v609_v7  ;;  %v870_v44 = vrot.slane %v5557_v25, 4  ;;  %v636_v16 = vrot.slane %v609_v7, 4 }
 0x132   : > { %v797_v61 = vpop.permute.xlu0 %796  ;;  %v5586_v59 = vperm.slane %v625_v55, %v5353_v45  ;;  %v5598_v1 = vperm.slane %v635_v32, %v5353_v45  ;;  %v667_v7 = vsel %vm375_vm1, %v666_v14, %v5546_v10 }
 0x133   : > { %v5589_v54 = vpop.permute.xlu2 %800  ;;  %v793_v12 = vpop.permute.xlu1 %792  ;;  %v815_v56 = vsel %vm375_vm1, %v797_v61, %v814_v50  ;;  %v637_v50 = vsel %vm375_vm1, %v621_v47, %v636_v16  ;;  %v673_v14 = vperm.slane %v667_v7, %v5285_v57 }
 0x134   : > { %v826_v31 = vrot.slane %v793_v12, 4  ;;  %715 = vrot.lane.b32.xlu1 %v5586_v59, %s5018_s29  ;;  %v823_v55 = vperm.slane %v815_v56, %v5285_v57  ;;  %v5630_v43 = vperm.slane %v637_v50, %v5353_v45  ;;  %v650_v13 = vrot.slane %v5598_v1, 4 }
 0x136   : > { %v827_v9 = vsel %vm375_vm1, %v5589_v54, %v826_v31  ;;  %v661_v31 = vperm.slane %v655_v8, %v5285_v57  ;;  %v850_v56 = vrot.slane %v823_v55, 4 }
 0x137   : > { %v835_v51 = vperm.slane %v827_v9, %v5285_v57  ;;  %v812_v9 = vrot.slane %v797_v61, 4 }
 0x138   : > { %723 = vrot.lane.b32.xlu0 %v5598_v1, %s5020_s17  ;;  %v680_v10 = vrot.slane %v661_v31, 4 }
 0x139   : > { %1231 = vrot.lane.b32.xlu2 %v5409_v41, %s5014_s21  ;;  %v848_v0 = vrot.slane %v835_v51, 4  ;;  %v813_v61 = vsel %vm375_vm1, %v812_v9, %v5548_v11  ;;  %v851_v50 = vsel %vm375_vm1, %v835_v51, %v850_v56 }
 0x13a   : > { %v803_v5 = vpop.permute.xlu0 %802  ;;  %v5659_v9 = vperm.slane %v813_v61, %v5285_v57  ;;  %v622_v61 = vrot.slane %v5575_v4, 4 }
 0x13b   : > { %v5615_v28 = vpop.permute.xlu2 %1219  ;;  %v799_v32 = vpop.permute.xlu1 %798  ;;  %v849_v8 = vsel %vm375_vm1, %v848_v0, %v823_v55  ;;  %v880_v16 = vrot.slane %v803_v5, 4 }
 0x13c   : > { %v868_v63 = vrot.slane %v799_v32, 4  ;;  %v871_v52 = vsel %vm375_vm1, %v799_v32, %v870_v44  ;;  %751 = vrot.lane.b32.xlu1 %v5612_v6, %s5020_s17  ;;  %v882_v44 = vrot.slane %v5562_v29, 4  ;;  %v5647_v21 = vperm.slane %v849_v8, %v5353_v45 }
 0x13d   : > { %v879_v60 = vperm.slane %v871_v52, %v5285_v57  ;;  %v881_v7 = vsel %vm375_vm1, %v880_v16, %v5562_v29  ;;  %v5668_v8 = vperm.slane %v851_v50, %v5353_v45  ;;  %v678_v50 = vrot.slane %v673_v14, 4 }
 0x13e   : > { %v869_v47 = vsel %vm375_vm1, %v868_v63, %v5557_v25  ;;  %v883_v55 = vsel %vm375_vm1, %v803_v5, %v882_v44  ;;  %v824_v25 = vrot.slane %v5589_v54, 4  ;;  %v681_v5 = vsel %vm375_vm1, %v673_v14, %v680_v10 }
 0x13f   : > { %v5651_v0 = vperm.slane %v869_v47, %v5285_v57  ;;  %v906_v63 = vrot.slane %v879_v60, 4  ;;  %v891_v54 = vperm.slane %v883_v55, %v5285_v57  ;;  %v5672_v51 = vperm.slane %v681_v5, %v5353_v45 }
 0x140   : > { %759 = vrot.lane.b32.xlu0 %v5626_v2, %s5019_s8  ;;  %v825_v44 = vsel %vm375_vm1, %v824_v25, %v793_v12  ;;  %v838_v10 = vrot.slane %v5659_v9, 4  ;;  %v5681_v29 = vperm.slane %v881_v7, %v5285_v57  ;;  %v623_v7 = vsel %vm375_vm1, %v622_v61, %v5560_v35 }
 0x141   : > { %731 = vrot.lane.b32.xlu2 %v5630_v43, %s5019_s8  ;;  %v907_v56 = vsel %vm375_vm1, %v891_v54, %v906_v63  ;;  %v894_v47 = vrot.slane %v5651_v0, 4  ;;  %v831_v12 = vperm.slane %v825_v44, %v5285_v57  ;;  %v5704_v18 = vperm.slane %v623_v7, %v5353_v45 }
 0x142   : > { %v5644_v32 = vpop.permute.xlu0 %1221  ;;  %v5687_v55 = vperm.slane %v907_v56, %v5353_v45  ;;  %v904_v14 = vrot.slane %v891_v54, 4 }
 0x143   : > { %v5653_v11 = vpop.permute.xlu2 %1225  ;;  %v5655_v52 = vpop.permute.xlu1 %1223  ;;  %v895_v4 = vsel %vm375_vm1, %v5681_v29, %v894_v47  ;;  %v839_v5 = vsel %vm375_vm1, %v831_v12, %v838_v10  ;;  %v679_v47 = vsel %vm375_vm1, %v678_v50, %v661_v31  ;;  %v646_v1 = vrot.slane %v5704_v18, 4 }
 0x144   : > { %937 = vrot.lane.b32.xlu1 %v5647_v21, %s5020_s17  ;;  %v5697_v44 = vperm.slane %v895_v4, %v5353_v45  ;;  %v5700_v56 = vperm.slane %v839_v5, %v5353_v45  ;;  %v651_v4 = vsel %vm375_vm1, 0.0, %v650_v13  ;;  %v5718_v5 = vperm.slane %v679_v47, %v5353_v45 }
 0x145   : > { %v905_v54 = vsel %vm375_vm1, %v904_v14, %v879_v60  ;;  %v647_v50 = vsel %vm375_vm1, 0.0, %v646_v1  ;;  %v652_v14 = vrot.slane %v5630_v43, 4  ;;  %v708_v43 = vrot.slane %v5626_v2, 4 }
 0x146   : > { %v5723_v31 = vperm.slane %v905_v54, %v5353_v45  ;;  %v702_v7 = vrot.slane %v5718_v5, 4  ;;  %v648_v54 = vrot.slane %v5586_v59, 4 }
 0x147   : > { %v709_v2 = vsel %vm375_vm1, 0.0, %v708_v43  ;;  %v862_v43 = vrot.slane %v5700_v56, 4 }
 0x148   : > { %945 = vrot.lane.b32.xlu0 %v5668_v8, %s5019_s8  ;;  %v703_v60 = vsel %vm375_vm1, 0.0, %v702_v7  ;;  %v653_v7 = vsel %vm375_vm1, 0.0, %v652_v14 }
 0x149   : > { %743 = vrot.lane.b32.xlu2 %v5672_v51, %s5018_s29 }
 0x14a   : > { %v493_v16 = vpop.permute.xlu0 %492 }
 0x14b   : > { %v509_v25 = vpop.permute.xlu1 %508  ;;  %v501_v63 = vpop.permute.xlu2 %500 }
 0x14c   : > { %973 = vrot.lane.b32.xlu1 %v5687_v55, %s5019_s8 }
 0x150   : > { %957 = vrot.lane.b32.xlu0 %v5697_v44, %s5018_s29 }
 0x151   : > { %929 = vrot.lane.b32.xlu2 %v5700_v56, %s5018_s29  ;;  %v866_v56 = vrot.slane %v5668_v8, 4 }
 0x152   : > { %v5711_v35 = vpop.permute.xlu0 %528 }
 0x153   : > { %v521_v61 = vpop.permute.xlu1 %520  ;;  %v5713_v10 = vpop.permute.xlu2 %536 }
 0x154   : > { %727 = vrot.lane.b32.xlu1 %v651_v4, %s5021_s11  ;;  %v836_v4 = vrot.slane %v831_v12, 4 }
 0x158   : > { %711 = vrot.lane.b32.xlu0 %v647_v50, %s5023_s19 }
 0x159   : > { %965 = vrot.lane.b32.xlu2 %v5723_v31, %s5020_s17 }
 0x15a   : > { %v505_v13 = vpop.permute.xlu0 %504 }
 0x15b   : > { %v497_v47 = vpop.permute.xlu1 %496  ;;  %v489_v20 = vpop.permute.xlu2 %488 }
 0x15c   : > { %v544_v1 = vsel %vm543_vm6, %v5477_v37, %v489_v20  ;;  %739 = vrot.lane.b32.xlu1 %v703_v60, %s5023_s19  ;;  %v649_v20 = vsel %vm375_vm1, 0.0, %v648_v54  ;;  %v837_v37 = vsel %vm375_vm1, %v836_v4, %v5659_v9  ;;  %v706_v9 = vrot.slane %v5612_v6, 4 }
 0x15d   : > { %v546_v50 = vsel %vm545_vm7, %v544_v1, %v493_v16 }
 0x15e   : > { %v548_v17 = vsel %vm547_vm8, %v546_v50, %v497_v47  ;;  %v707_v4 = vsel %vm375_vm1, 0.0, %v706_v9 }
 0x15f   : > { %v550_v23 = vsel %vm549_vm9, %v548_v17, %v501_v63 }
 0x160   : > { %v552_v12 = vsel %vm551_vm10, %v550_v23, %v505_v13  ;;  %735 = vrot.lane.b32.xlu0 %v653_v7, %s5024_s15  ;;  %v704_v23 = vrot.slane %v5672_v51, 4  ;;  %v5751_v13 = vperm.slane %v837_v37, %v5353_v45  ;;  %v892_v51 = vrot.slane %v5681_v29, 4 }
 0x161   : > { %719 = vrot.lane.b32.xlu2 %v649_v20, %s5022_s18  ;;  %v554_v63 = vsel %vm553_vm11, %v552_v12, %v509_v25 }
 0x162   : > { %v517_v59 = vpop.permute.xlu0 %516  ;;  %v705_v60 = vsel %vm375_vm1, 0.0, %v704_v23  ;;  %v860_v14 = vrot.slane %v5751_v13, 4  ;;  %v893_v20 = vsel %vm375_vm1, %v892_v51, %v5651_v0 }
 0x163   : > { %v533_v16 = vpop.permute.xlu1 %532  ;;  %v513_v17 = vpop.permute.xlu2 %512  ;;  %v557_v25 = vsel %vm543_vm6, %v5416_v30, %v517_v59  ;;  %v864_v30 = vrot.slane %v5647_v21, 4  ;;  %v863_v59 = vsel %vm375_vm1, 0.0, %v862_v43  ;;  %v5783_v21 = vperm.slane %v893_v20, %v5353_v45 }
 0x164   : > { %v556_v47 = vsel %vm555_vm12, %v554_v63, %v513_v17  ;;  %763 = vrot.lane.b32.xlu1 %v709_v2, %s5024_s15  ;;  %v558_v6 = vsel %vm545_vm7, %v557_v25, %v521_v61  ;;  %v861_v7 = vsel %vm375_vm1, 0.0, %v860_v14  ;;  %v920_v2 = vrot.slane %v5723_v31, 4 }
 0x165   : > { %564 = vst [vmem:[#allocation4 + $0x30] sm:$0xf] %v556_v47  ;;  %v865_v63 = vsel %vm375_vm1, 0.0, %v864_v30  ;;  %v916_v8 = vrot.slane %v5783_v21, 4  ;;  %v918_v47 = vrot.slane %v5697_v44, 4  ;;  %v922_v31 = vrot.slane %v5687_v55, 4 }
 0x166   : > { %v921_v23 = vsel %vm375_vm1, 0.0, %v920_v2 }
 0x167   : > { %v917_v9 = vsel %vm375_vm1, 0.0, %v916_v8  ;;  %v923_v51 = vsel %vm375_vm1, 0.0, %v922_v31 }
 0x168   : > { %747 = vrot.lane.b32.xlu0 %v705_v60, %s5022_s18 }
 0x169   : > { %755 = vrot.lane.b32.xlu2 %v707_v4, %s5021_s11  ;;  %v919_v4 = vsel %vm375_vm1, 0.0, %v918_v47 }
 0x16a   : > { %v541_v1 = vpop.permute.xlu0 %540 }
 0x16b   : > { %v1147_v54 = vpop.permute.xlu1 %1146  ;;  %v525_v50 = vpop.permute.xlu2 %524 }
 0x16c   : > { %v559_v12 = vsel %vm547_vm8, %v558_v6, %v525_v50  ;;  %925 = vrot.lane.b32.xlu1 %v861_v7, %s5023_s19 }
 0x16d   : > { %v560_v29 = vsel %vm549_vm9, %v559_v12, %v5711_v35 }
 0x16e   : > { %v561_v37 = vsel %vm551_vm10, %v560_v29, %v533_v16 }
 0x16f   : > { %v562_v61 = vsel %vm553_vm11, %v561_v37, %v5713_v10  ;;  %v867_v10 = vsel %vm375_vm1, 0.0, %v866_v56 }
 0x170   : > { %v563_v17 = vsel %vm555_vm12, %v562_v61, %v541_v1  ;;  %933 = vrot.lane.b32.xlu0 %v863_v59, %s5022_s18 }
 0x171   : > { %565 = vst [vmem:[#allocation4] sm:$0xf] %v563_v17  ;;  %941 = vrot.lane.b32.xlu2 %v865_v63, %s5021_s11  ;;  %v1257_v17 = vrot.slane %v5655_v52, 4 }
 0x172   : > { %v1155_v0 = vpop.permute.xlu0 %1154 }
 0x173   : > { %v1183_v35 = vpop.permute.xlu1 %1182  ;;  %v1163_v16 = vpop.permute.xlu2 %1162 }
 0x174   : > { %949 = vrot.lane.b32.xlu1 %v867_v10, %s5024_s15 }
 0x178   : > { %969 = vrot.lane.b32.xlu0 %v921_v23, %s5021_s11 }
 0x179   : > { %953 = vrot.lane.b32.xlu2 %v917_v9, %s5023_s19 }
 0x17a   : > { %v1191_v60 = vpop.permute.xlu0 %1190 }
 0x17b   : > { %v1159_v14 = vpop.permute.xlu1 %1158  ;;  %v1175_v25 = vpop.permute.xlu2 %1174 }
 0x17c   : > { %961 = vrot.lane.b32.xlu1 %v919_v4, %s5022_s18  ;;  %v1245_v4 = vrot.slane %v5615_v28, 4 }
 0x181   : > { %977 = vrot.lane.b32.xlu2 %v923_v51, %s5024_s15 }
 0x182   : > { %v1143_v44 = vpop.permute.xlu0 %1142 }
 0x183   : > { %v1171_v1 = vpop.permute.xlu1 %1170  ;;  %v1151_v50 = vpop.permute.xlu2 %1150  ;;  %v1197_v6 = vsel %vm543_vm6, %v5509_v62, %v1143_v44 }
 0x184   : > { %v1198_v7 = vsel %vm545_vm7, %v1197_v6, %v1147_v54  ;;  %v1204_v62 = vsel %vm543_vm6, %v5515_v33, %v1171_v1 }
 0x185   : > { %v1199_v43 = vsel %vm547_vm8, %v1198_v7, %v1151_v50  ;;  %v1205_v54 = vsel %vm545_vm7, %v1204_v62, %v1175_v25 }
 0x186   : > { %v1200_v12 = vsel %vm549_vm9, %v1199_v43, %v1155_v0 }
 0x187   : > { %v1201_v30 = vsel %vm551_vm10, %v1200_v12, %v1159_v14 }
 0x188   : > { %v1202_v55 = vsel %vm553_vm11, %v1201_v30, %v1163_v16 }
 0x18a   : > { %v1167_v29 = vpop.permute.xlu0 %1166 }
 0x18b   : > { %v1187_v20 = vpop.permute.xlu2 %1186  ;;  %v1203_v37 = vsel %vm555_vm12, %v1202_v55, %v1167_v29  ;;  %v1230_v61 = vpop.permute.xlu1 %1229 }
 0x18c   : > { %v1213_v59 = vrot.slane %v1203_v37, 4  ;;  %v1299_v51 = vrot.slane %v1230_v61, 4 }
 0x18e   : > { %1217 = vst [vmem:[#allocation4 + $0x18] sm:$0xf0] %v1213_v59  ;;  %v1300_v30 = vsel %vm375_vm1, %v1299_v51, %v5644_v32  ;;  %v1313_v59 = vrot.slane %v5653_v11, 4 }
 0x192   : > { %v1179_v56 = vpop.permute.xlu0 %1178 }
 0x193   : > { %v1232_v63 = vpop.permute.xlu2 %1231  ;;  %v1206_v0 = vsel %vm547_vm8, %v1205_v54, %v1179_v56  ;;  %v1195_v23 = vpop.permute.xlu1 %1194  ;;  %v1306_v56 = vperm.slane %v1300_v30, %v5285_v57 }
 0x194   : > { %v1255_v10 = vrot.slane %v1232_v63, 4  ;;  %v1207_v16 = vsel %vm549_vm9, %v1206_v0, %v1183_v35  ;;  %v1258_v2 = vsel %vm375_vm1, %v1232_v63, %v1257_v17 }
 0x195   : > { %v1208_v8 = vsel %vm551_vm10, %v1207_v16, %v1187_v20  ;;  %v1266_v14 = vperm.slane %v1258_v2, %v5285_v57 }
 0x196   : > { %v1209_v47 = vsel %vm553_vm11, %v1208_v8, %v1191_v60  ;;  %v1256_v33 = vsel %vm375_vm1, %v1255_v10, %v5655_v52 }
 0x197   : > { %v1210_v9 = vsel %vm555_vm12, %v1209_v47, %v1195_v23  ;;  %v1262_v31 = vperm.slane %v1256_v33, %v5285_v57  ;;  %v1279_v50 = vrot.slane %v1266_v14, 4 }
 0x198   : > { %v1214_v25 = vrot.slane %v1210_v9, 4 }
 0x199   : > { %v1267_v6 = vrot.slane %v1262_v31, 4 }
 0x19a   : > { %1218 = vst [vmem:[#allocation4 + $0x10] sm:$0xf0] %v1214_v25  ;;  %v1228_v35 = vpop.permute.xlu0 %1227  ;;  %v1325_v25 = vrot.slane %v1306_v56, 4 }
 0x19b   : > { %v1243_v44 = vrot.slane %v1228_v35, 4  ;;  %v1246_v1 = vsel %vm375_vm1, %v1228_v35, %v1245_v4  ;;  %v5842_v17 = vpop.permute.xlu2 %731 }
 0x19c   : > { %v1254_v60 = vperm.slane %v1246_v1, %v5285_v57 }
 0x19d   : > { %v1244_v52 = vsel %vm375_vm1, %v1243_v44, %v5615_v28  ;;  %v1301_v28 = vrot.slane %v5644_v32, 4 }
 0x19e   : > { %v1250_v7 = vperm.slane %v1244_v52, %v5285_v57  ;;  %v1281_v43 = vrot.slane %v1254_v60, 4  ;;  %v1280_v12 = vsel %vm375_vm1, %v1279_v50, %v1254_v60 }
 0x19f   : > { %v1286_v55 = vperm.slane %v1280_v12, %v5353_v45  ;;  %v1302_v10 = vsel %vm375_vm1, %v1230_v61, %v1301_v28 }
 0x1a0   : > { %v1282_v29 = vsel %vm375_vm1, %v1266_v14, %v1281_v43  ;;  %v1269_v20 = vrot.slane %v1250_v7, 4  ;;  %v1268_v37 = vsel %vm375_vm1, %v1267_v6, %v1250_v7  ;;  %v1310_v33 = vperm.slane %v1302_v10, %v5285_v57 }
 0x1a1   : > { %1368 = vrot.lane.b32.xlu1 %v1286_v55, %s5020_s17  ;;  %v1290_v62 = vperm.slane %v1282_v29, %v5353_v45  ;;  %v5839_v54 = vperm.slane %v1268_v37, %v5353_v45  ;;  %v1295_v43 = vrot.slane %v1286_v55, 4 }
 0x1a2   : > { %v1234_v63 = vpop.permute.xlu0 %1233  ;;  %v1270_v0 = vsel %vm375_vm1, %v1262_v31, %v1269_v20 }
 0x1a3   : > { %v1311_v16 = vrot.slane %v1234_v63, 4  ;;  %v1314_v2 = vsel %vm375_vm1, %v1234_v63, %v1313_v59  ;;  %1376 = vrot.lane.b32.xlu0 %v1290_v62, %s5019_s8  ;;  %v1278_v32 = vperm.slane %v1270_v0, %v5353_v45  ;;  %v1291_v23 = vrot.slane %v5839_v54, 4  ;;  %v5863_v1 = vpop.permute.xlu2 %743 }
 0x1a4   : > { %v1322_v8 = vperm.slane %v1314_v2, %v5285_v57  ;;  %v1297_v50 = vrot.slane %v1290_v62, 4  ;;  %v1296_v20 = vsel %vm375_vm1, 0.0, %v1295_v43  ;;  %v1337_v63 = vrot.slane %v1310_v33, 4 }
 0x1a5   : > { %v1312_v47 = vsel %vm375_vm1, %v1311_v16, %v5653_v11  ;;  %1360 = vrot.lane.b32.xlu2 %v1278_v32, %s5018_s29  ;;  %v1292_v4 = vsel %vm375_vm1, 0.0, %v1291_v23  ;;  %v1293_v6 = vrot.slane %v1278_v32, 4 }
 0x1a6   : > { %v1318_v61 = vperm.slane %v1312_v47, %v5285_v57  ;;  %v1335_v9 = vrot.slane %v1322_v8, 4  ;;  %v716_v14 = vpop.permute.xlu1 %715  ;;  %v1298_v7 = vsel %vm375_vm1, 0.0, %v1297_v50  ;;  %v1338_v10 = vsel %vm375_vm1, %v1322_v8, %v1337_v63 }
 0x1a7   : > { %v1294_v29 = vsel %vm375_vm1, 0.0, %v1293_v6  ;;  %v1346_v23 = vperm.slane %v1338_v10, %v5353_v45 }
 0x1a8   : > { %v1326_v31 = vsel %vm375_vm1, %v1318_v61, %v1325_v25  ;;  %v1336_v35 = vsel %vm375_vm1, %v1335_v9, %v1310_v33  ;;  %v1323_v60 = vrot.slane %v1318_v61, 4 }
 0x1a9   : > { %1356 = vrot.lane.b32.xlu1 %v1292_v4, %s5023_s19  ;;  %v1334_v51 = vperm.slane %v1326_v31, %v5353_v45  ;;  %v1342_v44 = vperm.slane %v1336_v35, %v5353_v45  ;;  %v1353_v61 = vrot.slane %v1346_v23, 4 }
 0x1aa   : > { %v724_v11 = vpop.permute.xlu0 %723  ;;  %v1324_v12 = vsel %vm375_vm1, %v1323_v60, %v1306_v56 }
 0x1ab   : > { %1388 = vrot.lane.b32.xlu0 %v1334_v51, %s5018_s29  ;;  %v1349_v37 = vrot.slane %v1334_v51, 4  ;;  %v5875_v59 = vperm.slane %v1324_v12, %v5353_v45  ;;  %v930_v28 = vpop.permute.xlu2 %929  ;;  %v1351_v55 = vrot.slane %v1342_v44, 4  ;;  %v1354_v8 = vsel %vm375_vm1, 0.0, %v1353_v61 }
 0x1ad   : > { %1396 = vrot.lane.b32.xlu2 %v1342_v44, %s5020_s17  ;;  %v1350_v0 = vsel %vm375_vm1, 0.0, %v1349_v37  ;;  %v1347_v56 = vrot.slane %v5875_v59, 4  ;;  %v1352_v2 = vsel %vm375_vm1, 0.0, %v1351_v55 }
 0x1ae   : > { %v5866_v52 = vpop.permute.xlu1 %751 }
 0x1af   : > { %v1348_v32 = vsel %vm375_vm1, 0.0, %v1347_v56 }
 0x1b1   : > { %1380 = vrot.lane.b32.xlu1 %v1298_v7, %s5024_s15 }
 0x1b2   : > { %v760_v30 = vpop.permute.xlu0 %759 }
 0x1b3   : > { %1364 = vrot.lane.b32.xlu0 %v1294_v29, %s5022_s18  ;;  %v966_v33 = vpop.permute.xlu2 %965 }
 0x1b5   : > { %1372 = vrot.lane.b32.xlu2 %v1296_v20, %s5021_s11 }
 0x1b6   : > { %v938_v62 = vpop.permute.xlu1 %937 }
 0x1b9   : > { %1392 = vrot.lane.b32.xlu1 %v1350_v0, %s5022_s18 }
 0x1ba   : > { %v946_v16 = vpop.permute.xlu0 %945 }
 0x1bb   : > { %1400 = vrot.lane.b32.xlu0 %v1352_v2, %s5021_s11  ;;  %v720_v4 = vpop.permute.xlu2 %719 }
 0x1bd   : > { %1384 = vrot.lane.b32.xlu2 %v1348_v32, %s5023_s19 }
 0x1be   : > { %v5887_v47 = vpop.permute.xlu1 %973 }
 0x1c1   : > { %1404 = vrot.lane.b32.xlu1 %v1346_v23, %s5019_s8 }
 0x1c2   : > { %v958_v9 = vpop.permute.xlu0 %957 }
 0x1c3   : > { %1427 = vrot.lane.b32.xlu0 %v5395_v26, %s5015_s23 }
 0x1c5   : > { %1408 = vrot.lane.b32.xlu2 %v1354_v8, %s5024_s15 }
 0x1c6   : > { %v728_v25 = vpop.permute.xlu1 %727 }
 0x1c9   : > { %1429 = vrot.lane.b32.xlu1 %v5323_v22, %s5015_s23 }
 0x1ca   : > { %v712_v31 = vpop.permute.xlu0 %711 }
 0x1cb   : > { %v766_v35 = vsel %vm543_vm6, %v5704_v18, %v712_v31  ;;  %1433 = vrot.lane.b32.xlu0 %v5421_v49, %s5015_s23 }
 0x1cc   : > { %v767_v51 = vsel %vm545_vm7, %v766_v35, %v716_v14  ;;  %v756_v14 = vpop.permute.xlu2 %755 }
 0x1cd   : > { %v768_v26 = vsel %vm547_vm8, %v767_v51, %v720_v4  ;;  %1431 = vrot.lane.b32.xlu2 %v5334_v27, %s5015_s23 }
 0x1ce   : > { %v740_v44 = vpop.permute.xlu1 %739  ;;  %v769_v50 = vsel %vm549_vm9, %v768_v26, %v724_v11 }
 0x1cf   : > { %v770_v22 = vsel %vm551_vm10, %v769_v50, %v728_v25  ;;  %v773_v11 = vsel %vm543_vm6, %v5718_v5, %v740_v44 }
 0x1d0   : > { %v771_v18 = vsel %vm553_vm11, %v770_v22, %v5842_v17 }
 0x1d1   : > { %1435 = vrot.lane.b32.xlu1 %v5412_v42, %s5015_s23  ;;  %v774_v42 = vsel %vm545_vm7, %v773_v11, %v5863_v1 }
 0x1d2   : > { %v736_v60 = vpop.permute.xlu0 %735 }
 0x1d3   : > { %v772_v49 = vsel %vm555_vm12, %v771_v18, %v736_v60  ;;  %1439 = vrot.lane.b32.xlu0 %v5409_v41, %s5015_s23 }
 0x1d4   : > { %v782_v6 = vrot.slane %v772_v49, 4 }
 0x1d5   : > { %1437 = vrot.lane.b32.xlu2 %v5464_v34, %s5015_s23  ;;  %v942_v34 = vpop.permute.xlu2 %941 }
 0x1d6   : > { %786 = vst [vmem:[#allocation4 + $0x30] sm:$0xf0] %v782_v6  ;;  %v764_v27 = vpop.permute.xlu1 %763 }
 0x1d9   : > { %1441 = vrot.lane.b32.xlu1 %v5440_v3, %s5015_s23 }
 0x1da   : > { %v748_v17 = vpop.permute.xlu0 %747 }
 0x1db   : > { %v775_v7 = vsel %vm547_vm8, %v774_v42, %v748_v17 }
 0x1dc   : > { %v776_v41 = vsel %vm549_vm9, %v775_v7, %v5866_v52 }
 0x1dd   : > { %v777_v43 = vsel %vm551_vm10, %v776_v41, %v756_v14  ;;  %v954_v10 = vpop.permute.xlu2 %953 }
 0x1de   : > { %v778_v12 = vsel %vm553_vm11, %v777_v43, %v760_v30  ;;  %v926_v29 = vpop.permute.xlu1 %925 }
 0x1df   : > { %v779_v5 = vsel %vm555_vm12, %v778_v12, %v764_v27  ;;  %v980_v3 = vsel %vm543_vm6, %v5751_v13, %v926_v29  ;;  %v987_v13 = vsel %vm543_vm6, %v5783_v21, %v954_v10 }
 0x1e0   : > { %v783_v20 = vrot.slane %v779_v5, 4  ;;  %v981_v1 = vsel %vm545_vm7, %v980_v3, %v930_v28  ;;  %v988_v28 = vsel %vm545_vm7, %v987_v13, %v958_v9 }
 0x1e2   : > { %787 = vst [vmem:[#allocation4] sm:$0xf0] %v783_v20  ;;  %v934_v37 = vpop.permute.xlu0 %933 }
 0x1e3   : > { %v982_v55 = vsel %vm547_vm8, %v981_v1, %v934_v37 }
 0x1e4   : > { %v983_v52 = vsel %vm549_vm9, %v982_v55, %v938_v62 }
 0x1e5   : > { %v984_v63 = vsel %vm551_vm10, %v983_v52, %v942_v34  ;;  %v978_v8 = vpop.permute.xlu2 %977 }
 0x1e6   : > { %v950_v0 = vpop.permute.xlu1 %949  ;;  %v985_v30 = vsel %vm553_vm11, %v984_v63, %v946_v16 }
 0x1e7   : > { %v986_v56 = vsel %vm555_vm12, %v985_v30, %v950_v0 }
 0x1e8   : > { %994 = vst [vmem:[#allocation4 + $0x18] sm:$0xf] %v986_v56 }
 0x1ea   : > { %v970_v23 = vpop.permute.xlu0 %969 }
 0x1ee   : > { %v962_v2 = vpop.permute.xlu1 %961 }
 0x1ef   : > { %v989_v32 = vsel %vm547_vm8, %v988_v28, %v962_v2 }
 0x1f0   : > { %v990_v62 = vsel %vm549_vm9, %v989_v32, %v966_v33 }
 0x1f1   : > { %v991_v61 = vsel %vm551_vm10, %v990_v62, %v970_v23 }
 0x1f2   : > { %v992_v16 = vsel %vm553_vm11, %v991_v61, %v5887_v47 }
 0x1f3   : > { %v993_v25 = vsel %vm555_vm12, %v992_v16, %v978_v8 }
 0x1f4   : > { %995 = vst [vmem:[#allocation4 + $0x10] sm:$0xf] %v993_v25 }
 0x1ff   : > { %v1361_v4 = vpop.permute.xlu2 %1360 }
 0x207   : > { %v1397_v21 = vpop.permute.xlu2 %1396 }
 0x20f   : > { %v1373_v26 = vpop.permute.xlu2 %1372 }
 0x213   : > { %v1369_v31 = vpop.permute.xlu1 %1368 }
 0x215   : > { %v1377_v35 = vpop.permute.xlu0 %1376 }
 0x217   : > { %v1385_v60 = vpop.permute.xlu2 %1384 }
 0x218   : > { %v1418_v27 = vsel %vm543_vm6, %v5875_v59, %v1385_v60 }
 0x21b   : > { %v1357_v51 = vpop.permute.xlu1 %1356 }
 0x21c   : > { %v1411_v44 = vsel %vm543_vm6, %v5839_v54, %v1357_v51 }
 0x21d   : > { %v1389_v9 = vpop.permute.xlu0 %1388  ;;  %v1412_v50 = vsel %vm545_vm7, %v1411_v44, %v1361_v4 }
 0x21e   : > { %v1419_v11 = vsel %vm545_vm7, %v1418_v27, %v1389_v9 }
 0x21f   : > { %v1409_v34 = vpop.permute.xlu2 %1408 }
 0x223   : > { %v1381_v33 = vpop.permute.xlu1 %1380 }
 0x225   : > { %v1365_v22 = vpop.permute.xlu0 %1364 }
 0x226   : > { %v1413_v18 = vsel %vm547_vm8, %v1412_v50, %v1365_v22 }
 0x227   : > { %v1414_v47 = vsel %vm549_vm9, %v1413_v18, %v1369_v31  ;;  %v1432_v20 = vpop.permute.xlu2 %1431 }
 0x228   : > { %v1415_v49 = vsel %vm551_vm10, %v1414_v47, %v1373_v26  ;;  %v1465_v37 = vrot.slane %v1432_v20, 4 }
 0x229   : > { %v1416_v14 = vsel %vm553_vm11, %v1415_v49, %v1377_v35 }
 0x22a   : > { %v1417_v6 = vsel %vm555_vm12, %v1416_v14, %v1381_v33 }
 0x22b   : > { %1425 = vst [vmem:[#allocation4 + $0x48] sm:$0xf] %v1417_v6  ;;  %v1393_v54 = vpop.permute.xlu1 %1392 }
 0x22c   : > { %v1420_v42 = vsel %vm547_vm8, %v1419_v11, %v1393_v54 }
 0x22d   : > { %v1401_v17 = vpop.permute.xlu0 %1400  ;;  %v1421_v7 = vsel %vm549_vm9, %v1420_v42, %v1397_v21 }
 0x22e   : > { %v1422_v41 = vsel %vm551_vm10, %v1421_v7, %v1401_v17 }
 0x22f   : > { %v1438_v32 = vpop.permute.xlu2 %1437 }
 0x230   : > { %v1507_v21 = vrot.slane %v1438_v32, 4 }
 0x233   : > { %v1405_v43 = vpop.permute.xlu1 %1404 }
 0x234   : > { %v1423_v12 = vsel %vm553_vm11, %v1422_v41, %v1405_v43 }
 0x235   : > { %v1424_v29 = vsel %vm555_vm12, %v1423_v12, %v1409_v34  ;;  %v1428_v5 = vpop.permute.xlu0 %1427 }
 0x236   : > { %1426 = vst [vmem:[#allocation4 + $0x28] sm:$0xf] %v1424_v29  ;;  %v1453_v55 = vrot.slane %v1428_v5, 4  ;;  %v1682_v29 = vrot.slane %v5276_v53, 4 }
 0x23b   : > { %v1430_v59 = vpop.permute.xlu1 %1429 }
 0x23c   : > { %v1508_v44 = vsel %vm375_vm1, %v1507_v21, %v1430_v59  ;;  %v1509_v7 = vrot.slane %v1430_v59, 4  ;;  %v1684_v21 = vrot.slane %v5350_v38, 4 }
 0x23d   : > { %v1434_v3 = vpop.permute.xlu0 %1433  ;;  %v1514_v6 = vperm.slane %v1508_v44, %v5285_v57 }
 0x23e   : > { %v1521_v47 = vrot.slane %v1434_v3, 4 }
 0x243   : > { %v1436_v1 = vpop.permute.xlu1 %1435 }
 0x244   : > { %v1451_v52 = vrot.slane %v1436_v1, 4  ;;  %v1454_v30 = vsel %vm375_vm1, %v1436_v1, %v1453_v55  ;;  %v1533_v1 = vrot.slane %v1514_v6, 4 }
 0x245   : > { %v1440_v63 = vpop.permute.xlu0 %1439  ;;  %v1462_v23 = vperm.slane %v1454_v30, %v5285_v57 }
 0x246   : > { %v1452_v0 = vsel %vm375_vm1, %v1451_v52, %v1428_v5  ;;  %v1463_v56 = vrot.slane %v1440_v63, 4  ;;  %v1466_v10 = vsel %vm375_vm1, %v1440_v63, %v1465_v37  ;;  %v1683_v37 = vsel %vm375_vm1, %v1682_v29, %v5350_v38 }
 0x247   : > { %v1458_v13 = vperm.slane %v1452_v0, %v5285_v57  ;;  %v1474_v2 = vperm.slane %v1466_v10, %v5285_v57  ;;  %v1489_v60 = vrot.slane %v1462_v23, 4  ;;  %v1689_v30 = vperm.slane %v1683_v37, %v5285_v57 }
 0x248   : > { %v1464_v28 = vsel %vm375_vm1, %v1463_v56, %v1432_v20  ;;  %v1670_v10 = vrot.slane %v5242_v39, 4 }
 0x249   : > { %v1470_v62 = vperm.slane %v1464_v28, %v5285_v57  ;;  %v1487_v61 = vrot.slane %v1474_v2, 4  ;;  %v1477_v8 = vrot.slane %v1458_v13, 4  ;;  %v1490_v41 = vsel %vm375_vm1, %v1474_v2, %v1489_v60 }
 0x24a   : > { %v1498_v5 = vperm.slane %v1490_v41, %v5353_v45 }
 0x24b   : > { %v1475_v16 = vrot.slane %v1470_v62, 4  ;;  %v1442_v25 = vpop.permute.xlu1 %1441  ;;  %v1478_v4 = vsel %vm375_vm1, %v1470_v62, %v1477_v8  ;;  %v1488_v31 = vsel %vm375_vm1, %v1487_v61, %v1462_v23  ;;  %v1694_v23 = vrot.slane %v1689_v30, 4 }
 0x24c   : > { %v1519_v35 = vrot.slane %v1442_v25, 4  ;;  %v1486_v51 = vperm.slane %v1478_v4, %v5353_v45  ;;  %v1494_v26 = vperm.slane %v1488_v31, %v5353_v45  ;;  %v1522_v11 = vsel %vm375_vm1, %v1442_v25, %v1521_v47 }
 0x24d   : > { %v1476_v9 = vsel %vm375_vm1, %v1475_v16, %v1458_v13  ;;  %v1530_v43 = vperm.slane %v1522_v11, %v5285_v57  ;;  %v1505_v56 = vrot.slane %v1498_v5, 4 }
 0x24e   : > { %v1520_v33 = vsel %vm375_vm1, %v1519_v35, %v1434_v3  ;;  %1568 = vrot.lane.b32.xlu0 %v1486_v51, %s5018_s29  ;;  %v1501_v50 = vrot.slane %v1486_v51, 4  ;;  %v5977_v22 = vperm.slane %v1476_v9, %v5353_v45  ;;  %v1503_v54 = vrot.slane %v1494_v26, 4 }
 0x24f   : > { %v1526_v18 = vperm.slane %v1520_v33, %v5285_v57  ;;  %v1510_v3 = vsel %vm375_vm1, %v1438_v32, %v1509_v7  ;;  %v1543_v20 = vrot.slane %v1530_v43, 4  ;;  %v1671_v32 = vsel %vm375_vm1, %v1670_v10, %v5347_v36 }
 0x250   : > { %v1502_v49 = vsel %vm375_vm1, 0.0, %v1501_v50  ;;  %v1499_v14 = vrot.slane %v5977_v22, 4  ;;  %v1504_v34 = vsel %vm375_vm1, 0.0, %v1503_v54  ;;  %v1518_v55 = vperm.slane %v1510_v3, %v5285_v57 }
 0x251   : > { %v1531_v27 = vrot.slane %v1526_v18, 4  ;;  %1572 = vrot.lane.b32.xlu1 %v1502_v49, %s5022_s18  ;;  %v1534_v52 = vsel %vm375_vm1, %v1526_v18, %v1533_v1  ;;  %v1506_v62 = vsel %vm375_vm1, 0.0, %v1505_v56  ;;  %v1677_v8 = vperm.slane %v1671_v32, %v5285_v57 }
 0x252   : > { %v1500_v42 = vsel %vm375_vm1, 0.0, %v1499_v14  ;;  %v1544_v0 = vsel %vm375_vm1, %v1543_v20, %v1518_v55  ;;  %v1542_v13 = vperm.slane %v1534_v52, %v5353_v45  ;;  %v1545_v2 = vrot.slane %v1518_v55, 4 }
 0x253   : > { %1564 = vrot.lane.b32.xlu2 %v1500_v42, %s5023_s19  ;;  %v1532_v17 = vsel %vm375_vm1, %v1531_v27, %v1514_v6  ;;  %v1550_v28 = vperm.slane %v1544_v0, %v5353_v45  ;;  %v1695_v4 = vsel %vm375_vm1, %v1694_v23, %v1677_v8  ;;  %v1696_v9 = vrot.slane %v1677_v8, 4 }
 0x254   : > { %v5992_v12 = vperm.slane %v1532_v17, %v5353_v45  ;;  %v1546_v61 = vsel %vm375_vm1, %v1530_v43, %v1545_v2  ;;  %v1557_v31 = vrot.slane %v1542_v13, 4  ;;  %v6025_v51 = vperm.slane %v1695_v4, %v5353_v45 }
 0x255   : > { %v1559_v16 = vrot.slane %v1550_v28, 4  ;;  %v1554_v25 = vperm.slane %v1546_v61, %v5353_v45  ;;  %v1685_v33 = vsel %vm375_vm1, %v5276_v53, %v1684_v21  ;;  %v1697_v18 = vsel %vm375_vm1, %v1689_v30, %v1696_v9 }
 0x256   : > { %1580 = vrot.lane.b32.xlu0 %v1504_v34, %s5021_s11  ;;  %v1555_v59 = vrot.slane %v5992_v12, 4  ;;  %v1558_v50 = vsel %vm375_vm1, 0.0, %v1557_v31  ;;  %v1718_v47 = vrot.slane %v6025_v51, 4  ;;  %v1693_v49 = vperm.slane %v1685_v33, %v5285_v57 }
 0x257   : > { %v1560_v35 = vsel %vm375_vm1, 0.0, %v1559_v16  ;;  %v1561_v44 = vrot.slane %v1554_v25, 4  ;;  %v1705_v6 = vperm.slane %v1697_v18, %v5353_v45  ;;  %v1738_v42 = vrot.slane %v5367_v58, 4 }
 0x258   : > { %v1556_v63 = vsel %vm375_vm1, 0.0, %v1555_v59  ;;  %v1719_v54 = vsel %vm375_vm1, 0.0, %v1718_v47  ;;  %v1706_v11 = vrot.slane %v1693_v49, 4  ;;  %v1726_v7 = vrot.slane %v5245_v40, 4 }
 0x259   : > { %1584 = vrot.lane.b32.xlu1 %v1498_v5, %s5019_s8  ;;  %v1562_v14 = vsel %vm375_vm1, 0.0, %v1561_v44  ;;  %v1720_v17 = vrot.slane %v1705_v6, 4  ;;  %v1739_v29 = vsel %vm375_vm1, %v1738_v42, %v5362_v46  ;;  %v1740_v20 = vrot.slane %v5362_v46, 4 }
 0x25a   : > { %v1727_v34 = vsel %vm375_vm1, %v1726_v7, %v5261_v48  ;;  %v1745_v37 = vperm.slane %v1739_v29, %v5285_v57 }
 0x25b   : > { %1576 = vrot.lane.b32.xlu2 %v1494_v26, %s5020_s17  ;;  %v1672_v26 = vrot.slane %v5347_v36, 4  ;;  %v1721_v5 = vsel %vm375_vm1, 0.0, %v1720_v17  ;;  %v1733_v1 = vperm.slane %v1727_v34, %v5285_v57  ;;  %v1741_v55 = vsel %vm375_vm1, %v5367_v58, %v1740_v20 }
 0x25c   : > { %v1749_v0 = vperm.slane %v1741_v55, %v5285_v57  ;;  %v1750_v56 = vrot.slane %v1745_v37, 4 }
 0x25d   : > { %v1673_v60 = vsel %vm375_vm1, %v5242_v39, %v1672_v26  ;;  %v1752_v30 = vrot.slane %v1733_v1, 4 }
 0x25e   : > { %1592 = vrot.lane.b32.xlu0 %v1556_v63, %s5023_s19  ;;  %v1681_v27 = vperm.slane %v1673_v60, %v5285_v57  ;;  %v1728_v63 = vrot.slane %v5261_v48, 4  ;;  %v1762_v32 = vrot.slane %v1749_v0, 4  ;;  %v1751_v23 = vsel %vm375_vm1, %v1750_v56, %v1733_v1 }
 0x260   : > { %v1708_v41 = vrot.slane %v1681_v27, 4  ;;  %v1707_v43 = vsel %vm375_vm1, %v1706_v11, %v1681_v27  ;;  %v1729_v2 = vsel %vm375_vm1, %v5245_v40, %v1728_v63 }
 0x261   : > { %1596 = vrot.lane.b32.xlu1 %v1542_v13, %s5018_s29  ;;  %v1713_v59 = vperm.slane %v1707_v43, %v5353_v45  ;;  %v1753_v13 = vsel %vm375_vm1, %v1745_v37, %v1752_v30  ;;  %v1737_v8 = vperm.slane %v1729_v2, %v5285_v57 }
 0x262   : > { %v1709_v3 = vsel %vm375_vm1, %v1693_v49, %v1708_v41  ;;  %v1761_v61 = vperm.slane %v1753_v13, %v5353_v45 }
 0x263   : > { %1588 = vrot.lane.b32.xlu2 %v1506_v62, %s5024_s15  ;;  %v1717_v52 = vperm.slane %v1709_v3, %v5353_v45  ;;  %v1763_v4 = vsel %vm375_vm1, %v1762_v32, %v1737_v8  ;;  %v1764_v33 = vrot.slane %v1737_v8, 4 }
 0x264   : > { %v1776_v31 = vrot.slane %v1761_v61, 4  ;;  %v1769_v21 = vperm.slane %v1763_v4, %v5353_v45 }
 0x265   : > { %v1724_v10 = vrot.slane %v1717_v52, 4 }
 0x266   : > { %1604 = vrot.lane.b32.xlu0 %v1550_v28, %s5020_s17  ;;  %v1722_v28 = vrot.slane %v1713_v59, 4  ;;  %v1777_v9 = vsel %vm375_vm1, 0.0, %v1776_v31  ;;  %v1778_v26 = vrot.slane %v1769_v21, 4 }
 0x267   : > { %v1725_v62 = vsel %vm375_vm1, 0.0, %v1724_v10 }
 0x268   : > { %v1723_v16 = vsel %vm375_vm1, 0.0, %v1722_v28  ;;  %v1779_v18 = vsel %vm375_vm1, 0.0, %v1778_v26 }
 0x269   : > { %1608 = vrot.lane.b32.xlu1 %v1560_v35, %s5021_s11 }
 0x26b   : > { %1600 = vrot.lane.b32.xlu2 %v1558_v50, %s5022_s18  ;;  %v1765_v50 = vsel %vm375_vm1, %v1749_v0, %v1764_v33 }
 0x26c   : > { %v1773_v47 = vperm.slane %v1765_v50, %v5353_v45 }
 0x26e   : > { %1616 = vrot.lane.b32.xlu0 %v1562_v14, %s5024_s15  ;;  %v1780_v60 = vrot.slane %v1773_v47, 4 }
 0x270   : > { %v1781_v49 = vsel %vm375_vm1, 0.0, %v1780_v60 }
 0x271   : > { %1783 = vrot.lane.b32.xlu1 %v1719_v54, %s5023_s19 }
 0x273   : > { %1612 = vrot.lane.b32.xlu2 %v1554_v25, %s5019_s8  ;;  %v6077_v25 = vperm.slane %v1751_v23, %v5353_v45 }
 0x275   : > { %v1774_v35 = vrot.slane %v6077_v25, 4 }
 0x276   : > { %1791 = vrot.lane.b32.xlu0 %v1721_v5, %s5022_s18 }
 0x277   : > { %v1775_v44 = vsel %vm375_vm1, 0.0, %v1774_v35 }
 0x279   : > { %1795 = vrot.lane.b32.xlu1 %v1713_v59, %s5020_s17 }
 0x27b   : > { %1787 = vrot.lane.b32.xlu2 %v1705_v6, %s5018_s29 }
 0x27e   : > { %1803 = vrot.lane.b32.xlu0 %v1717_v52, %s5019_s8 }
 0x281   : > { %1807 = vrot.lane.b32.xlu1 %v1725_v62, %s5024_s15 }
 0x283   : > { %1799 = vrot.lane.b32.xlu2 %v1723_v16, %s5021_s11 }
 0x286   : > { %1815 = vrot.lane.b32.xlu0 %v1761_v61, %s5018_s29 }
 0x289   : > { %1819 = vrot.lane.b32.xlu1 %v1777_v9, %s5022_s18 }
 0x28b   : > { %1811 = vrot.lane.b32.xlu2 %v1775_v44, %s5023_s19 }
 0x28e   : > { %1827 = vrot.lane.b32.xlu0 %v1779_v18, %s5021_s11 }
 0x291   : > { %1831 = vrot.lane.b32.xlu1 %v1773_v47, %s5019_s8 }
 0x293   : > { %1823 = vrot.lane.b32.xlu2 %v1769_v21, %s5020_s17 }
 0x296   : > { %1854 = vrot.lane.b32.xlu0 %v5347_v36, %s5014_s21 }
 0x299   : > { %1856 = vrot.lane.b32.xlu1 %v5261_v48, %s5014_s21 }
 0x29b   : > { %1835 = vrot.lane.b32.xlu2 %v1781_v49, %s5024_s15 }
 0x29e   : > { %1860 = vrot.lane.b32.xlu0 %v5362_v46, %s5014_s21 }
 0x2a1   : > { %1862 = vrot.lane.b32.xlu1 %v5242_v39, %s5014_s21 }
 0x2a3   : > { %1858 = vrot.lane.b32.xlu2 %v5350_v38, %s5014_s21 }
 0x2a6   : > { %1866 = vrot.lane.b32.xlu0 %v5276_v53, %s5014_s21 }
 0x2a9   : > { %1868 = vrot.lane.b32.xlu1 %v5367_v58, %s5014_s21 }
 0x2ab   : > { %1864 = vrot.lane.b32.xlu2 %v5245_v40, %s5014_s21 }
 0x2ad   : > { %v1565_v14 = vpop.permute.xlu2 %1564 }
 0x2ae   : > { %v1619_v42 = vsel %vm543_vm6, %v5977_v22, %v1565_v14 }
 0x2b5   : > { %v1577_v6 = vpop.permute.xlu2 %1576 }
 0x2bd   : > { %v1589_v27 = vpop.permute.xlu2 %1588 }
 0x2c0   : > { %v1569_v54 = vpop.permute.xlu0 %1568 }
 0x2c1   : > { %v1620_v17 = vsel %vm545_vm7, %v1619_v42, %v1569_v54 }
 0x2c3   : > { %v1573_v11 = vpop.permute.xlu1 %1572 }
 0x2c4   : > { %v1621_v7 = vsel %vm547_vm8, %v1620_v17, %v1573_v11 }
 0x2c5   : > { %v1601_v41 = vpop.permute.xlu2 %1600  ;;  %v1622_v34 = vsel %vm549_vm9, %v1621_v7, %v1577_v6 }
 0x2c8   : > { %v1581_v43 = vpop.permute.xlu0 %1580 }
 0x2c9   : > { %v1623_v29 = vsel %vm551_vm10, %v1622_v34, %v1581_v43 }
 0x2cb   : > { %v1585_v5 = vpop.permute.xlu1 %1584 }
 0x2cc   : > { %v1624_v3 = vsel %vm553_vm11, %v1623_v29, %v1585_v5 }
 0x2cd   : > { %v1625_v20 = vsel %vm555_vm12, %v1624_v3, %v1589_v27  ;;  %v1613_v37 = vpop.permute.xlu2 %1612 }
 0x2ce   : > { %v1635_v59 = vrot.slane %v1625_v20, 4 }
 0x2d0   : > { %1639 = vst [vmem:[#allocation4 + $0x48] sm:$0xf0] %v1635_v59  ;;  %v1593_v1 = vpop.permute.xlu0 %1592 }
 0x2d1   : > { %v1626_v55 = vsel %vm543_vm6, %v5992_v12, %v1593_v1 }
 0x2d3   : > { %v1597_v22 = vpop.permute.xlu1 %1596 }
 0x2d4   : > { %v1627_v52 = vsel %vm545_vm7, %v1626_v55, %v1597_v22 }
 0x2d5   : > { %v1628_v0 = vsel %vm547_vm8, %v1627_v52, %v1601_v41  ;;  %v1788_v56 = vpop.permute.xlu2 %1787 }
 0x2d8   : > { %v1605_v63 = vpop.permute.xlu0 %1604 }
 0x2d9   : > { %v1629_v10 = vsel %vm549_vm9, %v1628_v0, %v1605_v63 }
 0x2db   : > { %v1609_v30 = vpop.permute.xlu1 %1608 }
 0x2dc   : > { %v1630_v13 = vsel %vm551_vm10, %v1629_v10, %v1609_v30 }
 0x2dd   : > { %v1631_v28 = vsel %vm553_vm11, %v1630_v13, %v1613_v37  ;;  %v1800_v12 = vpop.permute.xlu2 %1799 }
 0x2e0   : > { %v1617_v2 = vpop.permute.xlu0 %1616 }
 0x2e1   : > { %v1632_v32 = vsel %vm555_vm12, %v1631_v28, %v1617_v2 }
 0x2e2   : > { %v1636_v23 = vrot.slane %v1632_v32, 4 }
 0x2e3   : > { %v1784_v62 = vpop.permute.xlu1 %1783 }
 0x2e4   : > { %1640 = vst [vmem:[#allocation4 + $0x28] sm:$0xf0] %v1636_v23  ;;  %v1838_v8 = vsel %vm543_vm6, %v6025_v51, %v1784_v62 }
 0x2e5   : > { %v1839_v4 = vsel %vm545_vm7, %v1838_v8, %v1788_v56  ;;  %v1812_v35 = vpop.permute.xlu2 %1811 }
 0x2e6   : > { %v1845_v60 = vsel %vm543_vm6, %v6077_v25, %v1812_v35 }
 0x2e8   : > { %v1792_v61 = vpop.permute.xlu0 %1791 }
 0x2e9   : > { %v1840_v31 = vsel %vm547_vm8, %v1839_v4, %v1792_v61 }
 0x2eb   : > { %v1796_v16 = vpop.permute.xlu1 %1795 }
 0x2ec   : > { %v1841_v21 = vsel %vm549_vm9, %v1840_v31, %v1796_v16 }
 0x2ed   : > { %v1842_v26 = vsel %vm551_vm10, %v1841_v21, %v1800_v12  ;;  %v1824_v47 = vpop.permute.xlu2 %1823 }
 0x2f0   : > { %v1804_v9 = vpop.permute.xlu0 %1803 }
 0x2f1   : > { %v1843_v44 = vsel %vm553_vm11, %v1842_v26, %v1804_v9 }
 0x2f3   : > { %v1808_v33 = vpop.permute.xlu1 %1807 }
 0x2f4   : > { %v1844_v50 = vsel %vm555_vm12, %v1843_v44, %v1808_v33 }
 0x2f5   : > { %1852 = vst [vmem:[#allocation4 + $0x8] sm:$0xf] %v1844_v50  ;;  %v1836_v42 = vpop.permute.xlu2 %1835 }
 0x2f8   : > { %v1816_v18 = vpop.permute.xlu0 %1815 }
 0x2f9   : > { %v1846_v49 = vsel %vm545_vm7, %v1845_v60, %v1816_v18 }
 0x2fb   : > { %v1820_v51 = vpop.permute.xlu1 %1819 }
 0x2fc   : > { %v1847_v14 = vsel %vm547_vm8, %v1846_v49, %v1820_v51 }
 0x2fd   : > { %v1848_v27 = vsel %vm549_vm9, %v1847_v14, %v1824_v47  ;;  %v1859_v34 = vpop.permute.xlu2 %1858 }
 0x2fe   : > { %v1892_v59 = vrot.slane %v1859_v34, 4 }
 0x300   : > { %v1828_v6 = vpop.permute.xlu0 %1827 }
 0x301   : > { %v1849_v54 = vsel %vm551_vm10, %v1848_v27, %v1828_v6 }
 0x303   : > { %v1832_v11 = vpop.permute.xlu1 %1831 }
 0x304   : > { %v1850_v17 = vsel %vm553_vm11, %v1849_v54, %v1832_v11 }
 0x305   : > { %v1851_v7 = vsel %vm555_vm12, %v1850_v17, %v1836_v42  ;;  %v1865_v63 = vpop.permute.xlu2 %1864 }
 0x306   : > { %1853 = vst [vmem:[#allocation4 + $0x20] sm:$0xf] %v1851_v7  ;;  %v1934_v23 = vrot.slane %v1865_v63, 4 }
 0x308   : > { %v1855_v41 = vpop.permute.xlu0 %1854 }
 0x309   : > { %v1880_v3 = vrot.slane %v1855_v41, 4 }
 0x30b   : > { %v1857_v43 = vpop.permute.xlu1 %1856 }
 0x30c   : > { %v1935_v31 = vsel %vm375_vm1, %v1934_v23, %v1857_v43  ;;  %v1936_v27 = vrot.slane %v1857_v43, 4 }
 0x30d   : > { %v1941_v33 = vperm.slane %v1935_v31, %v5285_v57 }
 0x310   : > { %v1861_v25 = vpop.permute.xlu0 %1860 }
 0x311   : > { %v1948_v50 = vrot.slane %v1861_v25, 4 }
 0x313   : > { %v1863_v29 = vpop.permute.xlu1 %1862 }
 0x314   : > { %v1878_v5 = vrot.slane %v1863_v29, 4  ;;  %v1881_v1 = vsel %vm375_vm1, %v1863_v29, %v1880_v3 }
 0x315   : > { %v1889_v30 = vperm.slane %v1881_v1, %v5285_v57 }
 0x316   : > { %v1879_v20 = vsel %vm375_vm1, %v1878_v5, %v1855_v41  ;;  %v1937_v41 = vsel %vm375_vm1, %v1865_v63, %v1936_v27 }
 0x317   : > { %v1885_v37 = vperm.slane %v1879_v20, %v5285_v57  ;;  %v1916_v60 = vrot.slane %v1889_v30, 4  ;;  %v1945_v29 = vperm.slane %v1937_v41, %v5285_v57 }
 0x318   : > { %v1867_v22 = vpop.permute.xlu0 %1866 }
 0x319   : > { %v1890_v55 = vrot.slane %v1867_v22, 4  ;;  %v1893_v52 = vsel %vm375_vm1, %v1867_v22, %v1892_v59  ;;  %v1904_v13 = vrot.slane %v1885_v37, 4 }
 0x31a   : > { %v1901_v0 = vperm.slane %v1893_v52, %v5285_v57 }
 0x31b   : > { %v1891_v56 = vsel %vm375_vm1, %v1890_v55, %v1859_v34  ;;  %v1869_v10 = vpop.permute.xlu1 %1868 }
 0x31c   : > { %v1897_v2 = vperm.slane %v1891_v56, %v5285_v57  ;;  %v1914_v28 = vrot.slane %v1901_v0, 4  ;;  %v1946_v32 = vrot.slane %v1869_v10, 4  ;;  %v1949_v49 = vsel %vm375_vm1, %v1869_v10, %v1948_v50 }
 0x31d   : > { %v1917_v54 = vsel %vm375_vm1, %v1901_v0, %v1916_v60  ;;  %v1957_v11 = vperm.slane %v1949_v49, %v5285_v57 }
 0x31e   : > { %v1902_v62 = vrot.slane %v1897_v2, 4  ;;  %v1947_v12 = vsel %vm375_vm1, %v1946_v32, %v1861_v25  ;;  %v1905_v61 = vsel %vm375_vm1, %v1897_v2, %v1904_v13  ;;  %v1915_v8 = vsel %vm375_vm1, %v1914_v28, %v1889_v30 }
 0x31f   : > { %v1953_v16 = vperm.slane %v1947_v12, %v5285_v57  ;;  %v1913_v4 = vperm.slane %v1905_v61, %v5353_v45  ;;  %v1921_v35 = vperm.slane %v1915_v8, %v5353_v45  ;;  %v1925_v7 = vperm.slane %v1917_v54, %v5353_v45 }
 0x320   : > { %v1903_v21 = vsel %vm375_vm1, %v1902_v62, %v1885_v37  ;;  %v1970_v34 = vrot.slane %v1957_v11, 4  ;;  %v1960_v25 = vrot.slane %v1941_v33, 4  ;;  %v1972_v37 = vrot.slane %v1945_v29, 4 }
 0x321   : > { %v1958_v9 = vrot.slane %v1953_v16, 4  ;;  %1995 = vrot.lane.b32.xlu0 %v1913_v4, %s5018_s29  ;;  %v1928_v26 = vrot.slane %v1913_v4, 4  ;;  %v6162_v44 = vperm.slane %v1903_v21, %v5353_v45  ;;  %v1930_v51 = vrot.slane %v1921_v35, 4 }
 0x322   : > { %v1961_v5 = vsel %vm375_vm1, %v1953_v16, %v1960_v25  ;;  %v1971_v20 = vsel %vm375_vm1, %v1970_v34, %v1945_v29  ;;  %v1932_v59 = vrot.slane %v1925_v7, 4  ;;  %v1973_v52 = vsel %vm375_vm1, %v1957_v11, %v1972_v37 }
 0x323   : > { %v1929_v18 = vsel %vm375_vm1, 0.0, %v1928_v26  ;;  %v1926_v47 = vrot.slane %v6162_v44, 4  ;;  %v1959_v6 = vsel %vm375_vm1, %v1958_v9, %v1941_v33  ;;  %v1931_v42 = vsel %vm375_vm1, 0.0, %v1930_v51 }
 0x324   : > { %1999 = vrot.lane.b32.xlu1 %v1929_v18, %s5022_s18  ;;  %v6176_v17 = vperm.slane %v1959_v6, %v5353_v45  ;;  %v1969_v1 = vperm.slane %v1961_v5, %v5353_v45  ;;  %v1977_v22 = vperm.slane %v1971_v20, %v5353_v45  ;;  %v1933_v55 = vsel %vm375_vm1, 0.0, %v1932_v59 }
 0x325   : > { %v1927_v14 = vsel %vm375_vm1, 0.0, %v1926_v47  ;;  %v1981_v0 = vperm.slane %v1973_v52, %v5353_v45 }
 0x326   : > { %1991 = vrot.lane.b32.xlu2 %v1927_v14, %s5023_s19  ;;  %v1982_v43 = vrot.slane %v6176_v17, 4  ;;  %v1986_v63 = vrot.slane %v1977_v22, 4  ;;  %v1984_v30 = vrot.slane %v1969_v1, 4 }
 0x327   : > { %v1988_v10 = vrot.slane %v1981_v0, 4 }
 0x328   : > { %v1983_v3 = vsel %vm375_vm1, 0.0, %v1982_v43  ;;  %v1987_v56 = vsel %vm375_vm1, 0.0, %v1986_v63  ;;  %v1985_v13 = vsel %vm375_vm1, 0.0, %v1984_v30 }
 0x329   : > { %2007 = vrot.lane.b32.xlu0 %v1931_v42, %s5021_s11  ;;  %v1989_v2 = vsel %vm375_vm1, 0.0, %v1988_v10 }
 0x32c   : > { %2011 = vrot.lane.b32.xlu1 %v1925_v7, %s5019_s8 }
 0x32e   : > { %2003 = vrot.lane.b32.xlu2 %v1921_v35, %s5020_s17 }
 0x331   : > { %2019 = vrot.lane.b32.xlu0 %v1983_v3, %s5023_s19 }
 0x334   : > { %2023 = vrot.lane.b32.xlu1 %v1969_v1, %s5018_s29 }
 0x336   : > { %2015 = vrot.lane.b32.xlu2 %v1933_v55, %s5024_s15 }
 0x339   : > { %2031 = vrot.lane.b32.xlu0 %v1977_v22, %s5020_s17 }
 0x33c   : > { %2035 = vrot.lane.b32.xlu1 %v1987_v56, %s5021_s11 }
 0x33e   : > { %2027 = vrot.lane.b32.xlu2 %v1985_v13, %s5022_s18 }
 0x341   : > { %2043 = vrot.lane.b32.xlu0 %v1989_v2, %s5024_s15 }
 0x344   : > { %2068 = vrot.lane.b32.xlu1 %v5347_v36, %s5015_s23 }
 0x346   : > { %2039 = vrot.lane.b32.xlu2 %v1981_v0, %s5019_s8 }
 0x349   : > { %2072 = vrot.lane.b32.xlu0 %v5350_v38, %s5015_s23 }
 0x34c   : > { %2074 = vrot.lane.b32.xlu1 %v5362_v46, %s5015_s23 }
 0x34e   : > { %2070 = vrot.lane.b32.xlu2 %v5261_v48, %s5015_s23 }
 0x351   : > { %2078 = vrot.lane.b32.xlu0 %v5245_v40, %s5015_s23 }
 0x354   : > { %2080 = vrot.lane.b32.xlu1 %v5276_v53, %s5015_s23 }
 0x356   : > { %2076 = vrot.lane.b32.xlu2 %v5242_v39, %s5015_s23 }
 0x35e   : > { %2082 = vrot.lane.b32.xlu2 %v5367_v58, %s5015_s23 }
 0x380   : > { %v1992_v36 = vpop.permute.xlu2 %1991 }
 0x381   : > { %v2046_v48 = vsel %vm543_vm6, %v6162_v44, %v1992_v36 }
 0x388   : > { %v2004_v38 = vpop.permute.xlu2 %2003 }
 0x390   : > { %v2016_v28 = vpop.permute.xlu2 %2015 }
 0x393   : > { %v1996_v32 = vpop.permute.xlu0 %1995 }
 0x394   : > { %v2047_v23 = vsel %vm545_vm7, %v2046_v48, %v1996_v32 }
 0x396   : > { %v2000_v46 = vpop.permute.xlu1 %1999 }
 0x397   : > { %v2048_v40 = vsel %vm547_vm8, %v2047_v23, %v2000_v46 }
 0x398   : > { %v2028_v53 = vpop.permute.xlu2 %2027  ;;  %v2049_v12 = vsel %vm549_vm9, %v2048_v40, %v2004_v38 }
 0x39b   : > { %v2008_v62 = vpop.permute.xlu0 %2007 }
 0x39c   : > { %v2050_v39 = vsel %vm551_vm10, %v2049_v12, %v2008_v62 }
 0x39e   : > { %v2012_v61 = vpop.permute.xlu1 %2011 }
 0x39f   : > { %v2051_v58 = vsel %vm553_vm11, %v2050_v39, %v2012_v61 }
 0x3a0   : > { %v2052_v8 = vsel %vm555_vm12, %v2051_v58, %v2016_v28  ;;  %v2040_v21 = vpop.permute.xlu2 %2039 }
 0x3a1   : > { %v2062_v16 = vrot.slane %v2052_v8, 4 }
 0x3a3   : > { %2066 = vst [vmem:[#allocation4 + $0x8] sm:$0xf0] %v2062_v16  ;;  %v2020_v4 = vpop.permute.xlu0 %2019 }
 0x3a4   : > { %v2053_v35 = vsel %vm543_vm6, %v6176_v17, %v2020_v4 }
 0x3a6   : > { %v2024_v31 = vpop.permute.xlu1 %2023 }
 0x3a7   : > { %v2054_v9 = vsel %vm545_vm7, %v2053_v35, %v2024_v31 }
 0x3a8   : > { %v2055_v44 = vsel %vm547_vm8, %v2054_v9, %v2028_v53  ;;  %v2071_v47 = vpop.permute.xlu2 %2070 }
 0x3a9   : > { %v2150_v4 = vrot.slane %v2071_v47, 4 }
 0x3ab   : > { %v2032_v26 = vpop.permute.xlu0 %2031 }
 0x3ac   : > { %v2056_v50 = vsel %vm549_vm9, %v2055_v44, %v2032_v26 }
 0x3ae   : > { %v2036_v33 = vpop.permute.xlu1 %2035 }
 0x3af   : > { %v2057_v18 = vsel %vm551_vm10, %v2056_v50, %v2036_v33 }
 0x3b0   : > { %v2058_v60 = vsel %vm553_vm11, %v2057_v18, %v2040_v21  ;;  %v2077_v27 = vpop.permute.xlu2 %2076 }
 0x3b1   : > { %v2092_v42 = vrot.slane %v2077_v27, 4 }
 0x3b3   : > { %v2044_v51 = vpop.permute.xlu0 %2043 }
 0x3b4   : > { %v2059_v49 = vsel %vm555_vm12, %v2058_v60, %v2044_v51 }
 0x3b5   : > { %v2063_v14 = vrot.slane %v2059_v49, 4 }
 0x3b6   : > { %v2069_v6 = vpop.permute.xlu1 %2068 }
 0x3b7   : > { %2067 = vst [vmem:[#allocation4 + $0x20] sm:$0xf0] %v2063_v14  ;;  %v2094_v17 = vrot.slane %v2069_v6, 4  ;;  %v2093_v7 = vsel %vm375_vm1, %v2092_v42, %v2069_v6 }
 0x3b8   : > { %v2083_v41 = vpop.permute.xlu2 %2082  ;;  %v2099_v29 = vperm.slane %v2093_v7, %v5285_v57 }
 0x3b9   : > { %v2095_v25 = vsel %vm375_vm1, %v2077_v27, %v2094_v17  ;;  %v2160_v59 = vrot.slane %v2083_v41, 4 }
 0x3ba   : > { %v2103_v22 = vperm.slane %v2095_v25, %v5285_v57  ;;  %v2118_v52 = vrot.slane %v2099_v29, 4 }
 0x3bb   : > { %v2073_v54 = vpop.permute.xlu0 %2072 }
 0x3bc   : > { %v2106_v34 = vrot.slane %v2073_v54, 4  ;;  %v2130_v61 = vrot.slane %v2103_v22, 4 }
 0x3be   : > { %v2075_v11 = vpop.permute.xlu1 %2074 }
 0x3bf   : > { %v2161_v63 = vsel %vm375_vm1, %v2160_v59, %v2075_v11  ;;  %v2162_v46 = vrot.slane %v2075_v11, 4 }
 0x3c0   : > { %v2167_v36 = vperm.slane %v2161_v63, %v5285_v57 }
 0x3c1   : > { %v2163_v58 = vsel %vm375_vm1, %v2083_v41, %v2162_v46 }
 0x3c2   : > { %v2172_v62 = vrot.slane %v2167_v36, 4  ;;  %v2171_v21 = vperm.slane %v2163_v58, %v5285_v57  ;;  %v2279_v58 = vld [vmem:[#allocation4 + $0x18] sm:$0xff] }
 0x3c3   : > { %v2079_v43 = vpop.permute.xlu0 %2078 }
 0x3c4   : > { %v2148_v1 = vrot.slane %v2079_v43, 4  ;;  %v2151_v26 = vsel %vm375_vm1, %v2079_v43, %v2150_v4  ;;  %v2184_v50 = vrot.slane %v2171_v21, 4  ;;  %v2276_v4 = vld [vmem:[%s8196_s1] sm:$0xf] }
 0x3c5   : > { %v2159_v18 = vperm.slane %v2151_v26, %v5285_v57 }
 0x3c6   : > { %v2081_v5 = vpop.permute.xlu1 %2080  ;;  %v2149_v56 = vsel %vm375_vm1, %v2148_v1, %v2071_v47 }
 0x3c7   : > { %v2104_v3 = vrot.slane %v2081_v5, 4  ;;  %v2107_v20 = vsel %vm375_vm1, %v2081_v5, %v2106_v34  ;;  %v2155_v48 = vperm.slane %v2149_v56, %v5285_v57  ;;  %v2185_v49 = vsel %vm375_vm1, %v2184_v50, %v2159_v18  ;;  %v2280_v50 = vld [vmem:[#allocation4 + $0x10] sm:$0xff] }
 0x3c8   : > { %v2115_v37 = vperm.slane %v2107_v20, %v5285_v57  ;;  %v2186_v14 = vrot.slane %v2159_v18, 4  ;;  %v5025_v56 = vmov 0   ;;  %v2278_v18 = vld [vmem:[#allocation4] sm:$0xff] }
 0x3c9   : > { %v2105_v55 = vsel %vm375_vm1, %v2104_v3, %v2073_v54  ;;  %v2173_v16 = vsel %vm375_vm1, %v2172_v62, %v2155_v48  ;;  %v2174_v33 = vrot.slane %v2155_v48, 4  ;;  %v2191_v54 = vperm.slane %v2185_v49, %v5353_v45  ;;  %4910 = vset.pattern.permute.xlu0 %v5025_v56  ;;  %4909 = vset.pattern.permute.xlu2 %v5025_v56 }
 0x3ca   : > { %v2111_v0 = vperm.slane %v2105_v55, %v5285_v57  ;;  %v2128_v30 = vrot.slane %v2115_v37, 4  ;;  %v2131_v31 = vsel %vm375_vm1, %v2115_v37, %v2130_v61  ;;  %v2179_v9 = vperm.slane %v2173_v16, %v5353_v45  ;;  %4911 = vset.pattern.permute.xlu1 %v5025_v56 }
 0x3cb   : > { %v2139_v44 = vperm.slane %v2131_v31, %v5353_v45  ;;  %v2175_v51 = vsel %vm375_vm1, %v2167_v36, %v2174_v33  ;;  %v2187_v42 = vsel %vm375_vm1, %v2171_v21, %v2186_v14  ;;  %v2200_v17 = vrot.slane %v2191_v54, 4  ;;  %v2282_v33 = vld [vmem:[#allocation4 + $0x28] sm:$0xff] }
 0x3cc   : > { %v2116_v10 = vrot.slane %v2111_v0, 4  ;;  %v2119_v13 = vsel %vm375_vm1, %v2111_v0, %v2118_v52  ;;  %v2129_v2 = vsel %vm375_vm1, %v2128_v30, %v2103_v22  ;;  %v2196_v47 = vrot.slane %v2179_v9, 4 }
 0x3cd   : > { %v2127_v38 = vperm.slane %v2119_v13, %v5353_v45  ;;  %v2135_v32 = vperm.slane %v2129_v2, %v5353_v45  ;;  %v2146_v6 = vrot.slane %v2139_v44, 4  ;;  %v2183_v27 = vperm.slane %v2175_v51, %v5353_v45 }
 0x3ce   : > { %v2117_v28 = vsel %vm375_vm1, %v2116_v10, %v2099_v29  ;;  %v2197_v60 = vsel %vm375_vm1, 0.0, %v2196_v47  ;;  %v2195_v7 = vperm.slane %v2187_v42, %v5353_v45  ;;  %v2201_v34 = vsel %vm375_vm1, 0.0, %v2200_v17  ;;  %v2346_v10 = vld [vmem:[%s8198_s3] sm:$0xf] }
 0x3cf   : > { %2209 = vrot.lane.b32.xlu1 %v2127_v38, %s5018_s29  ;;  %v2142_v23 = vrot.slane %v2127_v38, 4  ;;  %v2123_v40 = vperm.slane %v2117_v28, %v5353_v45  ;;  %v2144_v39 = vrot.slane %v2135_v32, 4  ;;  %v2147_v11 = vsel %vm375_vm1, 0.0, %v2146_v6  ;;  %v2338_v38 = vld [vmem:[%s8197_s2] sm:$0xf] }
 0x3d0   : > { %v2198_v41 = vrot.slane %v2183_v27, 4  ;;  %v2202_v43 = vrot.slane %v2195_v7, 4 }
 0x3d1   : > { %v2143_v53 = vsel %vm375_vm1, 0.0, %v2142_v23  ;;  %v2140_v12 = vrot.slane %v2123_v40, 4  ;;  %v2145_v35 = vsel %vm375_vm1, 0.0, %v2144_v39  ;;  %v2281_v39 = vld [vmem:[#allocation4 + $0x48] sm:$0xff] }
 0x3d2   : > { %2213 = vrot.lane.b32.xlu2 %v2143_v53, %s5022_s18  ;;  %v2199_v25 = vsel %vm375_vm1, 0.0, %v2198_v41  ;;  %v2203_v29 = vsel %vm375_vm1, 0.0, %v2202_v43  ;;  %v2283_v53 = vld [vmem:[#allocation4 + $0x8] sm:$0xff] }
 0x3d3   : > { %v2141_v8 = vsel %vm375_vm1, 0.0, %v2140_v12 }
 0x3d4   : > { %2205 = vrot.lane.b32.xlu0 %v2141_v8, %s5023_s19 }
 0x3d7   : > { %2221 = vrot.lane.b32.xlu1 %v2145_v35, %s5021_s11  ;;  %v2277_v35 = vld [vmem:[#allocation4 + $0x30] sm:$0xff] }
 0x3da   : > { %2225 = vrot.lane.b32.xlu2 %v2139_v44, %s5019_s8  ;;  %v2284_v44 = vld [vmem:[#allocation4 + $0x20] sm:$0xff] }
 0x3dc   : > { %2217 = vrot.lane.b32.xlu0 %v2135_v32, %s5020_s17 }
 0x3df   : > { %2233 = vrot.lane.b32.xlu1 %v2197_v60, %s5023_s19 }
 0x3e2   : > { %2237 = vrot.lane.b32.xlu2 %v2183_v27, %s5018_s29 }
 0x3e4   : > { %2229 = vrot.lane.b32.xlu0 %v2147_v11, %s5024_s15 }
 0x3e7   : > { %2245 = vrot.lane.b32.xlu1 %v2191_v54, %s5020_s17 }
 0x3ea   : > { %2249 = vrot.lane.b32.xlu2 %v2201_v34, %s5021_s11 }
 0x3ec   : > { %2241 = vrot.lane.b32.xlu0 %v2199_v25, %s5022_s18 }
 0x3ef   : > { %2257 = vrot.lane.b32.xlu1 %v2203_v29, %s5024_s15 }
 0x3f2   : > { %2341 = vperm.xlu2 %4909, %v2338_v38  }
 0x3f4   : > { %2253 = vrot.lane.b32.xlu0 %v2195_v7, %s5019_s8 }
 0x3fc   : > { %2349 = vperm.xlu0 %4910, %v2346_v10  }
 0x42c   : > { %v2214_v20 = vpop.permute.xlu2 %2213 }
 0x434   : > { %v2226_v63 = vpop.permute.xlu2 %2225 }
 0x43c   : > { %v2238_v28 = vpop.permute.xlu2 %2237 }
 0x441   : > { %v2210_v5 = vpop.permute.xlu1 %2209 }
 0x444   : > { %v2250_v61 = vpop.permute.xlu2 %2249 }
 0x446   : > { %v2206_v3 = vpop.permute.xlu0 %2205 }
 0x447   : > { %v2260_v59 = vsel %vm543_vm6, %v2123_v40, %v2206_v3 }
 0x448   : > { %v2261_v37 = vsel %vm545_vm7, %v2260_v59, %v2210_v5 }
 0x449   : > { %v2222_v1 = vpop.permute.xlu1 %2221  ;;  %v2262_v55 = vsel %vm547_vm8, %v2261_v37, %v2214_v20 }
 0x44c   : > { %v2342_v47 = vpop.permute.xlu2 %2341 }
 0x44e   : > { %v2218_v22 = vpop.permute.xlu0 %2217 }
 0x44f   : > { %v2263_v52 = vsel %vm549_vm9, %v2262_v55, %v2218_v22 }
 0x450   : > { %v2264_v0 = vsel %vm551_vm10, %v2263_v52, %v2222_v1 }
 0x451   : > { %v2234_v30 = vpop.permute.xlu1 %2233  ;;  %v2265_v2 = vsel %vm553_vm11, %v2264_v0, %v2226_v63 }
 0x452   : > { %v2267_v32 = vsel %vm543_vm6, %v2179_v9, %v2234_v30 }
 0x453   : > { %v2268_v23 = vsel %vm545_vm7, %v2267_v32, %v2238_v28 }
 0x456   : > { %v2230_v13 = vpop.permute.xlu0 %2229 }
 0x457   : > { %v2266_v36 = vsel %vm555_vm12, %v2265_v2, %v2230_v13 }
 0x458   : > { %2274 = vst [vmem:[#allocation4 + $0x40] sm:$0xf] %v2266_v36 }
 0x459   : > { %v2246_v46 = vpop.permute.xlu1 %2245 }
 0x45e   : > { %v2242_v48 = vpop.permute.xlu0 %2241 }
 0x45f   : > { %v2285_v40 = vld [vmem:[#allocation4 + $0x40] sm:$0xf]  ;;  %v2269_v62 = vsel %vm547_vm8, %v2268_v23, %v2242_v48 }
 0x460   : > { %4832 = vmatpush.msk.msra.mxu0 %vm2291_vm13, %v2285_v40  ;;  %v2270_v12 = vsel %vm549_vm9, %v2269_v62, %v2246_v46 }
 0x461   : > { %v2271_v16 = vsel %vm551_vm10, %v2270_v12, %v2250_v61  ;;  %v2258_v31 = vpop.permute.xlu1 %2257 }
 0x462   : > { %2310 = vmatpush.msra.mxu0 %v2283_v53 }
 0x464   : > { %2311 = vmatpush.msra.mxu0 %v2281_v39 }
 0x466   : > { %v2254_v8 = vpop.permute.xlu0 %2253  ;;  %2312 = vmatpush.msra.mxu0 %v2279_v58 }
 0x467   : > { %v2272_v21 = vsel %vm553_vm11, %v2271_v16, %v2254_v8 }
 0x468   : > { %v2273_v9 = vsel %vm555_vm12, %v2272_v21, %v2258_v31  ;;  %2313 = vmatpush.msra.mxu0 %v2277_v35 }
 0x469   : > { %2275 = vst [vmem:[#allocation4 + $0x38] sm:$0xf] %v2273_v9  ;;  %4833 = vmatmul.msk.f32.vlgmr.msra.gmra.mxu0 %vm2287_vm14, %v2276_v4 }
 0x46e   : > { %v2350_v60 = vpop.permute.xlu0 %2349 }
 0x470   : > { %v2286_v26 = vld [vmem:[#allocation4 + $0x38] sm:$0xf] }
 0x471   : > { %4834 = vmatpush.msk.msra.mxu1 %vm2291_vm13, %v2286_v26 }
 0x473   : > { %2330 = vmatpush.msra.mxu1 %v2284_v44 }
 0x475   : > { %2331 = vmatpush.msra.mxu1 %v2282_v33 }
 0x477   : > { %2332 = vmatpush.msra.mxu1 %v2280_v50 }
 0x479   : > { %2333 = vmatpush.msra.mxu1 %v2278_v18 }
 0x47a   : > { %4835 = vmatmul.msk.f32.vlgmr.msra.gmra.mxu1 %vm2287_vm14, %v2276_v4 }
 0x4e6   : > { %v2315_v51 = vpop.f32.mrf.mxu0 }
 0x4e7   : > { %v2344_v49 = vmul.f32 %v2342_v47, %v2315_v51 }
 0x4e9   : > { %v2352_v14 = vadd.f32 %v2350_v60, %v2344_v49 }
 0x4eb   : > { %v2354_v6 = vmax.f32 %v2352_v14, 0.0 }
 0x4ed   : > { %2369 = vrot.lane.b32.xlu0 %v2354_v6, %s5022_s18  ;;  %2360 = vrot.lane.b32.xlu2 %v2354_v6, %s5019_s8 }
 0x4ee   : > { %2357 = vrot.lane.b32.xlu1 %v2354_v6, %s5024_s15 }
 0x4f5   : > { %2366 = vrot.lane.b32.xlu2 %v2354_v6, %s5020_s17 }
 0x4f6   : > { %2363 = vrot.lane.b32.xlu1 %v2354_v6, %s5021_s11 }
 0x4f7   : > { %v2335_v27 = vpop.f32.mrf.mxu1 }
 0x4f8   : > { %v2345_v54 = vmul.f32 %v2342_v47, %v2335_v27 }
 0x4fa   : > { %v2353_v11 = vadd.f32 %v2350_v60, %v2345_v54 }
 0x4fc   : > { %v2355_v42 = vmax.f32 %v2353_v11, 0.0 }
 0x4fd   : > { %2375 = vrot.lane.b32.xlu2 %v2354_v6, %s5023_s19 }
 0x4fe   : > { %2372 = vrot.lane.b32.xlu1 %v2354_v6, %s5018_s29  ;;  %2379 = vrot.lane.b32.xlu0 %v2355_v42, %s5024_s15 }
 0x505   : > { %2385 = vrot.lane.b32.xlu2 %v2355_v42, %s5021_s11 }
 0x506   : > { %2382 = vrot.lane.b32.xlu1 %v2355_v42, %s5019_s8  ;;  %2388 = vrot.lane.b32.xlu0 %v2355_v42, %s5020_s17 }
 0x50d   : > { %2394 = vrot.lane.b32.xlu2 %v2355_v42, %s5018_s29 }
 0x50e   : > { %2391 = vrot.lane.b32.xlu1 %v2355_v42, %s5022_s18  ;;  %2397 = vrot.lane.b32.xlu0 %v2355_v42, %s5023_s19 }
 0x547   : > { %v2361_v17 = vpop.permute.xlu2 %2360 }
 0x548   : > { %v2400_v43 = vrot.slane %v2361_v17, 4 }
 0x54a   : > { %v2401_v3 = vsel %vm375_vm1, %v2400_v43, %v2354_v6 }
 0x54b   : > { %v2405_v55 = vperm.slane %v2401_v3, %v5285_v57 }
 0x54f   : > { %v2367_v7 = vpop.permute.xlu2 %2366 }
 0x557   : > { %v2376_v34 = vpop.permute.xlu2 %2375 }
 0x558   : > { %v2418_v20 = vrot.slane %v2376_v34, 4 }
 0x55f   : > { %v2370_v25 = vpop.permute.xlu0 %2369  ;;  %v2386_v22 = vpop.permute.xlu2 %2385 }
 0x560   : > { %v2358_v41 = vpop.permute.xlu1 %2357  ;;  %v2419_v37 = vsel %vm375_vm1, %v2418_v20, %v2370_v25  ;;  %v2462_v32 = vrot.slane %v2386_v22, 4 }
 0x561   : > { %v2423_v63 = vperm.slane %v2419_v37, %v5285_v57 }
 0x563   : > { %v2436_v36 = vrot.slane %v2423_v63, 4 }
 0x567   : > { %v2395_v46 = vpop.permute.xlu2 %2394 }
 0x568   : > { %v2364_v29 = vpop.permute.xlu1 %2363  ;;  %v2468_v58 = vrot.slane %v2395_v46, 4 }
 0x569   : > { %v2406_v5 = vrot.slane %v2364_v29, 4 }
 0x56b   : > { %v2407_v59 = vsel %vm375_vm1, %v2406_v5, %v2358_v41 }
 0x56c   : > { %v2411_v1 = vperm.slane %v2407_v59, %v5285_v57 }
 0x56e   : > { %v2424_v52 = vrot.slane %v2411_v1, 4 }
 0x570   : > { %v2373_v0 = vpop.permute.xlu1 %2372  ;;  %v2380_v30 = vpop.permute.xlu0 %2379  ;;  %v2425_v56 = vsel %vm375_vm1, %v2424_v52, %v2405_v55 }
 0x571   : > { %v2412_v10 = vrot.slane %v2373_v0, 4  ;;  %v2431_v2 = vperm.slane %v2425_v56, %v5353_v45  ;;  %v2463_v53 = vsel %vm375_vm1, %v2462_v32, %v2380_v30 }
 0x572   : > { %v2467_v4 = vperm.slane %v2463_v53, %v5285_v57 }
 0x573   : > { %v2413_v13 = vsel %vm375_vm1, %v2412_v10, %v2367_v7  ;;  %v2450_v23 = vrot.slane %v2431_v2, 4 }
 0x574   : > { %v2417_v38 = vperm.slane %v2413_v13, %v5285_v57  ;;  %v2480_v35 = vrot.slane %v2467_v4, 4 }
 0x576   : > { %v2437_v28 = vsel %vm375_vm1, %v2436_v36, %v2417_v38  ;;  %v2438_v14 = vrot.slane %v2417_v38, 4 }
 0x577   : > { %v2443_v48 = vperm.slane %v2437_v28, %v5353_v45 }
 0x578   : > { %v2383_v40 = vpop.permute.xlu1 %2382  ;;  %v2389_v62 = vpop.permute.xlu0 %2388  ;;  %v2439_v29 = vsel %vm375_vm1, %v2423_v63, %v2438_v14 }
 0x579   : > { %v2456_v12 = vrot.slane %v2383_v40, 4  ;;  %v2451_v39 = vsel %vm375_vm1, %v2443_v48, %v2450_v23  ;;  %v2448_v61 = vrot.slane %v2443_v48, 4  ;;  %v2469_v31 = vsel %vm375_vm1, %v2468_v58, %v2389_v62 }
 0x57a   : > { %2536 = vrot.lane.b32.xlu0 %v2451_v39, %s5013_s12  ;;  %v2473_v9 = vperm.slane %v2469_v31, %v5285_v57  ;;  %v2447_v22 = vperm.slane %v2439_v29, %v5353_v45 }
 0x57b   : > { %v2457_v8 = vsel %vm375_vm1, %v2456_v12, %v2355_v42  ;;  %v2449_v16 = vsel %vm375_vm1, %v2448_v61, %v2431_v2  ;;  %v2426_v42 = vrot.slane %v2405_v55, 4 }
 0x57c   : > { %2532 = vrot.lane.b32.xlu1 %v2449_v16, %s5013_s12  ;;  %v2461_v21 = vperm.slane %v2457_v8, %v5285_v57  ;;  %v2494_v51 = vrot.slane %v2473_v9, 4  ;;  %v2452_v55 = vrot.slane %v2447_v22, 4 }
 0x57d   : > { %v2427_v25 = vsel %vm375_vm1, %v2411_v1, %v2426_v42 }
 0x57e   : > { %v2482_v33 = vrot.slane %v2461_v21, 4  ;;  %v2481_v18 = vsel %vm375_vm1, %v2480_v35, %v2461_v21  ;;  %v2435_v37 = vperm.slane %v2427_v25, %v5353_v45 }
 0x57f   : > { %v2487_v49 = vperm.slane %v2481_v18, %v5353_v45 }
 0x580   : > { %v2398_v26 = vpop.permute.xlu0 %2397  ;;  %v2392_v50 = vpop.permute.xlu1 %2391  ;;  %v2483_v27 = vsel %vm375_vm1, %v2467_v4, %v2482_v33  ;;  %v2454_v1 = vrot.slane %v2435_v37, 4  ;;  %v2453_v63 = vsel %vm375_vm1, %v2452_v55, %v2435_v37 }
 0x581   : > { %v2474_v44 = vrot.slane %v2398_v26, 4  ;;  %v2491_v7 = vperm.slane %v2483_v27, %v5353_v45  ;;  %v2506_v43 = vrot.slane %v2487_v49, 4 }
 0x582   : > { %v2455_v52 = vsel %vm375_vm1, %v2447_v22, %v2454_v1 }
 0x583   : > { %v2475_v47 = vsel %vm375_vm1, %v2474_v44, %v2392_v50  ;;  %v2510_v0 = vrot.slane %v2491_v7, 4 }
 0x584   : > { %v2479_v60 = vperm.slane %v2475_v47, %v5285_v57 }
 0x586   : > { %v2492_v6 = vrot.slane %v2479_v60, 4  ;;  %v2495_v54 = vsel %vm375_vm1, %v2479_v60, %v2494_v51 }
 0x587   : > { %v2503_v11 = vperm.slane %v2495_v54, %v5353_v45 }
 0x588   : > { %v2493_v17 = vsel %vm375_vm1, %v2492_v6, %v2473_v9 }
 0x589   : > { %v2508_v41 = vrot.slane %v2503_v11, 4  ;;  %v2499_v34 = vperm.slane %v2493_v17, %v5353_v45  ;;  %v2511_v30 = vsel %vm375_vm1, %v2503_v11, %v2510_v0 }
 0x58b   : > { %v2509_v5 = vsel %vm375_vm1, %v2508_v41, %v2491_v7  ;;  %v2507_v3 = vsel %vm375_vm1, %v2499_v34, %v2506_v43  ;;  %v2504_v20 = vrot.slane %v2499_v34, 4 }
 0x58c   : > { %2542 = vrot.lane.b32.xlu0 %v2509_v5, %s5013_s12  ;;  %2538 = vrot.lane.b32.xlu1 %v2507_v3, %s5013_s12 }
 0x58d   : > { %v2505_v59 = vsel %vm375_vm1, %v2504_v20, %v2487_v49 }
 0x58e   : > { %2534 = vrot.lane.b32.xlu2 %v2505_v59, %s5013_s12 }
 0x594   : > { %2544 = vrot.lane.b32.xlu1 %v2455_v52, %s5013_s12 }
 0x596   : > { %2540 = vrot.lane.b32.xlu2 %v2453_v63, %s5013_s12 }
 0x59e   : > { %2546 = vrot.lane.b32.xlu2 %v2511_v30, %s5013_s12 }
 0x5e8   : > { %v2535_v56 = vpop.permute.xlu2 %2534 }
 0x5e9   : > { %2557 = vst.msk [vmem:[#allocation3 + $0x9] sm:$0xff] %vm353_vm3, %v2535_v56 }
 0x5ec   : > { %v2537_v10 = vpop.permute.xlu0 %2536 }
 0x5ed   : > { %2558 = vst.msk [vmem:[#allocation3 + $0x19] sm:$0xff] %vm353_vm3, %v2537_v10 }
 0x5ee   : > { %v2533_v13 = vpop.permute.xlu1 %2532 }
 0x5ef   : > { %2556 = vst.msk [vmem:[#allocation3 + $0x1] sm:$0xff] %vm353_vm3, %v2533_v13 }
 0x5f0   : > { %v2541_v2 = vpop.permute.xlu2 %2540  ;;  %v2566_v46 = vld [vmem:[#allocation3 + $0x10] sm:$0x3] }
 0x5f1   : > { %2560 = vst.msk [vmem:[#allocation3 + $0x31] sm:$0xff] %vm353_vm3, %v2541_v2  ;;  %v3837_v62 = vrot.slane %v2566_v46, 2  ;;  %v3197_v50 = vrot.slane %v2566_v46, 1 }
 0x5f4   : > { %v6383_v36 = vld [vmem:[#allocation3 + $0x18] sm:$0xff] }
 0x5f5   : > { %2772 = vrot.lane.b32.xlu1 %v6383_v36, %s5014_s21  ;;  %v3199_v59 = vrot.slane %v6383_v36, 1  ;;  %v3839_v13 = vrot.slane %v6383_v36, 2 }
 0x5f6   : > { %v6387_v38 = vld [vmem:[#allocation3 + $0x8] sm:$0xff]  ;;  %v6389_v28 = vld [vmem:[#allocation3] sm:$0xff] }
 0x5f7   : > { %2770 = vrot.lane.b32.xlu0 %v6387_v38, %s5014_s21  ;;  %2768 = vrot.lane.b32.xlu2 %v6389_v28, %s5014_s21  ;;  %v2578_v23 = vrot.slane %v6389_v28, 4  ;;  %v3835_v40 = vrot.slane %v6387_v38, 2  ;;  %v3834_v53 = vrot.slane %v6389_v28, 2  ;;  %v3195_v35 = vrot.slane %v6387_v38, 1 }
 0x5f8   : > { %v2547_v32 = vpop.permute.xlu2 %2546  ;;  %v6396_v48 = vld [vmem:[#allocation3 + $0x30] sm:$0xff]  ;;  %v3194_v9 = vrot.slane %v6389_v28, 1  ;;  %v2634_v60 = vrot.slane %v6387_v38, 4 }
 0x5f9   : > { %2563 = vst.msk [vmem:[#allocation3 + $0x51] sm:$0xff] %vm353_vm3, %v2547_v32  ;;  %v2576_v12 = vrot.slane %v6396_v48, 4  ;;  %v6403_v58 = vsel %vm1641_vm4, %v3835_v40, %v3837_v62  ;;  %v6406_v8 = vsel %vm1641_vm4, %v3834_v53, %v3835_v40  ;;  %v6414_v16 = vsel %vm375_vm1, %v6396_v48, %v2578_v23 }
 0x5fa   : > { %8246 = vst [vmem:[#allocation20_spill] sm:$0xff] %v6403_v58  ;;  %v3204_v44 = vrot.slane %v6396_v48, 1  ;;  %v6437_v47 = vsel %vm1000_vm5, %v3194_v9, %v3195_v35  ;;  %v6442_v49 = vsel %vm1000_vm5, %v3195_v35, %v3197_v50  ;;  %v3844_v1 = vrot.slane %v6396_v48, 2 }
 0x5fb   : > { %8247 = vst [vmem:[#allocation21_spill] sm:$0xff] %v6406_v8  ;;  %v6418_v4 = vsel %vm375_vm1, %v2576_v12, %v6389_v28  ;;  %v3224_v27 = vrot.slane %v6437_v47, 4  ;;  %v3280_v34 = vrot.slane %v6442_v49, 4  ;;  %v2590_v35 = vrot.slane %v6383_v36, 4 }
 0x5fc   : > { %v2583_v50 = vperm.slane %v6418_v4, %v5285_v57 }
 0x5fe   : > { %v2543_v39 = vpop.permute.xlu0 %2542  ;;  %v2539_v61 = vpop.permute.xlu1 %2538 }
 0x5ff   : > { %2561 = vst.msk [vmem:[#allocation3 + $0x39] sm:$0xff] %vm353_vm3, %v2543_v39  ;;  %2776 = vrot.lane.b32.xlu0 %v6396_v48, %s5014_s21 }
 0x600   : > { %2559 = vst.msk [vmem:[#allocation3 + $0x21] sm:$0xff] %vm353_vm3, %v2539_v61  ;;  %v6469_v29 = vld [vmem:[#allocation3 + $0x58] sm:$0x3] }
 0x601   : > { %v3212_v55 = vrot.slane %v6469_v29, 1 }
 0x606   : > { %v2545_v31 = vpop.permute.xlu1 %2544  ;;  %v6420_v21 = vld [vmem:[#allocation3 + $0x38] sm:$0xff]  ;;  %v6444_v14 = vld [vmem:[#allocation3 + $0x40] sm:$0x3] }
 0x607   : > { %2562 = vst.msk [vmem:[#allocation3 + $0x49] sm:$0xff] %vm353_vm3, %v2545_v31  ;;  %2778 = vrot.lane.b32.xlu1 %v6420_v21, %s5014_s21  ;;  %v6427_v26 = vld [vmem:[#allocation3 + $0x20] sm:$0xff]  ;;  %v3205_v33 = vrot.slane %v6420_v21, 1  ;;  %v6446_v6 = vld [vmem:[#allocation3 + $0x28] sm:$0x3]  ;;  %v3207_v54 = vrot.slane %v6444_v14, 1  ;;  %v2635_v41 = vsel %vm375_vm1, %v6420_v21, %v2634_v60  ;;  %v2587_v31 = vperm.slane %v6414_v16, %v5285_v57 }
 0x608   : > { %2774 = vrot.lane.b32.xlu2 %v6427_v26, %s5014_s21  ;;  %v3200_v17 = vrot.slane %v6427_v26, 1  ;;  %v3202_v7 = vrot.slane %v6446_v6, 1  ;;  %v3845_v5 = vrot.slane %v6420_v21, 2  ;;  %v3840_v63 = vrot.slane %v6427_v26, 2 }
 0x609   : > { %v6434_v18 = vsel %vm1000_vm5, %v3204_v44, %v3205_v33  ;;  %v6475_v3 = vsel %vm1000_vm5, %v3205_v33, %v3207_v54  ;;  %v2614_v60 = vrot.slane %v2587_v31, 4  ;;  %v2646_v16 = vrot.slane %v6427_v26, 4 }
 0x60a   : > { %v3222_v51 = vrot.slane %v6434_v18, 4  ;;  %v6467_v25 = vsel %vm375_vm1, %v6434_v18, %v3224_v27  ;;  %v3278_v37 = vrot.slane %v6475_v3, 4  ;;  %v6482_v22 = vsel %vm375_vm1, %v6475_v3, %v3280_v34 }
 0x60b   : > { %v6487_v52 = vsel %vm1000_vm5, %v3200_v17, %v3202_v7  ;;  %v6491_v0 = vsel %vm1000_vm5, %v3199_v59, %v3200_v17  ;;  %v6500_v56 = vsel %vm1641_vm4, %v3844_v1, %v3845_v5  ;;  %v6512_v23 = vsel %vm1641_vm4, %v3839_v13, %v3840_v63 }
 0x60c   : > { %v3223_v43 = vsel %vm375_vm1, %v3222_v51, %v6437_v47  ;;  %v6495_v30 = vsel %vm375_vm1, %v3278_v37, %v6442_v49  ;;  %8248 = vst [vmem:[#allocation22_spill] sm:$0xff] %v6500_v56  ;;  %v3292_v2 = vrot.slane %v6487_v52, 4  ;;  %v3236_v46 = vrot.slane %v6491_v0, 4 }
 0x60d   : > { %8249 = vst [vmem:[#allocation23_spill] sm:$0xff] %v6512_v23  ;;  %v3229_v54 = vperm.slane %v3223_v43, %v5285_v57  ;;  %v2602_v1 = vrot.slane %v2583_v50, 4 }
 0x60e   : > { %v6450_v11 = vld [vmem:[#allocation3 + $0x50] sm:$0xff]  ;;  %v6452_v42 = vld [vmem:[#allocation3 + $0x48] sm:$0xff] }
 0x60f   : > { %2984 = vrot.lane.b32.xlu1 %v6387_v38, %s5015_s23  ;;  %2782 = vrot.lane.b32.xlu0 %v6450_v11, %s5014_s21  ;;  %v3210_v20 = vrot.slane %v6450_v11, 1  ;;  %v3209_v32 = vrot.slane %v6452_v42, 1  ;;  %v2644_v9 = vrot.slane %v6450_v11, 4  ;;  %v2588_v44 = vrot.slane %v6452_v42, 4 }
 0x610   : > { %2780 = vrot.lane.b32.xlu2 %v6452_v42, %s5014_s21  ;;  %v2591_v33 = vsel %vm375_vm1, %v6452_v42, %v2590_v35  ;;  %v2647_v43 = vsel %vm375_vm1, %v6450_v11, %v2646_v16  ;;  %v3285_v16 = vperm.slane %v6495_v30, %v5285_v57 }
 0x611   : > { %v6503_v10 = vsel %vm1000_vm5, %v3210_v20, %v3212_v55  ;;  %v6522_v53 = vsel %vm1000_vm5, %v3209_v32, %v3210_v20  ;;  %v2599_v51 = vperm.slane %v2591_v33, %v5285_v57  ;;  %v2645_v4 = vsel %vm375_vm1, %v2644_v9, %v6427_v26 }
 0x612   : > { %v3290_v40 = vrot.slane %v6503_v10, 4  ;;  %v3293_v62 = vsel %vm375_vm1, %v6503_v10, %v3292_v2  ;;  %v3234_v12 = vrot.slane %v6522_v53, 4  ;;  %v3237_v39 = vsel %vm375_vm1, %v6522_v53, %v3236_v46 }
 0x613   : > { %v2651_v7 = vperm.slane %v2645_v4, %v5285_v57  ;;  %v2612_v34 = vrot.slane %v2599_v51, 4  ;;  %v2643_v20 = vperm.slane %v2635_v41, %v5285_v57  ;;  %v2589_v37 = vsel %vm375_vm1, %v2588_v44, %v6383_v36 }
 0x614   : > { %v3235_v61 = vsel %vm375_vm1, %v3234_v12, %v6491_v0  ;;  %v2655_v13 = vperm.slane %v2647_v43, %v5285_v57  ;;  %v2595_v32 = vperm.slane %v2589_v37, %v5285_v57  ;;  %v3248_v46 = vrot.slane %v3229_v54, 4 }
 0x615   : > { %v6567_v55 = vsel %vm375_vm1, %v2612_v34, %v2587_v31  ;;  %v2670_v2 = vrot.slane %v2643_v20, 4  ;;  %v3241_v41 = vperm.slane %v3235_v61, %v5285_v57  ;;  %v3301_v12 = vperm.slane %v3293_v62, %v5285_v57 }
 0x616   : > { %v2668_v31 = vrot.slane %v2655_v13, 4  ;;  %v3245_v35 = vperm.slane %v3237_v39, %v5285_v57  ;;  %v2600_v9 = vrot.slane %v2595_v32, 4  ;;  %v2656_v61 = vrot.slane %v2651_v7, 4 }
 0x617   : > { %2990 = vrot.lane.b32.xlu1 %v6396_v48, %s5015_s23  ;;  %2982 = vrot.lane.b32.xlu0 %v6389_v28, %s5015_s23  ;;  %v3291_v48 = vsel %vm375_vm1, %v3290_v40, %v6487_v52  ;;  %v2632_v28 = vrot.slane %v6420_v21, 4  ;;  %v3289_v62 = vperm.slane %v6482_v22, %v5285_v57  ;;  %v3246_v37 = vrot.slane %v3241_v41, 4 }
 0x618   : > { %2986 = vrot.lane.b32.xlu2 %v6383_v36, %s5015_s23  ;;  %v6580_v36 = vsel %vm375_vm1, %v2595_v32, %v2602_v1  ;;  %v3297_v44 = vperm.slane %v3291_v48, %v5285_v57  ;;  %v6585_v33 = vsel %vm375_vm1, %v2668_v31, %v2643_v20  ;;  %v6597_v39 = vsel %vm375_vm1, %v2600_v9, %v2583_v50 }
 0x619   : > { %v2633_v27 = vsel %vm375_vm1, %v2632_v28, %v6387_v38  ;;  %v6558_v38 = vsel %vm375_vm1, %v2599_v51, %v2614_v60  ;;  %v6577_v28 = vsel %vm375_vm1, %v2655_v13, %v2670_v2  ;;  %v6588_v51 = vsel %vm375_vm1, %v3241_v41, %v3248_v46 }
 0x61a   : > { %v2639_v17 = vperm.slane %v2633_v27, %v5285_v57  ;;  %v3233_v48 = vperm.slane %v6467_v25, %v5285_v57  ;;  %v3314_v27 = vrot.slane %v3301_v12, 4  ;;  %v3258_v4 = vrot.slane %v3245_v35, 4 }
 0x61b   : > { %v3316_v50 = vrot.slane %v3289_v62, 4  ;;  %v6633_v1 = vsel %vm375_vm1, %v3246_v37, %v3229_v54  ;;  %v3852_v54 = vrot.slane %v6469_v29, 2  ;;  %v2619_v2 = vperm.slane %v6567_v55, %v5353_v45 }
 0x61c   : > { %v2658_v59 = vrot.slane %v2639_v17, 4  ;;  %v6604_v60 = vsel %vm375_vm1, %v2656_v61, %v2639_v17  ;;  %v6609_v22 = vsel %vm375_vm1, %v3314_v27, %v3289_v62  ;;  %v3260_v34 = vrot.slane %v3233_v48, 4 }
 0x61d   : > { %v6612_v20 = vsel %vm375_vm1, %v3258_v4, %v3233_v48  ;;  %v6615_v25 = vsel %vm375_vm1, %v3301_v12, %v3316_v50  ;;  %v2611_v32 = vperm.slane %v6580_v36, %v5353_v45  ;;  %v6749_v31 = vperm.slane %v6597_v39, %v5353_v45 }
 0x61e   : > { %v6572_v40 = vsel %vm375_vm1, %v2651_v7, %v2658_v59  ;;  %v3302_v7 = vrot.slane %v3297_v44, 4  ;;  %v3304_v59 = vrot.slane %v3285_v16, 4  ;;  %v6618_v17 = vsel %vm375_vm1, %v3245_v35, %v3260_v34 }
 0x61f   : > { %2996 = vrot.lane.b32.xlu1 %v6450_v11, %s5015_s23  ;;  %2988 = vrot.lane.b32.xlu0 %v6427_v26, %s5015_s23  ;;  %v2626_v55 = vrot.slane %v2611_v32, 4  ;;  %v2675_v35 = vperm.slane %v6585_v33, %v5353_v45  ;;  %v2624_v61 = vrot.slane %v6749_v31, 4  ;;  %v2628_v4 = vrot.slane %v2619_v2, 4 }
 0x620   : > { %2992 = vrot.lane.b32.xlu2 %v6420_v21, %s5015_s23  ;;  %v6621_v43 = vsel %vm375_vm1, %v3302_v7, %v3285_v16  ;;  %v6628_v30 = vsel %vm375_vm1, %v3297_v44, %v3304_v59  ;;  %v3257_v59 = vperm.slane %v6588_v51, %v5353_v45 }
 0x621   : > { %v2627_v36 = vsel %vm375_vm1, 0.0, %v2626_v55  ;;  %v2684_v62 = vrot.slane %v2675_v35, 4  ;;  %v2625_v39 = vsel %vm375_vm1, 0.0, %v2624_v61  ;;  %v2629_v34 = vsel %vm375_vm1, 0.0, %v2628_v4 }
 0x623   : > { %v2685_v48 = vsel %vm375_vm1, 0.0, %v2684_v62 }
 0x627   : > { %3414 = vrot.lane.b32.xlu1 %v6442_v49, %s5014_s21  ;;  %2994 = vrot.lane.b32.xlu0 %v6452_v42, %s5015_s23 }
 0x628   : > { %3416 = vrot.lane.b32.xlu2 %v6491_v0, %s5014_s21 }
 0x62f   : > { %3420 = vrot.lane.b32.xlu1 %v6434_v18, %s5014_s21  ;;  %3412 = vrot.lane.b32.xlu0 %v6437_v47, %s5014_s21 }
 0x630   : > { %3422 = vrot.lane.b32.xlu2 %v6475_v3, %s5014_s21 }
 0x637   : > { %3426 = vrot.lane.b32.xlu1 %v6503_v10, %s5014_s21  ;;  %3418 = vrot.lane.b32.xlu0 %v6487_v52, %s5014_s21 }
 0x638   : > { %3622 = vrot.lane.b32.xlu2 %v6442_v49, %s5015_s23  ;;  %v3850_v49 = vrot.slane %v6450_v11, 2 }
 0x63f   : > { %3620 = vrot.lane.b32.xlu1 %v6437_v47, %s5015_s23  ;;  %3424 = vrot.lane.b32.xlu0 %v6522_v53, %s5014_s21  ;;  %v6656_v47 = vsel %vm1641_vm4, %v3850_v49, %v3852_v54 }
 0x640   : > { %3628 = vrot.lane.b32.xlu2 %v6434_v18, %s5015_s23  ;;  %8250 = vst [vmem:[#allocation24_spill] sm:$0xff] %v6656_v47  ;;  %v3842_v18 = vrot.slane %v6446_v6, 2  ;;  %v3930_v54 = vrot.slane %v6656_v47, 4 }
 0x642   : > { %v6669_v11 = vsel %vm1641_vm4, %v3840_v63, %v3842_v18 }
 0x643   : > { %8251 = vst [vmem:[#allocation25_spill] sm:$0xff] %v6669_v11 }
 0x647   : > { %3626 = vrot.lane.b32.xlu1 %v6487_v52, %s5015_s23  ;;  %3624 = vrot.lane.b32.xlu0 %v6491_v0, %s5015_s23  ;;  %v3849_v52 = vrot.slane %v6452_v42, 2  ;;  %v3847_v42 = vrot.slane %v6444_v14, 2  ;;  %v2623_v0 = vperm.slane %v6558_v38, %v5353_v45  ;;  %v2667_v38 = vperm.slane %v6572_v40, %v5353_v45 }
 0x648   : > { %3634 = vrot.lane.b32.xlu2 %v6503_v10, %s5015_s23  ;;  %v2679_v40 = vperm.slane %v6577_v28, %v5353_v45 }
 0x649   : > { %v6672_v29 = vsel %vm1641_vm4, %v3849_v52, %v3850_v49  ;;  %v6686_v26 = vsel %vm1641_vm4, %v3845_v5, %v3847_v42  ;;  %v2630_v7 = vrot.slane %v2623_v0, 4  ;;  %v6782_v49 = vperm.slane %v6604_v60, %v5353_v45 }
 0x64a   : > { %8252 = vst [vmem:[#allocation26_spill] sm:$0xff] %v6672_v29  ;;  %v3918_v50 = vrot.slane %v6686_v26, 4  ;;  %v2686_v4 = vrot.slane %v2679_v40, 4 }
 0x64b   : > { %8253 = vst [vmem:[#allocation27_spill] sm:$0xff] %v6686_v26  ;;  %v2631_v37 = vsel %vm375_vm1, 0.0, %v2630_v7  ;;  %v2680_v60 = vrot.slane %v6782_v49, 4  ;;  %v6817_v7 = vperm.slane %v6618_v17, %v5353_v45 }
 0x64c   : > { %v3919_v51 = vsel %vm375_vm1, %v3918_v50, %v6403_v58  ;;  %v2687_v50 = vsel %vm375_vm1, 0.0, %v2686_v4 }
 0x64d   : > { %v2681_v55 = vsel %vm375_vm1, 0.0, %v2680_v60  ;;  %v6838_v60 = vperm.slane %v6628_v30, %v5353_v45  ;;  %v3272_v30 = vrot.slane %v3257_v59, 4 }
 0x64f   : > { %3632 = vrot.lane.b32.xlu1 %v6522_v53, %s5015_s23  ;;  %3630 = vrot.lane.b32.xlu0 %v6475_v3, %s5015_s23 }
 0x650   : > { %4274 = vrot.lane.b32.xlu2 %v6656_v47, %s5015_s23 }
 0x651   : > { %v6680_v6 = vpop.permute.xlu2 %2768 }
 0x652   : > { %v2794_v4 = vrot.slane %v6680_v6, 4 }
 0x657   : > { %4060 = vrot.lane.b32.xlu1 %v6656_v47, %s5014_s21  ;;  %4052 = vrot.lane.b32.xlu0 %v6669_v11, %s5014_s21 }
 0x658   : > { %4058 = vrot.lane.b32.xlu2 %v6672_v29, %s5014_s21 }
 0x65f   : > { %4056 = vrot.lane.b32.xlu1 %v6686_v26, %s5014_s21  ;;  %4266 = vrot.lane.b32.xlu0 %v6669_v11, %s5015_s23 }
 0x660   : > { %4272 = vrot.lane.b32.xlu2 %v6672_v29, %s5015_s23 }
 0x662   : > { %v6694_v3 = vpop.permute.xlu2 %2774 }
 0x667   : > { %4270 = vrot.lane.b32.xlu1 %v6686_v26, %s5015_s23  ;;  %4048 = vrot.lane.b32.xlu0 %v6403_v58, %s5014_s21  ;;  %v6712_v5 = vpop.permute.xlu1 %2772 }
 0x668   : > { %4054 = vrot.lane.b32.xlu2 %v6500_v56, %s5014_s21 }
 0x669   : > { %v6704_v14 = vpop.permute.xlu0 %2770 }
 0x66a   : > { %v6702_v21 = vpop.permute.xlu2 %2780 }
 0x66f   : > { %4050 = vrot.lane.b32.xlu1 %v6512_v23, %s5014_s21  ;;  %4262 = vrot.lane.b32.xlu0 %v6403_v58, %s5015_s23 }
 0x670   : > { %4268 = vrot.lane.b32.xlu2 %v6500_v56, %s5015_s23 }
 0x671   : > { %v6723_v10 = vpop.permute.xlu0 %2776 }
 0x672   : > { %v6714_v63 = vpop.permute.xlu2 %2986 }
 0x677   : > { %4264 = vrot.lane.b32.xlu1 %v6512_v23, %s5015_s23  ;;  %4046 = vrot.lane.b32.xlu0 %v6406_v8, %s5014_s21 }
 0x678   : > { %2709 = vrot.lane.b32.xlu2 %v2623_v0, %s5019_s8  ;;  %v2682_v0 = vrot.slane %v2667_v38, 4 }
 0x679   : > { %v6725_v53 = vpop.permute.xlu1 %2778 }
 0x67a   : > { %v6727_v13 = vpop.permute.xlu2 %2992  ;;  %v2848_v19 = vrot.slane %v6725_v53, 4 }
 0x67f   : > { %4260 = vrot.lane.b32.xlu1 %v6406_v8, %s5015_s23  ;;  %2701 = vrot.lane.b32.xlu0 %v2619_v2, %s5020_s17  ;;  %v3931_v2 = vsel %vm375_vm1, %v3930_v54, %v6669_v11  ;;  %v2850_v8 = vrot.slane %v6704_v14, 4 }
 0x680   : > { %2721 = vrot.lane.b32.xlu2 %v2667_v38, %s5018_s29  ;;  %v3937_v61 = vperm.slane %v3931_v2, %v5285_v57 }
 0x681   : > { %v6739_v46 = vpop.permute.xlu0 %2782  ;;  %v6741_v41 = vpop.permute.xlu1 %2984 }
 0x682   : > { %v6743_v12 = vpop.permute.xlu2 %3416  ;;  %v2860_v47 = vrot.slane %v6739_v46, 4 }
 0x687   : > { %2737 = vrot.lane.b32.xlu0 %v2679_v40, %s5019_s8  ;;  %2693 = vrot.lane.b32.xlu1 %v2611_v32, %s5018_s29  ;;  %v3925_v32 = vperm.slane %v3919_v51, %v5285_v57 }
 0x688   : > { %2697 = vrot.lane.b32.xlu2 %v2627_v36, %s5022_s18  ;;  %v3321_v36 = vperm.slane %v6609_v22, %v5353_v45 }
 0x689   : > { %v6757_v9 = vpop.permute.xlu0 %2982  ;;  %v6759_v44 = vpop.permute.xlu1 %2990  ;;  %v3944_v38 = vrot.slane %v3925_v32, 4 }
 0x68a   : > { %v6761_v28 = vpop.permute.xlu2 %3422  ;;  %v3330_v24 = vrot.slane %v3321_v36, 4 }
 0x68b   : > { %v3945_v22 = vsel %vm375_vm1, %v3937_v61, %v3944_v38 }
 0x68c   : > { %v3331_v58 = vsel %vm375_vm1, 0.0, %v3330_v24  ;;  %v2849_v24 = vsel %vm375_vm1, %v2848_v19, %v6704_v14 }
 0x68f   : > { %2729 = vrot.lane.b32.xlu1 %v2675_v35, %s5020_s17  ;;  %2689 = vrot.lane.b32.xlu0 %v2625_v39, %s5023_s19  ;;  %v2683_v35 = vsel %vm375_vm1, 0.0, %v2682_v0 }
 0x690   : > { %2733 = vrot.lane.b32.xlu2 %v2685_v48, %s5021_s11 }
 0x691   : > { %v6769_v33 = vpop.permute.xlu0 %2988  ;;  %v6771_v27 = vpop.permute.xlu1 %2996 }
 0x692   : > { %v6773_v16 = vpop.permute.xlu2 %3622 }
 0x693   : > { %8254 = vst [vmem:[#allocation28_spill] sm:$0xff] %v6773_v16  ;;  %v3074_v16 = vrot.slane %v6771_v27, 4 }
 0x697   : > { %2705 = vrot.lane.b32.xlu1 %v2629_v34, %s5021_s11  ;;  %2713 = vrot.lane.b32.xlu0 %v2631_v37, %s5024_s15  ;;  %v6821_v34 = vperm.slane %v3945_v22, %v5353_v45  ;;  %v3265_v37 = vperm.slane %v6612_v20, %v5353_v45  ;;  %v6846_v20 = vperm.slane %v6621_v43, %v5353_v45 }
 0x698   : > { %3339 = vrot.lane.b32.xlu2 %v3257_v59, %s5018_s29  ;;  %v3325_v22 = vperm.slane %v6615_v25, %v5353_v45  ;;  %v6862_v43 = vperm.slane %v6633_v1, %v5353_v45  ;;  %v2806_v25 = vrot.slane %v6712_v5, 4 }
 0x699   : > { %v6788_v18 = vpop.permute.xlu0 %2994  ;;  %v6790_v52 = vpop.permute.xlu1 %3414  ;;  %8256 = vst [vmem:[#allocation30_spill] sm:$0xff] %v6821_v34  ;;  %v3274_v51 = vrot.slane %v3265_v37, 4  ;;  %v3326_v38 = vrot.slane %v6846_v20, 4 }
 0x69a   : > { %v6794_v42 = vpop.permute.xlu2 %3628  ;;  %8257 = vst [vmem:[#allocation31_spill] sm:$0xff] %v6846_v20 }
 0x69b   : > { %v3275_v0 = vsel %vm375_vm1, 0.0, %v3274_v51  ;;  %8259 = vst [vmem:[#allocation33_spill] sm:$0xff] %v6862_v43  ;;  %v3327_v59 = vsel %vm375_vm1, 0.0, %v3326_v38  ;;  %v3942_v51 = vrot.slane %v3937_v61, 4  ;;  %v3332_v38 = vrot.slane %v3325_v22, 4 }
 0x69d   : > { %v3943_v61 = vsel %vm375_vm1, %v3942_v51, %v3925_v32 }
 0x69f   : > { %2717 = vrot.lane.b32.xlu1 %v2681_v55, %s5023_s19  ;;  %2725 = vrot.lane.b32.xlu0 %v2683_v35, %s5022_s18 }
 0x6a0   : > { %3375 = vrot.lane.b32.xlu2 %v3321_v36, %s5020_s17  ;;  %v3333_v36 = vsel %vm375_vm1, 0.0, %v3332_v38  ;;  %v3276_v38 = vrot.slane %v6817_v7, 4 }
 0x6a1   : > { %v6808_v62 = vpop.permute.xlu0 %3412  ;;  %v6810_v39 = vpop.permute.xlu1 %3420 }
 0x6a2   : > { %v6812_v48 = vpop.permute.xlu2 %3634 }
 0x6a3   : > { %8255 = vst [vmem:[#allocation29_spill] sm:$0xff] %v6812_v48  ;;  %v3062_v48 = vrot.slane %v6727_v13, 4 }
 0x6a7   : > { %2741 = vrot.lane.b32.xlu1 %v2687_v50, %s5024_s15  ;;  %3355 = vrot.lane.b32.xlu0 %v6817_v7, %s5019_s8  ;;  %v3273_v50 = vsel %vm375_vm1, 0.0, %v3272_v30  ;;  %v2862_v7 = vrot.slane %v6694_v3, 4 }
 0x6a8   : > { %4007 = vrot.lane.b32.xlu2 %v6821_v34, %s5018_s29 }
 0x6a9   : > { %v6830_v40 = vpop.permute.xlu0 %3418  ;;  %v6832_v17 = vpop.permute.xlu1 %3426 }
 0x6aa   : > { %v6834_v54 = vpop.permute.xlu2 %4274 }
 0x6af   : > { %3347 = vrot.lane.b32.xlu1 %v3265_v37, %s5020_s17  ;;  %3367 = vrot.lane.b32.xlu0 %v6838_v60, %s5018_s29  ;;  %v2795_v37 = vsel %vm375_vm1, %v6723_v10, %v2794_v4  ;;  %v3270_v4 = vrot.slane %v6862_v43, 4 }
 0x6b0   : > { %3351 = vrot.lane.b32.xlu2 %v3275_v0, %s5021_s11  ;;  %v6876_v1 = vperm.slane %v2795_v37, %v5285_v57 }
 0x6b1   : > { %v6849_v2 = vpop.permute.xlu0 %3424  ;;  %v6851_v55 = vpop.permute.xlu1 %3620  ;;  %v3271_v37 = vsel %vm375_vm1, 0.0, %v3270_v4 }
 0x6b2   : > { %8258 = vst [vmem:[#allocation32_spill] sm:$0xff] %v6851_v55  ;;  %v6853_v35 = vpop.permute.xlu2 %4058  ;;  %v2830_v26 = vrot.slane %v6876_v1, 4 }
 0x6b7   : > { %3383 = vrot.lane.b32.xlu1 %v3325_v22, %s5019_s8  ;;  %3343 = vrot.lane.b32.xlu0 %v3273_v50, %s5022_s18  ;;  %v2792_v50 = vrot.slane %v6723_v10, 4  ;;  %v6894_v10 = vperm.slane %v3943_v61, %v5353_v45 }
 0x6b8   : > { %3363 = vrot.lane.b32.xlu2 %v3327_v59, %s5023_s19  ;;  %v2807_v59 = vsel %vm375_vm1, %v6702_v21, %v2806_v25 }
 0x6b9   : > { %v6871_v0 = vpop.permute.xlu0 %3624  ;;  %v6873_v30 = vpop.permute.xlu1 %3626  ;;  %8262 = vst [vmem:[#allocation36_spill] sm:$0xff] %v6894_v10  ;;  %v6897_v32 = vperm.slane %v2807_v59, %v5285_v57  ;;  %v2793_v22 = vsel %vm375_vm1, %v2792_v50, %v6680_v6  ;;  %v2861_v50 = vsel %vm375_vm1, %v2860_v47, %v6694_v3  ;;  %v3966_v19 = vrot.slane %v6894_v10, 4 }
 0x6ba   : > { %8260 = vst [vmem:[#allocation34_spill] sm:$0xff] %v6871_v0  ;;  %v6878_v15 = vpop.permute.xlu2 %4272  ;;  %v6915_v6 = vperm.slane %v2793_v22, %v5285_v57  ;;  %v6921_v59 = vperm.slane %v2849_v24, %v5285_v57  ;;  %v3277_v47 = vsel %vm375_vm1, 0.0, %v3276_v38  ;;  %v3018_v24 = vrot.slane %v6788_v18, 4 }
 0x6bb   : > { %8261 = vst [vmem:[#allocation35_spill] sm:$0xff] %v6873_v30  ;;  %v2831_v61 = vsel %vm375_vm1, %v6897_v32, %v2830_v26  ;;  %v3967_v11 = vsel %vm375_vm1, 0.0, %v3966_v19 }
 0x6bc   : > { %v2818_v22 = vrot.slane %v6915_v6, 4  ;;  %v2874_v3 = vrot.slane %v6921_v59, 4 }
 0x6bf   : > { %3335 = vrot.lane.b32.xlu1 %v3271_v37, %s5023_s19  ;;  %3379 = vrot.lane.b32.xlu0 %v3331_v58, %s5021_s11  ;;  %v2804_v58 = vrot.slane %v6702_v21, 4  ;;  %v3006_v21 = vrot.slane %v6759_v44, 4  ;;  %v6925_v37 = vperm.slane %v2831_v61, %v5353_v45  ;;  %v3646_v61 = vrot.slane %v6851_v55, 4 }
 0x6c0   : > { %3387 = vrot.lane.b32.xlu2 %v3333_v36, %s5024_s15  ;;  %v6931_v36 = vperm.slane %v2861_v50, %v5285_v57 }
 0x6c1   : > { %v6904_v51 = vpop.permute.xlu0 %3630  ;;  %v6906_v25 = vpop.permute.xlu1 %3632  ;;  %v2805_v26 = vsel %vm375_vm1, %v2804_v58, %v6712_v5  ;;  %v2863_v5 = vsel %vm375_vm1, %v6739_v46, %v2862_v7  ;;  %v3007_v38 = vsel %vm375_vm1, %v3006_v21, %v6757_v9  ;;  %v3076_v7 = vrot.slane %v6769_v33, 4 }
 0x6c2   : > { %8263 = vst [vmem:[#allocation37_spill] sm:$0xff] %v6904_v51  ;;  %v6909_v4 = vpop.permute.xlu2 %4054  ;;  %v6945_v58 = vperm.slane %v2805_v26, %v5285_v57  ;;  %v2875_v46 = vsel %vm375_vm1, %v6931_v36, %v2874_v3  ;;  %v3019_v21 = vsel %vm375_vm1, %v3018_v24, %v6714_v63  ;;  %v6967_v56 = vperm.slane %v3007_v38, %v5285_v57 }
 0x6c3   : > { %v3658_v3 = vrot.slane %v6871_v0, 4  ;;  %v6974_v23 = vperm.slane %v2875_v46, %v5353_v45  ;;  %v3020_v24 = vrot.slane %v6714_v63, 4  ;;  %v6980_v14 = vperm.slane %v3019_v21, %v5285_v57 }
 0x6c4   : > { %v2819_v26 = vsel %vm375_vm1, %v6945_v58, %v2818_v22  ;;  %v2851_v22 = vsel %vm375_vm1, %v6725_v53, %v2850_v8  ;;  %v3032_v8 = vrot.slane %v6967_v56, 4  ;;  %v2872_v51 = vrot.slane %v6931_v36, 4 }
 0x6c5   : > { %v6983_v38 = vperm.slane %v2819_v26, %v5353_v45  ;;  %v3659_v46 = vsel %vm375_vm1, %v6906_v25, %v3658_v3  ;;  %v3021_v63 = vsel %vm375_vm1, %v6788_v18, %v3020_v24 }
 0x6c6   : > { %v3029_v20 = vperm.slane %v3021_v63, %v5285_v57 }
 0x6c7   : > { %3359 = vrot.lane.b32.xlu1 %v3277_v47, %s5024_s15  ;;  %2925 = vrot.lane.b32.xlu0 %v6925_v37, %s5019_s8  ;;  %v3328_v47 = vrot.slane %v6838_v60, 4  ;;  %v3647_v60 = vsel %vm375_vm1, %v6794_v42, %v3646_v61  ;;  %v2828_v61 = vrot.slane %v6897_v32, 4  ;;  %v2859_v32 = vperm.slane %v2851_v22, %v5285_v57 }
 0x6c8   : > { %4003 = vrot.lane.b32.xlu2 %v3967_v11, %s5023_s19  ;;  %v2871_v11 = vperm.slane %v2863_v5, %v5285_v57  ;;  %v6997_v53 = vperm.slane %v3647_v60, %v5285_v57  ;;  %v7012_v60 = vperm.slane %v3659_v46, %v5285_v57  ;;  %v3033_v22 = vsel %vm375_vm1, %v6980_v14, %v3032_v8 }
 0x6c9   : > { %v6950_v50 = vpop.permute.xlu0 %4052  ;;  %v6952_v19 = vpop.permute.xlu1 %4060  ;;  %v3329_v5 = vsel %vm375_vm1, 0.0, %v3328_v47  ;;  %v3077_v47 = vsel %vm375_vm1, %v6771_v27, %v3076_v7  ;;  %v3064_v7 = vrot.slane %v6741_v41, 4  ;;  %v2829_v3 = vsel %vm375_vm1, %v2828_v61, %v6876_v1 }
 0x6ca   : > { %8264 = vst [vmem:[#allocation38_spill] sm:$0xff] %v6950_v50  ;;  %v6955_v34 = vpop.permute.xlu2 %4268  ;;  %v2884_v29 = vrot.slane %v2871_v11, 4  ;;  %v3085_v18 = vperm.slane %v3077_v47, %v5285_v57  ;;  %v3682_v10 = vrot.slane %v6997_v53, 4  ;;  %v7027_v61 = vperm.slane %v3033_v22, %v5353_v45 }
 0x6cb   : > { %8265 = vst [vmem:[#allocation39_spill] sm:$0xff] %v6952_v19  ;;  %v3065_v1 = vsel %vm375_vm1, %v6727_v13, %v3064_v7  ;;  %v3042_v63 = vrot.slane %v3029_v20, 4  ;;  %v2886_v7 = vrot.slane %v2859_v32, 4 }
 0x6cc   : > { %v2885_v43 = vsel %vm375_vm1, %v2884_v29, %v2859_v32  ;;  %v3098_v46 = vrot.slane %v3085_v18, 4  ;;  %v7036_v29 = vsel %vm375_vm1, %v7012_v60, %v3682_v10 }
 0x6cd   : > { %v7032_v8 = vperm.slane %v2885_v43, %v5353_v45  ;;  %8266 = vst [vmem:[#allocation40_spill] sm:$0xff] %v7036_v29  ;;  %v2887_v22 = vsel %vm375_vm1, %v2871_v11, %v2886_v7 }
 0x6ce   : > { %v7056_v32 = vperm.slane %v2887_v22, %v5353_v45  ;;  %v2842_v22 = vrot.slane %v6983_v38, 4 }
 0x6cf   : > { %3371 = vrot.lane.b32.xlu1 %v3329_v5, %s5022_s18  ;;  %2937 = vrot.lane.b32.xlu0 %v6974_v23, %s5018_s29  ;;  %v3008_v5 = vrot.slane %v6757_v9, 4  ;;  %v7024_v9 = vperm.slane %v2829_v3, %v5353_v45  ;;  %v3073_v3 = vperm.slane %v3065_v1, %v5285_v57 }
 0x6d0   : > { %2909 = vrot.lane.b32.xlu2 %v6983_v38, %s5018_s29  ;;  %v2843_v38 = vsel %vm375_vm1, 0.0, %v2842_v22  ;;  %v2873_v22 = vsel %vm375_vm1, %v2872_v51, %v6921_v59 }
 0x6d1   : > { %v7003_v21 = vpop.permute.xlu0 %4266  ;;  %v7005_v26 = vpop.permute.xlu1 %4056  ;;  %v3009_v47 = vsel %vm375_vm1, %v6759_v44, %v3008_v5  ;;  %v3099_v29 = vsel %vm375_vm1, %v3098_v46, %v3073_v3  ;;  %v3063_v46 = vsel %vm375_vm1, %v3062_v48, %v6741_v41 }
 0x6d2   : > { %v7014_v24 = vpop.permute.xlu2 %2709  ;;  %v3017_v44 = vperm.slane %v3009_v47, %v5285_v57  ;;  %v7059_v1 = vperm.slane %v3099_v29, %v5353_v45  ;;  %v3100_v29 = vrot.slane %v3073_v3, 4  ;;  %v3069_v41 = vperm.slane %v3063_v46, %v5285_v57 }
 0x6d3   : > { %v4296_v46 = vrot.slane %v6878_v15, 4 }
 0x6d4   : > { %v3043_v30 = vsel %vm375_vm1, %v3042_v63, %v3017_v44  ;;  %v3044_v11 = vrot.slane %v3017_v44, 4  ;;  %v3075_v44 = vsel %vm375_vm1, %v3074_v16, %v6769_v33  ;;  %v3101_v0 = vsel %vm375_vm1, %v3085_v18, %v3100_v29 }
 0x6d5   : > { %v7062_v47 = vperm.slane %v3043_v30, %v5353_v45  ;;  %v3081_v55 = vperm.slane %v3075_v44, %v5285_v57  ;;  %v2816_v33 = vrot.slane %v6945_v58, 4  ;;  %v4140_v16 = vrot.slane %v6950_v50, 4 }
 0x6d6   : > { %v3045_v7 = vsel %vm375_vm1, %v3029_v20, %v3044_v11  ;;  %v7095_v20 = vperm.slane %v3101_v0, %v5353_v45  ;;  %v3088_v18 = vrot.slane %v3069_v41, 4 }
 0x6d7   : > { %2917 = vrot.lane.b32.xlu1 %v7024_v9, %s5020_s17  ;;  %3123 = vrot.lane.b32.xlu0 %v7027_v61, %s5018_s29  ;;  %v7090_v3 = vperm.slane %v3045_v7, %v5353_v45  ;;  %v2817_v58 = vsel %vm375_vm1, %v2816_v33, %v6915_v6  ;;  %v4141_v44 = vsel %vm375_vm1, %v6952_v19, %v4140_v16  ;;  %v3086_v16 = vrot.slane %v3081_v55, 4 }
 0x6d8   : > { %2945 = vrot.lane.b32.xlu2 %v7032_v8, %s5020_s17  ;;  %v3089_v7 = vsel %vm375_vm1, %v3081_v55, %v3088_v18  ;;  %v7132_v18 = vperm.slane %v2817_v58, %v5353_v45  ;;  %v7135_v51 = vperm.slane %v4141_v44, %v5285_v57  ;;  %v4284_v58 = vrot.slane %v6955_v34, 4 }
 0x6d9   : > { %v7046_v43 = vpop.permute.xlu0 %4048  ;;  %v7048_v5 = vpop.permute.xlu1 %4270  ;;  %v7126_v50 = vperm.slane %v3089_v7, %v5353_v45  ;;  %v3087_v19 = vsel %vm375_vm1, %v3086_v16, %v3069_v41 }
 0x6da   : > { %v7050_v10 = vpop.permute.xlu2 %2721  ;;  %v4128_v30 = vrot.slane %v7046_v43, 4  ;;  %8270 = vst [vmem:[#allocation44_spill] sm:$0xff] %v7132_v18 }
 0x6db   : > { %8271 = vst [vmem:[#allocation45_spill] sm:$0xff] %v7135_v51 }
 0x6dc   : > { %v4129_v48 = vsel %vm375_vm1, %v7005_v26, %v4128_v30  ;;  %v2900_v30 = vrot.slane %v7032_v8, 4  ;;  %v7129_v8 = vperm.slane %v2873_v22, %v5353_v45 }
 0x6dd   : > { %v7104_v11 = vperm.slane %v4129_v48, %v5285_v57  ;;  %v2844_v48 = vrot.slane %v7024_v9, 4 }
 0x6de   : > { %8269 = vst [vmem:[#allocation43_spill] sm:$0xff] %v7129_v8  ;;  %v2901_v9 = vsel %vm375_vm1, 0.0, %v2900_v30  ;;  %v2896_v44 = vrot.slane %v7129_v8, 4 }
 0x6df   : > { %2953 = vrot.lane.b32.xlu1 %v7056_v32, %s5019_s8  ;;  %3159 = vrot.lane.b32.xlu0 %v7059_v1, %s5020_s17  ;;  %8268 = vst [vmem:[#allocation42_spill] sm:$0xff] %v7104_v11 }
 0x6e0   : > { %3131 = vrot.lane.b32.xlu2 %v7062_v47, %s5020_s17 }
 0x6e1   : > { %v7075_v63 = vpop.permute.xlu0 %4262  ;;  %v7077_v13 = vpop.permute.xlu1 %4050 }
 0x6e2   : > { %8267 = vst [vmem:[#allocation41_spill] sm:$0xff] %v7077_v13  ;;  %v7079_v27 = vpop.permute.xlu2 %2697  ;;  %v4084_v6 = vrot.slane %v7077_v13, 4 }
 0x6e4   : > { %v4085_v7 = vsel %vm375_vm1, %v6853_v35, %v4084_v6 }
 0x6e7   : > { %3139 = vrot.lane.b32.xlu1 %v7090_v3, %s5019_s8  ;;  %2913 = vrot.lane.b32.xlu0 %v2843_v38, %s5022_s18  ;;  %v4164_v38 = vrot.slane %v7104_v11, 4 }
 0x6e8   : > { %3167 = vrot.lane.b32.xlu2 %v7095_v20, %s5019_s8 }
 0x6e9   : > { %v7108_v0 = vpop.permute.xlu0 %4046  ;;  %v4265_v36 = vpop.permute.xlu1 %4264  ;;  %v7150_v30 = vsel %vm375_vm1, %v7135_v51, %v4164_v38  ;;  %v4093_v38 = vperm.slane %v4085_v7, %v5285_v57  ;;  %v7174_v7 = vperm.slane %v3087_v19, %v5353_v45 }
 0x6ea   : > { %v7113_v29 = vpop.permute.xlu2 %2733  ;;  %v4297_v33 = vsel %vm375_vm1, %v4296_v46, %v4265_v36  ;;  %v4072_v59 = vrot.slane %v7108_v0, 4  ;;  %v2845_v46 = vsel %vm375_vm1, 0.0, %v2844_v48  ;;  %8272 = vst [vmem:[#allocation46_spill] sm:$0xff] %v7150_v30  ;;  %v2840_v48 = vrot.slane %v7132_v18, 4 }
 0x6eb   : > { %v4303_v11 = vperm.slane %v4297_v33, %v5285_v57  ;;  %v4298_v8 = vrot.slane %v4265_v36, 4 }
 0x6ec   : > { %v4073_v33 = vsel %vm375_vm1, %v6909_v4, %v4072_v59 }
 0x6ed   : > { %v4308_v30 = vrot.slane %v4303_v11, 4  ;;  %v4081_v59 = vperm.slane %v4073_v33, %v5285_v57  ;;  %v3110_v33 = vrot.slane %v7174_v7, 4 }
 0x6ef   : > { %2949 = vrot.lane.b32.xlu0 %v2901_v9, %s5021_s11  ;;  %3151 = vrot.lane.b32.xlu1 %v7126_v50, %s5018_s29 }
 0x6f0   : > { %2921 = vrot.lane.b32.xlu2 %v2845_v46, %s5021_s11  ;;  %v3058_v46 = vrot.slane %v7062_v47, 4  ;;  %v2841_v47 = vsel %vm375_vm1, 0.0, %v2840_v48  ;;  %v2846_v48 = vrot.slane %v6925_v37, 4  ;;  %v3111_v37 = vsel %vm375_vm1, 0.0, %v3110_v33 }
 0x6f1   : > { %v7152_v55 = vpop.permute.xlu0 %2701  ;;  %v4261_v22 = vpop.permute.xlu1 %4260  ;;  %v3116_v33 = vrot.slane %v7095_v20, 4 }
 0x6f2   : > { %v7158_v9 = vpop.permute.xlu2 %3339  ;;  %v4285_v6 = vsel %vm375_vm1, %v4284_v58, %v4261_v22  ;;  %v4286_v13 = vrot.slane %v4261_v22, 4  ;;  %v3059_v58 = vsel %vm375_vm1, 0.0, %v3058_v46  ;;  %v4106_v22 = vrot.slane %v4093_v38, 4 }
 0x6f3   : > { %8273 = vst [vmem:[#allocation47_spill] sm:$0xff] %v7158_v9  ;;  %v4291_v51 = vperm.slane %v4285_v6, %v5285_v57  ;;  %v2897_v6 = vsel %vm375_vm1, 0.0, %v2896_v44 }
 0x6f4   : > { %v4287_v18 = vsel %vm375_vm1, %v6955_v34, %v4286_v13  ;;  %v3030_v34 = vrot.slane %v6980_v14, 4  ;;  %v4299_v13 = vsel %vm375_vm1, %v6878_v15, %v4298_v8  ;;  %v7186_v19 = vsel %vm375_vm1, %v4106_v22, %v4081_v59 }
 0x6f5   : > { %v7169_v9 = vsel %vm375_vm1, %v4308_v30, %v4291_v51  ;;  %v4310_v41 = vrot.slane %v4291_v51, 4  ;;  %v4108_v30 = vrot.slane %v4081_v59, 4  ;;  %v4307_v14 = vperm.slane %v4299_v13, %v5285_v57 }
 0x6f6   : > { %v2902_v15 = vrot.slane %v7056_v32, 4  ;;  %v3031_v8 = vsel %vm375_vm1, %v3030_v34, %v6967_v56  ;;  %v3436_v51 = vrot.slane %v6810_v39, 4  ;;  %v4295_v46 = vperm.slane %v4287_v18, %v5285_v57 }
 0x6f7   : > { %3135 = vrot.lane.b32.xlu0 %v3059_v58, %s5021_s11  ;;  %2905 = vrot.lane.b32.xlu1 %v2841_v47, %s5023_s19  ;;  %v7199_v58 = vsel %vm375_vm1, %v4303_v11, %v4310_v41  ;;  %v2847_v59 = vsel %vm375_vm1, 0.0, %v2846_v48  ;;  %v7204_v47 = vsel %vm375_vm1, %v4093_v38, %v4108_v30  ;;  %v3448_v22 = vrot.slane %v6849_v2, 4 }
 0x6f8   : > { %2933 = vrot.lane.b32.xlu2 %v2897_v6, %s5023_s19  ;;  %8274 = vst [vmem:[#allocation48_spill] sm:$0xff] %v7204_v47  ;;  %v4320_v32 = vrot.slane %v4307_v14, 4  ;;  %v2903_v6 = vsel %vm375_vm1, 0.0, %v2902_v15  ;;  %v7211_v56 = vperm.slane %v3031_v8, %v5353_v45  ;;  %v3437_v11 = vsel %vm375_vm1, %v3436_v51, %v6808_v62 }
 0x6f9   : > { %v7183_v36 = vpop.permute.xlu0 %2737  ;;  %v2694_v16 = vpop.permute.xlu1 %2693  ;;  %v2898_v34 = vrot.slane %v6974_v23, 4  ;;  %v4322_v41 = vrot.slane %v4295_v46, 4  ;;  %v3506_v15 = vrot.slane %v6830_v40, 4  ;;  %v3449_v8 = vsel %vm375_vm1, %v3448_v22, %v6743_v12 }
 0x6fa   : > { %v7188_v44 = vpop.permute.xlu2 %3375  ;;  %v7220_v13 = vsel %vm375_vm1, %v4320_v32, %v4295_v46  ;;  %v3054_v23 = vrot.slane %v7211_v56, 4 }
 0x6fb   : > { %8275 = vst [vmem:[#allocation49_spill] sm:$0xff] %v7220_v13  ;;  %v2899_v46 = vsel %vm375_vm1, 0.0, %v2898_v34  ;;  %v7243_v32 = vsel %vm375_vm1, %v4307_v14, %v4322_v41 }
 0x6fc   : > { %8276 = vst [vmem:[#allocation50_spill] sm:$0xff] %v7243_v32  ;;  %v3055_v22 = vsel %vm375_vm1, 0.0, %v3054_v23  ;;  %v8289_v32 = vld [vmem:[#allocation47_spill] sm:$0xff] }
 0x6ff   : > { %2929 = vrot.lane.b32.xlu1 %v2847_v59, %s5024_s15  ;;  %3147 = vrot.lane.b32.xlu0 %v3111_v37, %s5023_s19  ;;  %v7233_v59 = vperm.slane %v3437_v11, %v5285_v57  ;;  %v7237_v37 = vperm.slane %v3449_v8, %v5285_v57  ;;  %v3494_v11 = vrot.slane %v6790_v52, 4 }
 0x700   : > { %2957 = vrot.lane.b32.xlu2 %v2903_v6, %s5024_s15 }
 0x701   : > { %v2690_v18 = vpop.permute.xlu0 %2689  ;;  %v7216_v38 = vpop.permute.xlu1 %2729  ;;  %v3462_v6 = vrot.slane %v7233_v59, 4  ;;  %v3495_v23 = vsel %vm375_vm1, %v6761_v28, %v3494_v11 }
 0x702   : > { %v7222_v30 = vpop.permute.xlu2 %4007  ;;  %v2744_v48 = vsel %vm543_vm6, %v6749_v31, %v2690_v18  ;;  %v3117_v31 = vsel %vm375_vm1, 0.0, %v3116_v33  ;;  %v3056_v33 = vrot.slane %v7027_v61, 4  ;;  %v3450_v61 = vrot.slane %v6743_v12, 4 }
 0x703   : > { %v2745_v51 = vsel %vm545_vm7, %v2744_v48, %v2694_v16  ;;  %v3507_v16 = vsel %vm375_vm1, %v6832_v17, %v3506_v15  ;;  %v3463_v15 = vsel %vm375_vm1, %v7237_v37, %v3462_v6 }
 0x704   : > { %v2746_v20 = vsel %vm547_vm8, %v2745_v51, %v7079_v27  ;;  %v7256_v34 = vperm.slane %v3507_v16, %v5285_v57  ;;  %v3060_v51 = vrot.slane %v7090_v3, 4  ;;  %v3057_v16 = vsel %vm375_vm1, 0.0, %v3056_v33 }
 0x705   : > { %v2747_v27 = vsel %vm549_vm9, %v2746_v20, %v7152_v55  ;;  %v7282_v3 = vperm.slane %v3495_v23, %v5285_v57  ;;  %v3112_v33 = vrot.slane %v7126_v50, 4  ;;  %v3504_v23 = vrot.slane %v6832_v17, 4 }
 0x706   : > { %v3528_v20 = vrot.slane %v7256_v34, 4 }
 0x707   : > { %2941 = vrot.lane.b32.xlu1 %v2899_v46, %s5022_s18  ;;  %3171 = vrot.lane.b32.xlu0 %v3117_v31, %s5024_s15  ;;  %v3438_v46 = vrot.slane %v6808_v62, 4  ;;  %v7272_v31 = vperm.slane %v3463_v15, %v5353_v45  ;;  %v3451_v62 = vsel %vm375_vm1, %v6849_v2, %v3450_v61 }
 0x708   : > { %3119 = vrot.lane.b32.xlu2 %v3055_v22, %s5023_s19 }
 0x709   : > { %v2714_v18 = vpop.permute.xlu0 %2713  ;;  %v2706_v14 = vpop.permute.xlu1 %2705  ;;  %v3439_v12 = vsel %vm375_vm1, %v6810_v39, %v3438_v46 }
 0x70a   : > { %v7258_v41 = vpop.permute.xlu2 %3351  ;;  %v2748_v48 = vsel %vm551_vm10, %v2747_v27, %v2706_v14  ;;  %v3114_v27 = vrot.slane %v7059_v1, 4  ;;  %v3529_v14 = vsel %vm375_vm1, %v3528_v20, %v7282_v3  ;;  %v3447_v39 = vperm.slane %v3439_v12, %v5285_v57 }
 0x70b   : > { %v2749_v8 = vsel %vm553_vm11, %v2748_v48, %v7014_v24  ;;  %v3061_v24 = vsel %vm375_vm1, 0.0, %v3060_v51  ;;  %v3459_v48 = vperm.slane %v3451_v62, %v5285_v57  ;;  %v3492_v51 = vrot.slane %v6761_v28, 4 }
 0x70c   : > { %v2750_v55 = vsel %vm555_vm12, %v2749_v8, %v2714_v18  ;;  %v4340_v8 = vrot.slane %v7048_v5, 4  ;;  %v3113_v20 = vsel %vm375_vm1, 0.0, %v3112_v33  ;;  %v3474_v28 = vrot.slane %v3447_v39, 4 }
 0x70d   : > { %2758 = vst [vmem:[#allocation4 + $0x30] sm:$0xf] %v2750_v55  ;;  %v3680_v55 = vrot.slane %v7012_v60, 4  ;;  %v3472_v46 = vrot.slane %v3459_v48, 4  ;;  %v3493_v60 = vsel %vm375_vm1, %v3492_v51, %v6790_v52  ;;  %v4352_v52 = vrot.slane %v6834_v54, 4 }
 0x70e   : > { %v4341_v61 = vsel %vm375_vm1, %v4340_v8, %v7075_v63  ;;  %v3475_v12 = vsel %vm375_vm1, %v3459_v48, %v3474_v28  ;;  %v8279_v28 = vld [vmem:[#allocation37_spill] sm:$0xff] }
 0x70f   : > { %3127 = vrot.lane.b32.xlu1 %v3057_v16, %s5022_s18  ;;  %3553 = vrot.lane.b32.xlu0 %v7272_v31, %s5018_s29  ;;  %v7328_v16 = vperm.slane %v4341_v61, %v5285_v57  ;;  %v7347_v48 = vperm.slane %v3475_v12, %v5353_v45 }
 0x710   : > { %3143 = vrot.lane.b32.xlu2 %v3061_v24, %s5024_s15 }
 0x711   : > { %v2726_v22 = vpop.permute.xlu0 %2725  ;;  %v2718_v6 = vpop.permute.xlu1 %2717  ;;  %v4366_v33 = vrot.slane %v7328_v16, 4 }
 0x712   : > { %v7289_v11 = vpop.permute.xlu2 %3363  ;;  %v2751_v18 = vsel %vm543_vm6, %v6782_v49, %v2718_v6  ;;  %v7304_v49 = vperm.slane %v3529_v14, %v5353_v45  ;;  %v3505_v6 = vsel %vm375_vm1, %v3504_v23, %v6830_v40  ;;  %v4353_v14 = vsel %vm375_vm1, %v4352_v52, %v7003_v21  ;;  %v8278_v23 = vld [vmem:[#allocation39_spill] sm:$0xff] }
 0x713   : > { %v2752_v2 = vsel %vm545_vm7, %v2751_v18, %v7050_v10  ;;  %v3115_v10 = vsel %vm375_vm1, 0.0, %v3114_v27  ;;  %v7341_v18 = vperm.slane %v3493_v60, %v5285_v57  ;;  %v4070_v27 = vrot.slane %v6909_v4, 4  ;;  %v8280_v60 = vld [vmem:[#allocation34_spill] sm:$0xff] }
 0x714   : > { %v2753_v15 = vsel %vm547_vm8, %v2752_v2, %v2726_v22  ;;  %v3681_v22 = vsel %vm375_vm1, %v3680_v55, %v6997_v53  ;;  %v7353_v2 = vperm.slane %v3505_v6, %v5285_v57  ;;  %v4126_v40 = vrot.slane %v7005_v26, 4 }
 0x715   : > { %v2754_v1 = vsel %vm549_vm9, %v2753_v15, %v7216_v38  ;;  %v7350_v53 = vperm.slane %v3681_v22, %v5353_v45  ;;  %v3644_v4 = vrot.slane %v6794_v42, 4  ;;  %v3656_v15 = vrot.slane %v6906_v25, 4  ;;  %v8281_v22 = vld [vmem:[#allocation41_spill] sm:$0xff] }
 0x716   : > { %v2755_v50 = vsel %vm551_vm10, %v2754_v1, %v7113_v29  ;;  %v4071_v8 = vsel %vm375_vm1, %v4070_v27, %v7108_v0  ;;  %v3518_v26 = vrot.slane %v7341_v18, 4  ;;  %v7370_v1 = vperm.slane %v4353_v14, %v5285_v57  ;;  %v8277_v0 = vld [vmem:[#allocation32_spill] sm:$0xff]  ;;  %v8282_v14 = vld [vmem:[#allocation38_spill] sm:$0xff] }
 0x717   : > { %3163 = vrot.lane.b32.xlu1 %v3115_v10, %s5021_s11  ;;  %3589 = vrot.lane.b32.xlu0 %v7304_v49, %s5020_s17  ;;  %v2756_v17 = vsel %vm553_vm11, %v2755_v50, %v7183_v36  ;;  %v3473_v36 = vsel %vm375_vm1, %v3472_v46, %v3447_v39  ;;  %v4127_v51 = vsel %vm375_vm1, %v4126_v40, %v7046_v43  ;;  %v3530_v42 = vrot.slane %v7282_v3, 4 }
 0x718   : > { %3155 = vrot.lane.b32.xlu2 %v3113_v20, %s5022_s18  ;;  %v7358_v39 = vperm.slane %v3473_v36, %v5353_v45  ;;  %v4082_v25 = vrot.slane %v6853_v35, 4  ;;  %v3645_v55 = vsel %vm375_vm1, %v3644_v4, %v8277_v0  ;;  %v4138_v46 = vrot.slane %v8278_v23, 4  ;;  %v8283_v4 = vld [vmem:[#allocation28_spill] sm:$0xff] }
 0x719   : > { %v7323_v29 = vpop.permute.xlu0 %3355  ;;  %v2742_v38 = vpop.permute.xlu1 %2741  ;;  %v7384_v61 = vperm.slane %v4071_v8, %v5285_v57  ;;  %v3519_v43 = vsel %vm375_vm1, %v7353_v2, %v3518_v26  ;;  %v4367_v3 = vsel %vm375_vm1, %v7370_v1, %v4366_v33  ;;  %v3700_v35 = vrot.slane %v8279_v28, 4 }
 0x71a   : > { %v7330_v24 = vpop.permute.xlu2 %3387  ;;  %v2757_v62 = vsel %vm555_vm12, %v2756_v17, %v2742_v38  ;;  %v3657_v17 = vsel %vm375_vm1, %v3656_v15, %v8280_v60  ;;  %v7394_v38 = vperm.slane %v4127_v51, %v5285_v57  ;;  %v7399_v12 = vperm.slane %v3645_v55, %v5285_v57 }
 0x71b   : > { %2759 = vst [vmem:[#allocation4] sm:$0xf] %v2757_v62  ;;  %v3531_v62 = vsel %vm375_vm1, %v7256_v34, %v3530_v42  ;;  %v4083_v52 = vsel %vm375_vm1, %v4082_v25, %v8281_v22  ;;  %v7404_v6 = vperm.slane %v3519_v43, %v5353_v45  ;;  %v7407_v36 = vperm.slane %v4367_v3, %v5353_v45  ;;  %v8284_v3 = vld [vmem:[#allocation29_spill] sm:$0xff]  ;;  %v8286_v22 = vld [vmem:[#allocation36_spill] sm:$0xff] }
 0x71c   : > { %v7410_v27 = vperm.slane %v3657_v17, %v5285_v57  ;;  %v4139_v40 = vsel %vm375_vm1, %v4138_v46, %v8282_v14  ;;  %v4096_v34 = vrot.slane %v7384_v61, 4  ;;  %v7416_v33 = vperm.slane %v3531_v62, %v5353_v45  ;;  %v8285_v17 = vld [vmem:[#allocation35_spill] sm:$0xff] }
 0x71d   : > { %v3701_v15 = vsel %vm375_vm1, %v3700_v35, %v8283_v4  ;;  %v4152_v8 = vrot.slane %v7394_v38, 4  ;;  %v3670_v26 = vrot.slane %v7399_v12, 4  ;;  %v7427_v51 = vperm.slane %v4083_v52, %v5285_v57 }
 0x71e   : > { %v7432_v42 = vperm.slane %v4139_v40, %v5285_v57  ;;  %v7437_v55 = vperm.slane %v3701_v15, %v5285_v57  ;;  %v3712_v35 = vrot.slane %v8284_v3, 4 }
 0x71f   : > { %3569 = vrot.lane.b32.xlu1 %v7347_v48, %s5019_s8  ;;  %3769 = vrot.lane.b32.xlu0 %v7350_v53, %s5020_s17  ;;  %v3671_v46 = vsel %vm375_vm1, %v7410_v27, %v3670_v26  ;;  %v4097_v43 = vsel %vm375_vm1, %v7427_v51, %v4096_v34  ;;  %v3516_v26 = vrot.slane %v7353_v2, 4 }
 0x720   : > { %3561 = vrot.lane.b32.xlu2 %v7358_v39, %s5020_s17  ;;  %v4153_v60 = vsel %vm375_vm1, %v7432_v42, %v4152_v8  ;;  %v3713_v62 = vsel %vm375_vm1, %v3712_v35, %v8285_v17  ;;  %v7453_v14 = vperm.slane %v3671_v46, %v5353_v45  ;;  %v7456_v40 = vperm.slane %v4097_v43, %v5353_v45 }
 0x721   : > { %v7380_v10 = vpop.permute.xlu0 %3367  ;;  %v3348_v50 = vpop.permute.xlu1 %3347  ;;  %v3726_v15 = vrot.slane %v7437_v55, 4  ;;  %v7460_v34 = vperm.slane %v4153_v60, %v5353_v45  ;;  %v7469_v8 = vperm.slane %v3713_v62, %v5285_v57  ;;  %v8288_v60 = vld [vmem:[#allocation33_spill] sm:$0xff]  ;;  %v3488_v62 = vrot.slane %v7358_v39, 4 }
 0x722   : > { %v4004_v20 = vpop.permute.xlu2 %4003  ;;  %v3517_v13 = vsel %vm375_vm1, %v3516_v26, %v7341_v18  ;;  %v7498_v39 = vperm.slane %v7199_v58, %v5353_v45 }
 0x723   : > { %v4037_v52 = vsel %vm543_vm6, %v8286_v22, %v4004_v20  ;;  %v3460_v20 = vrot.slane %v7237_v37, 4  ;;  %v3727_v37 = vsel %vm375_vm1, %v7469_v8, %v3726_v15  ;;  %v3489_v15 = vsel %vm375_vm1, 0.0, %v3488_v62 }
 0x724   : > { %v7475_v46 = vsel %vm545_vm7, %v4037_v52, %v7222_v30  ;;  %v7503_v18 = vperm.slane %v3517_v13, %v5353_v45 }
 0x725   : > { %8287 = vst [vmem:[#allocation32_spill] sm:$0xff] %v7475_v46  ;;  %v3461_v52 = vsel %vm375_vm1, %v3460_v20, %v7233_v59  ;;  %v7492_v46 = vperm.slane %v3727_v37, %v5353_v45  ;;  %v8290_v59 = vld [vmem:[#allocation45_spill] sm:$0xff]  ;;  %v8291_v20 = vld [vmem:[#allocation42_spill] sm:$0xff] }
 0x727   : > { %3581 = vrot.lane.b32.xlu1 %v7404_v6, %s5018_s29  ;;  %4429 = vrot.lane.b32.xlu0 %v7407_v36, %s5018_s29 }
 0x728   : > { %3597 = vrot.lane.b32.xlu2 %v7416_v33, %s5019_s8 }
 0x729   : > { %v3344_v25 = vpop.permute.xlu0 %3343  ;;  %v7434_v0 = vpop.permute.xlu1 %3383 }
 0x72a   : > { %v7439_v23 = vpop.permute.xlu2 %2909 }
 0x72f   : > { %3761 = vrot.lane.b32.xlu1 %v7453_v14, %s5018_s29  ;;  %4187 = vrot.lane.b32.xlu0 %v7456_v40, %s5018_s29 }
 0x730   : > { %4215 = vrot.lane.b32.xlu2 %v7460_v34, %s5018_s29 }
 0x731   : > { %v3380_v43 = vpop.permute.xlu0 %3379  ;;  %v3336_v2 = vpop.permute.xlu1 %3335 }
 0x732   : > { %v7477_v35 = vpop.permute.xlu2 %2945  ;;  %v3390_v22 = vsel %vm543_vm6, %v8288_v60, %v3336_v2 }
 0x733   : > { %v3391_v47 = vsel %vm545_vm7, %v3390_v22, %v8289_v32  ;;  %v3540_v22 = vrot.slane %v7503_v18, 4 }
 0x734   : > { %v3392_v30 = vsel %vm547_vm8, %v3391_v47, %v3344_v25  ;;  %v7509_v47 = vperm.slane %v3461_v52, %v5353_v45 }
 0x735   : > { %v3393_v2 = vsel %vm549_vm9, %v3392_v30, %v3348_v50  ;;  %v4162_v50 = vrot.slane %v8290_v59, 4  ;;  %v3541_v52 = vsel %vm375_vm1, 0.0, %v3540_v22 }
 0x736   : > { %v3394_v32 = vsel %vm551_vm10, %v3393_v2, %v7258_v41  ;;  %v3484_v62 = vrot.slane %v7509_v47, 4 }
 0x737   : > { %3789 = vrot.lane.b32.xlu1 %v7492_v46, %s5018_s29  ;;  %3565 = vrot.lane.b32.xlu0 %v3489_v15, %s5021_s11  ;;  %v3395_v41 = vsel %vm553_vm11, %v3394_v32, %v7323_v29  ;;  %v4163_v60 = vsel %vm375_vm1, %v4162_v50, %v8291_v20  ;;  %v3668_v29 = vrot.slane %v7410_v27, 4  ;;  %v8292_v15 = vld [vmem:[#allocation31_spill] sm:$0xff]  ;;  %v3546_v20 = vrot.slane %v7416_v33, 4 }
 0x738   : > { %4401 = vrot.lane.b32.xlu2 %v7498_v39, %s5018_s29  ;;  %v7526_v30 = vperm.slane %v4163_v60, %v5353_v45  ;;  %v3485_v2 = vsel %vm375_vm1, 0.0, %v3484_v62  ;;  %v3397_v32 = vsel %vm543_vm6, %v8292_v15, %v7289_v11  ;;  %v3490_v11 = vrot.slane %v7347_v48, 4 }
 0x739   : > { %v7514_v58 = vpop.permute.xlu0 %2925  ;;  %v3360_v13 = vpop.permute.xlu1 %3359  ;;  %v3398_v59 = vsel %vm545_vm7, %v3397_v32, %v7380_v10  ;;  %v3669_v22 = vsel %vm375_vm1, %v3668_v29, %v7399_v12  ;;  %v3547_v33 = vsel %vm375_vm1, 0.0, %v3546_v20  ;;  %v4150_v12 = vrot.slane %v7432_v42, 4 }
 0x73a   : > { %v7518_v25 = vpop.permute.xlu2 %3131  ;;  %v3396_v26 = vsel %vm555_vm12, %v3395_v41, %v3360_v13  ;;  %v3491_v48 = vsel %vm375_vm1, 0.0, %v3490_v11  ;;  %v3542_v32 = vrot.slane %v7404_v6, 4 }
 0x73b   : > { %v3406_v37 = vrot.slane %v3396_v26, 4  ;;  %v3486_v26 = vrot.slane %v7272_v31, 4  ;;  %v4151_v42 = vsel %vm375_vm1, %v4150_v12, %v7394_v38  ;;  %v4094_v38 = vrot.slane %v7427_v51, 4 }
 0x73d   : > { %3410 = vst [vmem:[#allocation4 + $0x18] sm:$0xf0] %v3406_v37  ;;  %v3487_v31 = vsel %vm375_vm1, 0.0, %v3486_v26  ;;  %v7587_v26 = vperm.slane %v4151_v42, %v5353_v45 }
 0x73f   : > { %4223 = vrot.lane.b32.xlu1 %v7526_v30, %s5020_s17  ;;  %3577 = vrot.lane.b32.xlu0 %v3541_v52, %s5023_s19  ;;  %v7560_v52 = vperm.slane %v3669_v22, %v5353_v45  ;;  %v4174_v22 = vrot.slane %v7587_v26, 4 }
 0x740   : > { %3549 = vrot.lane.b32.xlu2 %v3485_v2, %s5023_s19  ;;  %v3544_v2 = vrot.slane %v7304_v49, 4  ;;  %v3543_v49 = vsel %vm375_vm1, 0.0, %v3542_v32 }
 0x741   : > { %v7540_v50 = vpop.permute.xlu0 %2937  ;;  %v3372_v41 = vpop.permute.xlu1 %3371  ;;  %v3692_v15 = vrot.slane %v7560_v52, 4 }
 0x742   : > { %v7542_v27 = vpop.permute.xlu2 %3167  ;;  %v3399_v13 = vsel %vm547_vm8, %v3398_v59, %v3372_v41 }
 0x743   : > { %v3400_v60 = vsel %vm549_vm9, %v3399_v13, %v7188_v44  ;;  %v3693_v41 = vsel %vm375_vm1, 0.0, %v3692_v15 }
 0x744   : > { %v3401_v10 = vsel %vm551_vm10, %v3400_v60, %v3380_v43 }
 0x745   : > { %v3402_v37 = vsel %vm553_vm11, %v3401_v10, %v7434_v0  ;;  %v4095_v10 = vsel %vm375_vm1, %v4094_v38, %v7384_v61 }
 0x746   : > { %v3403_v62 = vsel %vm555_vm12, %v3402_v37, %v7330_v24  ;;  %v4364_v24 = vrot.slane %v7370_v1, 4  ;;  %v3545_v1 = vsel %vm375_vm1, 0.0, %v3544_v2  ;;  %v3694_v37 = vrot.slane %v7453_v14, 4 }
 0x747   : > { %v3407_v44 = vrot.slane %v3403_v62, 4  ;;  %3557 = vrot.lane.b32.xlu1 %v3487_v31, %s5022_s18  ;;  %3601 = vrot.lane.b32.xlu0 %v3547_v33, %s5024_s15  ;;  %v8293_v62 = vld [vmem:[#allocation26_spill] sm:$0xff]  ;;  %v4175_v33 = vsel %vm375_vm1, 0.0, %v4174_v22 }
 0x748   : > { %3573 = vrot.lane.b32.xlu2 %v3491_v48, %s5024_s15  ;;  %v4365_v59 = vsel %vm375_vm1, %v4364_v24, %v7328_v16  ;;  %v3724_v16 = vrot.slane %v7469_v8, 4  ;;  %v3874_v51 = vrot.slane %v8293_v62, 4  ;;  %v7615_v48 = vperm.slane %v4095_v10, %v5353_v45 }
 0x749   : > { %3411 = vst [vmem:[#allocation4 + $0x10] sm:$0xf0] %v3407_v44  ;;  %v7568_v0 = vpop.permute.xlu0 %3123  ;;  %v7570_v43 = vpop.permute.xlu1 %2917  ;;  %v7584_v13 = vperm.slane %v4365_v59, %v5353_v45  ;;  %v3695_v61 = vsel %vm375_vm1, 0.0, %v3694_v37  ;;  %v8295_v59 = vld [vmem:[#allocation22_spill] sm:$0xff]  ;;  %v4342_v10 = vrot.slane %v7075_v63, 4  ;;  %v7645_v37 = vperm.slane %v7169_v9, %v5353_v45 }
 0x74a   : > { %v7572_v29 = vpop.permute.xlu2 %2921  ;;  %v3725_v8 = vsel %vm375_vm1, %v3724_v16, %v7437_v55  ;;  %v8294_v55 = vld [vmem:[#allocation23_spill] sm:$0xff]  ;;  %v4118_v32 = vrot.slane %v7615_v48, 4  ;;  %v3862_v42 = vrot.slane %v8295_v59, 4  ;;  %v4390_v9 = vrot.slane %v7407_v36, 4 }
 0x74b   : > { %v4388_v11 = vrot.slane %v7584_v13, 4  ;;  %v7612_v44 = vperm.slane %v3725_v8, %v5353_v45  ;;  %v3875_v14 = vsel %vm375_vm1, %v3874_v51, %v8294_v55 }
 0x74c   : > { %v4119_v38 = vsel %vm375_vm1, 0.0, %v4118_v32 }
 0x74d   : > { %v4389_v31 = vsel %vm375_vm1, 0.0, %v4388_v11  ;;  %v3748_v15 = vrot.slane %v7612_v44, 4  ;;  %v8296_v11 = vld [vmem:[#allocation21_spill] sm:$0xff] }
 0x74e   : > { %v3863_v22 = vsel %vm375_vm1, %v3862_v42, %v8296_v11 }
 0x74f   : > { %3593 = vrot.lane.b32.xlu1 %v3545_v1, %s5021_s11  ;;  %3757 = vrot.lane.b32.xlu0 %v3693_v41, %s5023_s19  ;;  %v3696_v1 = vrot.slane %v7350_v53, 4  ;;  %v7632_v41 = vperm.slane %v3875_v14, %v5285_v57  ;;  %v3749_v16 = vsel %vm375_vm1, 0.0, %v3748_v15  ;;  %v4343_v14 = vsel %vm375_vm1, %v7048_v5, %v4342_v10  ;;  %v8297_v10 = vld [vmem:[#allocation44_spill] sm:$0xff] }
 0x750   : > { %3585 = vrot.lane.b32.xlu2 %v3543_v49, %s5022_s18  ;;  %v4354_v49 = vrot.slane %v7003_v21, 4  ;;  %v4332_v15 = vrot.slane %v7645_v37, 4  ;;  %v7671_v42 = vperm.slane %v4343_v14, %v5285_v57 }
 0x751   : > { %v7595_v6 = vpop.permute.xlu0 %3159  ;;  %v7597_v20 = vpop.permute.xlu1 %2953  ;;  %v3697_v53 = vsel %vm375_vm1, 0.0, %v3696_v1  ;;  %v3886_v21 = vrot.slane %v7632_v41, 4 }
 0x752   : > { %v7599_v60 = vpop.permute.xlu2 %2933  ;;  %v4355_v8 = vsel %vm375_vm1, %v6834_v54, %v4354_v49  ;;  %v4333_v5 = vsel %vm375_vm1, 0.0, %v4332_v15  ;;  %v3714_v15 = vrot.slane %v8285_v17, 4  ;;  %v3702_v17 = vrot.slane %v8283_v4, 4 }
 0x753   : > { %v7666_v54 = vperm.slane %v4355_v8, %v5285_v57 }
 0x754   : > { %v3703_v4 = vsel %vm375_vm1, %v8279_v28, %v3702_v17 }
 0x755   : > { %v4376_v49 = vrot.slane %v7666_v54, 4 }
 0x757   : > { %4425 = vrot.lane.b32.xlu1 %v4389_v31, %s5023_s19  ;;  %4211 = vrot.lane.b32.xlu0 %v4175_v33, %s5023_s19  ;;  %v7656_v31 = vperm.slane %v3863_v22, %v5285_v57  ;;  %v4377_v8 = vsel %vm375_vm1, %v4376_v49, %v7671_v42 }
 0x758   : > { %3765 = vrot.lane.b32.xlu2 %v3695_v61, %s5022_s18  ;;  %v4176_v61 = vrot.slane %v7460_v34, 4  ;;  %v4391_v34 = vsel %vm375_vm1, 0.0, %v4390_v9 }
 0x759   : > { %v2914_v12 = vpop.permute.xlu0 %2913  ;;  %v7623_v24 = vpop.permute.xlu1 %3139  ;;  %v3887_v32 = vsel %vm375_vm1, %v3886_v21, %v7656_v31  ;;  %v3750_v21 = vrot.slane %v7492_v46, 4 }
 0x75a   : > { %v7625_v2 = vpop.permute.xlu2 %2957  ;;  %v4177_v1 = vsel %vm375_vm1, 0.0, %v4176_v61  ;;  %v7679_v36 = vperm.slane %v3887_v32, %v5353_v45  ;;  %v4383_v32 = vperm.slane %v4377_v8, %v5353_v45  ;;  %v8299_v8 = vld [vmem:[#allocation25_spill] sm:$0xff] }
 0x75c   : > { %v3910_v9 = vrot.slane %v7679_v36, 4 }
 0x75f   : > { %3785 = vrot.lane.b32.xlu1 %v3749_v16, %s5023_s19  ;;  %4183 = vrot.lane.b32.xlu0 %v4119_v38, %s5023_s19 }
 0x760   : > { %3773 = vrot.lane.b32.xlu2 %v3697_v53, %s5021_s11 }
 0x761   : > { %v7651_v51 = vpop.permute.xlu0 %2949  ;;  %v7653_v63 = vpop.permute.xlu1 %3151 }
 0x762   : > { %v7658_v33 = vpop.permute.xlu2 %3119 }
 0x767   : > { %4219 = vrot.lane.b32.xlu1 %v4177_v1, %s5022_s18  ;;  %4433 = vrot.lane.b32.xlu0 %v4391_v34, %s5022_s18  ;;  %v3751_v34 = vsel %vm375_vm1, 0.0, %v3750_v21 }
 0x768   : > { %4397 = vrot.lane.b32.xlu2 %v4333_v5, %s5023_s19 }
 0x769   : > { %v7683_v16 = vpop.permute.xlu0 %3135  ;;  %v2906_v38 = vpop.permute.xlu1 %2905 }
 0x76a   : > { %v7685_v22 = vpop.permute.xlu2 %3143  ;;  %v2960_v53 = vsel %vm543_vm6, %v8297_v10, %v2906_v38  ;;  %v4120_v10 = vrot.slane %v7456_v40, 4  ;;  %v8301_v40 = vld [vmem:[#allocation43_spill] sm:$0xff] }
 0x76b   : > { %v2961_v61 = vsel %vm545_vm7, %v2960_v53, %v7439_v23  ;;  %v3911_v23 = vsel %vm375_vm1, 0.0, %v3910_v9  ;;  %v8298_v53 = vld [vmem:[#allocation30_spill] sm:$0xff] }
 0x76c   : > { %v2962_v14 = vsel %vm547_vm8, %v2961_v61, %v2914_v12  ;;  %v3715_v12 = vsel %vm375_vm1, %v8284_v3, %v3714_v15  ;;  %v3968_v21 = vrot.slane %v8298_v53, 4  ;;  %v3932_v61 = vrot.slane %v8299_v8, 4  ;;  %v8302_v8 = vld [vmem:[#allocation20_spill] sm:$0xff] }
 0x76d   : > { %v2963_v1 = vsel %vm549_vm9, %v2962_v14, %v7570_v43  ;;  %v4178_v3 = vrot.slane %v7526_v30, 4  ;;  %v7722_v14 = vperm.slane %v3715_v12, %v5285_v57  ;;  %v4334_v53 = vrot.slane %v7498_v39, 4 }
 0x76e   : > { %v2964_v46 = vsel %vm551_vm10, %v2963_v1, %v7572_v29  ;;  %v7727_v1 = vperm.slane %v3703_v4, %v5285_v57  ;;  %v3969_v28 = vsel %vm375_vm1, 0.0, %v3968_v21 }
 0x76f   : > { %3793 = vrot.lane.b32.xlu1 %v3751_v34, %s5022_s18  ;;  %4437 = vrot.lane.b32.xlu0 %v4383_v32, %s5020_s17  ;;  %v2965_v43 = vsel %vm553_vm11, %v2964_v46, %v7514_v58  ;;  %v8300_v58 = vld [vmem:[#allocation24_spill] sm:$0xff]  ;;  %v2967_v34 = vsel %vm543_vm6, %v8301_v40, %v7599_v60  ;;  %v4121_v46 = vsel %vm375_vm1, 0.0, %v4120_v10  ;;  %v4179_v30 = vsel %vm375_vm1, 0.0, %v4178_v3 }
 0x770   : > { %3975 = vrot.lane.b32.xlu2 %v3911_v23, %s5023_s19  ;;  %v3933_v15 = vsel %vm375_vm1, %v8300_v58, %v3932_v61  ;;  %v3736_v23 = vrot.slane %v7722_v14, 4  ;;  %v2968_v60 = vsel %vm545_vm7, %v2967_v34, %v7540_v50  ;;  %v4392_v10 = vrot.slane %v4383_v32, 4  ;;  %v8303_v50 = vld [vmem:[#allocation27_spill] sm:$0xff] }
 0x771   : > { %v3148_v5 = vpop.permute.xlu0 %3147  ;;  %v2930_v49 = vpop.permute.xlu1 %2929  ;;  %v7740_v17 = vperm.slane %v3933_v15, %v5285_v57  ;;  %v3920_v61 = vrot.slane %v8302_v8, 4  ;;  %v3174_v15 = vsel %vm543_vm6, %v7211_v56, %v7658_v33 }
 0x772   : > { %v7712_v38 = vpop.permute.xlu2 %3155  ;;  %v2966_v29 = vsel %vm555_vm12, %v2965_v43, %v2930_v49  ;;  %v3737_v21 = vsel %vm375_vm1, %v3736_v23, %v7727_v1  ;;  %v4393_v40 = vsel %vm375_vm1, 0.0, %v4392_v10  ;;  %v3175_v33 = vsel %vm545_vm7, %v3174_v15, %v7568_v0 }
 0x773   : > { %v2976_v9 = vrot.slane %v2966_v29, 4  ;;  %v3921_v3 = vsel %vm375_vm1, %v8303_v50, %v3920_v61  ;;  %v3743_v32 = vperm.slane %v3737_v21, %v5353_v45  ;;  %v3954_v39 = vrot.slane %v7740_v17, 4  ;;  %v8304_v61 = vld [vmem:[#allocation49_spill] sm:$0xff] }
 0x774   : > { %v7775_v56 = vperm.slane %v3921_v3, %v5285_v57  ;;  %v3876_v15 = vrot.slane %v8294_v55, 4 }
 0x775   : > { %2980 = vst [vmem:[#allocation4 + $0x30] sm:$0xf0] %v2976_v9 }
 0x777   : > { %4191 = vrot.lane.b32.xlu1 %v4121_v46, %s5022_s18  ;;  %4011 = vrot.lane.b32.xlu0 %v3969_v28, %s5022_s18  ;;  %v3181_v46 = vsel %vm543_vm6, %v7174_v7, %v3148_v5 }
 0x778   : > { %4227 = vrot.lane.b32.xlu2 %v4179_v30, %s5021_s11  ;;  %v3182_v5 = vsel %vm545_vm7, %v3181_v46, %v7653_v63 }
 0x779   : > { %v3172_v12 = vpop.permute.xlu0 %3171  ;;  %v2942_v43 = vpop.permute.xlu1 %2941  ;;  %v3183_v63 = vsel %vm547_vm8, %v3182_v5, %v7712_v38 }
 0x77a   : > { %v7744_v49 = vpop.permute.xlu2 %3561  ;;  %v2969_v29 = vsel %vm547_vm8, %v2968_v60, %v2942_v43 }
 0x77b   : > { %v2970_v4 = vsel %vm549_vm9, %v2969_v29, %v7477_v35 }
 0x77c   : > { %v2971_v9 = vsel %vm551_vm10, %v2970_v4, %v7651_v51  ;;  %v4335_v51 = vsel %vm375_vm1, 0.0, %v4334_v53  ;;  %v4327_v4 = vperm.slane %v8304_v61, %v5353_v45 }
 0x77d   : > { %v2972_v58 = vsel %vm553_vm11, %v2971_v9, %v7597_v20  ;;  %v3888_v20 = vrot.slane %v7656_v31, 4  ;;  %v3955_v31 = vsel %vm375_vm1, %v3954_v39, %v7775_v56  ;;  %v8305_v9 = vld [vmem:[#allocation46_spill] sm:$0xff] }
 0x77e   : > { %v2973_v35 = vsel %vm555_vm12, %v2972_v58, %v7625_v2  ;;  %v3961_v29 = vperm.slane %v3955_v31, %v5353_v45  ;;  %v3752_v58 = vrot.slane %v3743_v32, 4  ;;  %v3864_v31 = vrot.slane %v8296_v11, 4 }
 0x77f   : > { %v2977_v34 = vrot.slane %v2973_v35, 4  ;;  %4441 = vrot.lane.b32.xlu1 %v4393_v40, %s5021_s11  ;;  %4405 = vrot.lane.b32.xlu0 %v4335_v51, %s5022_s18  ;;  %v3889_v7 = vsel %vm375_vm1, %v7632_v41, %v3888_v20  ;;  %v4113_v41 = vperm.slane %v7186_v19, %v5353_v45 }
 0x780   : > { %3797 = vrot.lane.b32.xlu2 %v3743_v32, %s5020_s17  ;;  %v3897_v10 = vperm.slane %v3889_v7, %v5353_v45  ;;  %v3970_v39 = vrot.slane %v3961_v29, 4  ;;  %v3753_v40 = vsel %vm375_vm1, 0.0, %v3752_v58  ;;  %v3865_v7 = vsel %vm375_vm1, %v8295_v59, %v3864_v31 }
 0x781   : > { %2981 = vst [vmem:[#allocation4] sm:$0xf0] %v2977_v34  ;;  %v7777_v2 = vpop.permute.xlu0 %3553  ;;  %v3128_v28 = vpop.permute.xlu1 %3127  ;;  %v3877_v34 = vsel %vm375_vm1, %v8293_v62, %v3876_v15  ;;  %v3738_v62 = vrot.slane %v7727_v1, 4  ;;  %v3873_v59 = vperm.slane %v3865_v7, %v5285_v57 }
 0x782   : > { %v7781_v30 = vpop.permute.xlu2 %3597  ;;  %v3176_v23 = vsel %vm547_vm8, %v3175_v33, %v3128_v28  ;;  %v3912_v3 = vrot.slane %v3897_v10, 4  ;;  %v3971_v51 = vsel %vm375_vm1, 0.0, %v3970_v39  ;;  %v4122_v33 = vrot.slane %v4113_v41, 4 }
 0x783   : > { %v3177_v60 = vsel %vm549_vm9, %v3176_v23, %v7518_v25  ;;  %v4378_v25 = vrot.slane %v7671_v42, 4  ;;  %v7848_v28 = vperm.slane %v3877_v34, %v5285_v57  ;;  %v4336_v23 = vrot.slane %v4327_v4, 4 }
 0x784   : > { %v3178_v0 = vsel %vm551_vm10, %v3177_v60, %v7683_v16  ;;  %v3184_v16 = vsel %vm549_vm9, %v3183_v63, %v7595_v6  ;;  %v4173_v6 = vperm.slane %v8305_v9, %v5353_v45  ;;  %v3913_v35 = vsel %vm375_vm1, 0.0, %v3912_v3  ;;  %v8308_v3 = vld [vmem:[#allocation48_spill] sm:$0xff] }
 0x785   : > { %v3179_v43 = vsel %vm553_vm11, %v3178_v0, %v7623_v24  ;;  %v4379_v38 = vsel %vm375_vm1, %v7666_v54, %v4378_v25  ;;  %v4123_v60 = vsel %vm375_vm1, 0.0, %v4122_v33  ;;  %v4337_v0 = vsel %vm375_vm1, 0.0, %v4336_v23 }
 0x786   : > { %v3180_v53 = vsel %vm555_vm12, %v3179_v43, %v7685_v22  ;;  %v4387_v50 = vperm.slane %v4379_v38, %v5353_v45  ;;  %v4180_v46 = vrot.slane %v4173_v6, 4  ;;  %v3898_v43 = vrot.slane %v7848_v28, 4  ;;  %v8307_v38 = vld [vmem:[#allocation19_spill] sm:$0xff] }
 0x787   : > { %3188 = vst [vmem:[#allocation4 + $0x18] sm:$0xf] %v3180_v53  ;;  %4015 = vrot.lane.b32.xlu1 %v3961_v29, %s5020_s17  ;;  %3979 = vrot.lane.b32.xlu0 %v3897_v10, %s5018_s29  ;;  %v3739_v10 = vsel %vm375_vm1, %v7722_v14, %v3738_v62  ;;  %v3956_v14 = vrot.slane %v7775_v56, 4  ;;  %v4117_v58 = vperm.slane %v8308_v3, %v5353_v45 }
 0x788   : > { %4195 = vrot.lane.b32.xlu2 %v4113_v41, %s5020_s17  ;;  %v4181_v5 = vsel %vm375_vm1, 0.0, %v4180_v46  ;;  %v4394_v53 = vrot.slane %v4387_v50, 4  ;;  %v8306_v41 = vld [vmem:[#allocation16_spill] sm:$0xff]  ;;  %v3899_v25 = vsel %vm375_vm1, %v3898_v43, %v3873_v59 }
 0x789   : > { %v7808_v24 = vpop.permute.xlu0 %3589  ;;  %v3164_v22 = vpop.permute.xlu1 %3163  ;;  %v4619_v63 = vperm.slane %v8306_v41, %v5285_v57  ;;  %v4124_v41 = vrot.slane %v4117_v58, 4 }
 0x78a   : > { %v7812_v21 = vpop.permute.xlu2 %4215  ;;  %v3185_v19 = vsel %vm551_vm10, %v3184_v16, %v3164_v22  ;;  %v3747_v16 = vperm.slane %v3739_v10, %v5353_v45  ;;  %v4395_v22 = vsel %vm375_vm1, 0.0, %v4394_v53 }
 0x78b   : > { %v3186_v42 = vsel %vm553_vm11, %v3185_v19, %v7542_v27  ;;  %v3905_v19 = vperm.slane %v3899_v25, %v5353_v45 }
 0x78c   : > { %v3187_v8 = vsel %vm555_vm12, %v3186_v42, %v3172_v12  ;;  %v4624_v42 = vrot.slane %v4619_v63, 4  ;;  %v3754_v46 = vrot.slane %v3747_v16, 4 }
 0x78d   : > { %3189 = vst [vmem:[#allocation4 + $0x10] sm:$0xf] %v3187_v8  ;;  %v4607_v8 = vperm.slane %v8307_v38, %v5285_v57  ;;  %v3914_v34 = vrot.slane %v3905_v19, 4 }
 0x78e   : > { %v3755_v62 = vsel %vm375_vm1, 0.0, %v3754_v46 }
 0x78f   : > { %4409 = vrot.lane.b32.xlu1 %v4327_v4, %s5020_s17  ;;  %4231 = vrot.lane.b32.xlu0 %v4173_v6, %s5019_s8  ;;  %v3957_v6 = vsel %vm375_vm1, %v7740_v17, %v3956_v14  ;;  %v4626_v15 = vrot.slane %v4607_v8, 4  ;;  %v3915_v7 = vsel %vm375_vm1, 0.0, %v3914_v34 }
 0x790   : > { %4445 = vrot.lane.b32.xlu2 %v4387_v50, %s5019_s8  ;;  %v4625_v50 = vsel %vm375_vm1, %v4624_v42, %v4607_v8  ;;  %v3965_v39 = vperm.slane %v3957_v6, %v5353_v45 }
 0x791   : > { %v7828_v27 = vpop.permute.xlu0 %3769  ;;  %v7830_v54 = vpop.permute.xlu1 %3569  ;;  %v4627_v33 = vsel %vm375_vm1, %v4619_v63, %v4626_v15  ;;  %v3900_v63 = vrot.slane %v3873_v59, 4 }
 0x792   : > { %v7832_v12 = vpop.permute.xlu2 %4401  ;;  %v3972_v23 = vrot.slane %v3965_v39, 4 }
 0x797   : > { %3983 = vrot.lane.b32.xlu1 %v3913_v35, %s5022_s18  ;;  %3801 = vrot.lane.b32.xlu0 %v3753_v40, %s5021_s11  ;;  %v8309_v35 = vld [vmem:[#allocation50_spill] sm:$0xff] }
 0x798   : > { %4019 = vrot.lane.b32.xlu2 %v3971_v51, %s5021_s11  ;;  %v4331_v40 = vperm.slane %v8309_v35, %v5353_v45 }
 0x799   : > { %v7843_v20 = vpop.permute.xlu0 %4429  ;;  %v7845_v32 = vpop.permute.xlu1 %3581 }
 0x79a   : > { %v3550_v55 = vpop.permute.xlu2 %3549  ;;  %v4338_v53 = vrot.slane %v4331_v40, 4 }
 0x79b   : > { %v3604_v31 = vsel %vm543_vm6, %v7509_v47, %v3550_v55 }
 0x79c   : > { %v3605_v43 = vsel %vm545_vm7, %v3604_v31, %v7777_v2  ;;  %v4339_v59 = vsel %vm375_vm1, 0.0, %v4338_v53 }
 0x79f   : > { %4235 = vrot.lane.b32.xlu1 %v4181_v5, %s5024_s15  ;;  %4199 = vrot.lane.b32.xlu0 %v4123_v60, %s5021_s11  ;;  %v3973_v5 = vsel %vm375_vm1, 0.0, %v3972_v23 }
 0x7a0   : > { %4413 = vrot.lane.b32.xlu2 %v4337_v0, %s5021_s11 }
 0x7a1   : > { %v7861_v11 = vpop.permute.xlu0 %4187  ;;  %v7863_v29 = vpop.permute.xlu1 %3761 }
 0x7a2   : > { %v3574_v1 = vpop.permute.xlu2 %3573 }
 0x7a7   : > { %3805 = vrot.lane.b32.xlu1 %v3747_v16, %s5019_s8  ;;  %4449 = vrot.lane.b32.xlu0 %v4395_v22, %s5024_s15  ;;  %v3901_v22 = vsel %vm375_vm1, %v7848_v28, %v3900_v63 }
 0x7a8   : > { %3987 = vrot.lane.b32.xlu2 %v3905_v19, %s5020_s17  ;;  %v8310_v19 = vld [vmem:[#allocation40_spill] sm:$0xff] }
 0x7a9   : > { %v3566_v61 = vpop.permute.xlu0 %3565  ;;  %v7880_v4 = vpop.permute.xlu1 %3789  ;;  %v3691_v42 = vperm.slane %v8310_v19, %v5353_v45  ;;  %v4536_v19 = vld [vmem:[%s8201_s6] sm:$0xf] }
 0x7aa   : > { %v3586_v9 = vpop.permute.xlu2 %3585 }
 0x7ab   : > { %v3698_v6 = vrot.slane %v3691_v42, 4 }
 0x7af   : > { %4203 = vrot.lane.b32.xlu1 %v4117_v58, %s5019_s8  ;;  %4023 = vrot.lane.b32.xlu0 %v3965_v39, %s5019_s8 }
 0x7b0   : > { %4417 = vrot.lane.b32.xlu2 %v4331_v40, %s5019_s8 }
 0x7b1   : > { %v3578_v56 = vpop.permute.xlu0 %3577  ;;  %v7893_v51 = vpop.permute.xlu1 %4223 }
 0x7b2   : > { %v3766_v17 = vpop.permute.xlu2 %3765  ;;  %v3611_v60 = vsel %vm543_vm6, %v7503_v18, %v3578_v56 }
 0x7b3   : > { %v3612_v25 = vsel %vm545_vm7, %v3611_v60, %v7845_v32  ;;  %v4125_v32 = vsel %vm375_vm1, 0.0, %v4124_v41 }
 0x7b4   : > { %v3613_v8 = vsel %vm547_vm8, %v3612_v25, %v3586_v9 }
 0x7b5   : > { %v3614_v28 = vsel %vm549_vm9, %v3613_v8, %v7808_v24  ;;  %v7942_v24 = vperm.slane %v4625_v50, %v5353_v45 }
 0x7b7   : > { %3991 = vrot.lane.b32.xlu1 %v3915_v7, %s5021_s11  ;;  %3809 = vrot.lane.b32.xlu0 %v3755_v62, %s5024_s15  ;;  %v4635_v7 = vperm.slane %v4627_v33, %v5353_v45 }
 0x7b8   : > { %4027 = vrot.lane.b32.xlu2 %v3973_v5, %s5024_s15 }
 0x7b9   : > { %v3602_v0 = vpop.permute.xlu0 %3601  ;;  %v3558_v47 = vpop.permute.xlu1 %3557 }
 0x7ba   : > { %v7908_v55 = vpop.permute.xlu2 %3773  ;;  %v3606_v10 = vsel %vm547_vm8, %v3605_v43, %v3558_v47 }
 0x7bb   : > { %v3607_v18 = vsel %vm549_vm9, %v3606_v10, %v7744_v49  ;;  %v3909_v49 = vperm.slane %v3901_v22, %v5353_v45 }
 0x7bc   : > { %v3608_v16 = vsel %vm551_vm10, %v3607_v18, %v3566_v61 }
 0x7bd   : > { %v3609_v2 = vsel %vm553_vm11, %v3608_v16, %v7830_v54  ;;  %v3916_v39 = vrot.slane %v3909_v49, 4 }
 0x7be   : > { %v3610_v38 = vsel %vm555_vm12, %v3609_v2, %v3574_v1 }
 0x7bf   : > { %3618 = vst [vmem:[#allocation4 + $0x48] sm:$0xf] %v3610_v38  ;;  %4421 = vrot.lane.b32.xlu1 %v4339_v59, %s5024_s15  ;;  %4207 = vrot.lane.b32.xlu0 %v4125_v32, %s5024_s15 }
 0x7c0   : > { %3777 = vrot.lane.b32.xlu2 %v3691_v42, %s5019_s8 }
 0x7c1   : > { %v3758_v54 = vpop.permute.xlu0 %3757  ;;  %v3594_v1 = vpop.permute.xlu1 %3593 }
 0x7c2   : > { %v3812_v14 = vsel %vm543_vm6, %v7560_v52, %v3758_v54  ;;  %v4398_v61 = vpop.permute.xlu2 %4397  ;;  %v3615_v9 = vsel %vm551_vm10, %v3614_v28, %v3594_v1  ;;  %v3699_v52 = vsel %vm375_vm1, 0.0, %v3698_v6  ;;  %v4528_v6 = vld [vmem:[%s8200_s5] sm:$0xf] }
 0x7c3   : > { %v3813_v3 = vsel %vm545_vm7, %v3812_v14, %v7863_v29  ;;  %v3616_v58 = vsel %vm553_vm11, %v3615_v9, %v7781_v30  ;;  %v3917_v29 = vsel %vm375_vm1, 0.0, %v3916_v39  ;;  %v4648_v30 = vrot.slane %v7942_v24, 4 }
 0x7c4   : > { %v3814_v15 = vsel %vm547_vm8, %v3813_v3, %v3766_v17  ;;  %v3617_v35 = vsel %vm555_vm12, %v3616_v58, %v3602_v0  ;;  %v4452_v62 = vsel %vm543_vm6, %v7645_v37, %v4398_v61  ;;  %v8313_v3 = vld [vmem:[#allocation14_spill] sm:$0xff] }
 0x7c5   : > { %3619 = vst [vmem:[#allocation4 + $0x28] sm:$0xf] %v3617_v35  ;;  %v4649_v31 = vsel %vm375_vm1, 0.0, %v4648_v30  ;;  %v7974_v5 = vsel %vm545_vm7, %v4452_v62, %v7832_v12  ;;  %v3815_v43 = vsel %vm549_vm9, %v3814_v15, %v7828_v27  ;;  %v4551_v58 = vperm.slane %v8313_v3, %v5285_v57  ;;  %v8314_v15 = vld [vmem:[#allocation17_spill] sm:$0xff]  ;;  %v8315_v30 = vld [vmem:[#allocation15_spill] sm:$0xff] }
 0x7c6   : > { %v7988_v12 = vsel %vm551_vm10, %v3815_v43, %v7908_v55  ;;  %v4563_v35 = vperm.slane %v8314_v15, %v5285_v57 }
 0x7c7   : > { %3781 = vrot.lane.b32.xlu1 %v3699_v52, %s5024_s15  ;;  %3995 = vrot.lane.b32.xlu0 %v3909_v49, %s5019_s8  ;;  %v4570_v39 = vrot.slane %v4551_v58, 4 }
 0x7c8   : > { %3999 = vrot.lane.b32.xlu2 %v3917_v29, %s5024_s15 }
 0x7c9   : > { %v4212_v40 = vpop.permute.xlu0 %4211  ;;  %v4426_v56 = vpop.permute.xlu1 %4425 }
 0x7ca   : > { %v4245_v17 = vsel %vm543_vm6, %v7587_v26, %v4212_v40  ;;  %v7952_v50 = vpop.permute.xlu2 %3975  ;;  %v4459_v34 = vsel %vm543_vm6, %v7584_v13, %v4426_v56  ;;  %v8311_v13 = vld [vmem:[#allocation13_spill] sm:$0xff]  ;;  %v4567_v40 = vperm.slane %v8315_v30, %v5285_v57  ;;  %v4571_v56 = vsel %vm375_vm1, %v4563_v35, %v4570_v39 }
 0x7cb   : > { %v7958_v46 = vsel %vm545_vm7, %v4459_v34, %v7843_v20  ;;  %v4246_v23 = vsel %vm545_vm7, %v4245_v17, %v7812_v21  ;;  %v7970_v26 = vperm.slane %v8311_v13, %v5285_v57  ;;  %v4650_v20 = vrot.slane %v4635_v7, 4 }
 0x7cc   : > { %v8043_v34 = vperm.slane %v4571_v56, %v5353_v45  ;;  %v4580_v13 = vrot.slane %v4567_v40, 4 }
 0x7cd   : > { %v4636_v53 = vrot.slane %v7970_v26, 4 }
 0x7cf   : > { %4685 = vrot.lane.b32.xlu0 %v4649_v31, %s5023_s19  ;;  %4689 = vrot.lane.b32.xlu1 %v4635_v7, %s5018_s29  ;;  %v4594_v31 = vrot.slane %v8043_v34, 4  ;;  %v8316_v7 = vld [vmem:[#allocation12_spill] sm:$0xff] }
 0x7d0   : > { %v4555_v62 = vperm.slane %v8316_v7, %v5285_v57 }
 0x7d1   : > { %v4184_v21 = vpop.permute.xlu0 %4183  ;;  %v3786_v60 = vpop.permute.xlu1 %3785 }
 0x7d2   : > { %v4238_v33 = vsel %vm543_vm6, %v7615_v48, %v4184_v21  ;;  %v4228_v0 = vpop.permute.xlu2 %4227  ;;  %v3819_v37 = vsel %vm543_vm6, %v7612_v44, %v3786_v60  ;;  %v8312_v48 = vld [vmem:[#allocation18_spill] sm:$0xff]  ;;  %v4651_v44 = vsel %vm375_vm1, 0.0, %v4650_v20 }
 0x7d3   : > { %v3820_v47 = vsel %vm545_vm7, %v3819_v37, %v7880_v4  ;;  %v4239_v10 = vsel %vm545_vm7, %v4238_v33, %v7861_v11  ;;  %v7993_v41 = vperm.slane %v8312_v48, %v5285_v57  ;;  %v4595_v37 = vsel %vm375_vm1, 0.0, %v4594_v31 }
 0x7d4   : > { %v4581_v57 = vsel %vm375_vm1, %v4580_v13, %v4555_v62 }
 0x7d5   : > { %v4637_v27 = vsel %vm375_vm1, %v4636_v53, %v7993_v41  ;;  %v4587_v53 = vperm.slane %v4581_v57, %v5353_v45 }
 0x7d6   : > { %v8003_v25 = vperm.slane %v4637_v27, %v5353_v45  ;;  %v4638_v27 = vrot.slane %v7993_v41, 4 }
 0x7d7   : > { %4693 = vrot.lane.b32.xlu0 %v4651_v44, %s5022_s18  ;;  %4531 = vperm.xlu1 %4911, %v4528_v6   ;;  %v4568_v44 = vrot.slane %v4563_v35, 4  ;;  %v4582_v6 = vrot.slane %v4555_v62, 4 }
 0x7d9   : > { %v4434_v4 = vpop.permute.xlu0 %4433  ;;  %v4220_v63 = vpop.permute.xlu1 %4219 }
 0x7da   : > { %v4247_v11 = vsel %vm547_vm8, %v4246_v23, %v4220_v63  ;;  %v8005_v18 = vpop.permute.xlu2 %3797 }
 0x7db   : > { %v4248_v55 = vsel %vm549_vm9, %v4247_v11, %v7893_v51 }
 0x7dc   : > { %v4249_v23 = vsel %vm551_vm10, %v4248_v55, %v4228_v0  ;;  %v4461_v0 = vsel %vm547_vm8, %v7958_v46, %v4434_v4  ;;  %v8317_v46 = vld [vmem:[#allocation32_spill] sm:$0xff] }
 0x7df   : > { %4697 = vrot.lane.b32.xlu0 %v8003_v25, %s5020_s17  ;;  %4665 = vrot.lane.b32.xlu1 %v4595_v37, %s5022_s18 }
 0x7e1   : > { %v4438_v16 = vpop.permute.xlu0 %4437  ;;  %v3794_v22 = vpop.permute.xlu1 %3793 }
 0x7e2   : > { %v8010_v2 = vsel %vm547_vm8, %v3820_v47, %v3794_v22  ;;  %v8015_v42 = vpop.permute.xlu2 %4195  ;;  %v4462_v47 = vsel %vm549_vm9, %v4461_v0, %v4438_v16  ;;  %v4569_v16 = vsel %vm375_vm1, %v4568_v44, %v4551_v58 }
 0x7e3   : > { %v3822_v7 = vsel %vm549_vm9, %v8010_v2, %v8005_v18  ;;  %v4652_v18 = vrot.slane %v8003_v25, 4 }
 0x7e7   : > { %4539 = vperm.xlu0 %4910, %v4536_v19   ;;  %4669 = vrot.lane.b32.xlu1 %v4587_v53, %s5020_s17  ;;  %v4596_v19 = vrot.slane %v4587_v53, 4 }
 0x7e9   : > { %v4012_v51 = vpop.permute.xlu0 %4011  ;;  %v4192_v38 = vpop.permute.xlu1 %4191 }
 0x7ea   : > { %v8018_v59 = vsel %vm547_vm8, %v4239_v10, %v4192_v38  ;;  %v4446_v32 = vpop.permute.xlu2 %4445  ;;  %v4039_v4 = vsel %vm547_vm8, %v8317_v46, %v4012_v51  ;;  %v4639_v38 = vsel %vm375_vm1, %v7970_v26, %v4638_v27  ;;  %v4472_v27 = vld [vmem:[#allocation4 + $0x10] sm:$0xff] }
 0x7f1   : > { %v8020_v8 = vpop.permute.xlu0 %4405  ;;  %v4442_v49 = vpop.permute.xlu1 %4441 }
 0x7f2   : > { %v4020_v1 = vpop.permute.xlu2 %4019  ;;  %v4463_v10 = vsel %vm551_vm10, %v4462_v47, %v4442_v49  ;;  %v8072_v49 = vperm.slane %v4569_v16, %v5353_v45 }
 0x7f3   : > { %v4464_v11 = vsel %vm553_vm11, %v4463_v10, %v4446_v32  ;;  %v8075_v32 = vperm.slane %v4639_v38, %v5353_v45 }
 0x7f4   : > { %v4592_v3 = vrot.slane %v8072_v49, 4 }
 0x7f5   : > { %v4654_v51 = vrot.slane %v8075_v32, 4 }
 0x7f6   : > { %v4593_v30 = vsel %vm375_vm1, 0.0, %v4592_v3 }
 0x7f7   : > { %v4655_v56 = vsel %vm375_vm1, 0.0, %v4654_v51  ;;  %4657 = vrot.lane.b32.xlu2 %v4593_v30, %s5023_s19 }
 0x7f8   : > { %4709 = vrot.lane.b32.xlu1 %v4655_v56, %s5024_s15 }
 0x7f9   : > { %v8022_v54 = vpop.permute.xlu0 %3979  ;;  %v4016_v28 = vpop.permute.xlu1 %4015 }
 0x7fa   : > { %v8026_v9 = vpop.permute.xlu2 %4413  ;;  %v4040_v41 = vsel %vm549_vm9, %v4039_v4, %v4016_v28 }
 0x7fb   : > { %v4041_v26 = vsel %vm551_vm10, %v4040_v41, %v4020_v1  ;;  %v4583_v1 = vsel %vm375_vm1, %v4567_v40, %v4582_v6  ;;  %v4471_v41 = vld [vmem:[#allocation4 + $0x18] sm:$0xff] }
 0x7fc   : > { %v4591_v31 = vperm.slane %v4583_v1, %v5353_v45  ;;  %v4454_v45 = vsel %vm547_vm8, %v7974_v5, %v8020_v8  ;;  %v4653_v5 = vsel %vm375_vm1, 0.0, %v4652_v18 }
 0x7fe   : > { %v4598_v62 = vrot.slane %v4591_v31, 4 }
 0x7ff   : > { %4661 = vrot.lane.b32.xlu2 %v8043_v34, %s5018_s29  ;;  %s4962_s29 = scalar_lea.hbm %s8202_s7, 16 }
 0x800   : > { %v4599_v37 = vsel %vm375_vm1, 0.0, %v4598_v62 }
 0x801   : > { %v4232_v14 = vpop.permute.xlu0 %4231  ;;  %v8024_v61 = vpop.permute.xlu1 %4409 }
 0x802   : > { %v8040_v17 = vpop.permute.xlu2 %3987  ;;  %v4250_v20 = vsel %vm553_vm11, %v4249_v23, %v4232_v14  ;;  %v4597_v14 = vsel %vm375_vm1, 0.0, %v4596_v19  ;;  %v4455_v2 = vsel %vm549_vm9, %v4454_v45, %v8024_v61 }
 0x803   : > { %4673 = vrot.lane.b32.xlu0 %v4597_v14, %s5021_s11  ;;  %v4456_v47 = vsel %vm551_vm10, %v4455_v2, %v8026_v9  ;;  %v4469_v14 = vld [vmem:[#allocation4 + $0x30] sm:$0xff] }
 0x807   : > { %4701 = vrot.lane.b32.xlu2 %v4653_v5, %s5021_s11  ;;  %s4846_s11 = sshll.u32 %s5087_s28, 3  ;;  %s4737_s28 = scalar_lea.sflag [#allocation7], %s5152_s22 }
 0x809   : > { %v3802_v52 = vpop.permute.xlu0 %3801  ;;  %v8035_v29 = vpop.permute.xlu1 %3983 }
 0x80a   : > { %v4418_v48 = vpop.permute.xlu2 %4417  ;;  %v3823_v13 = vsel %vm551_vm10, %v3822_v7, %v3802_v52  ;;  %v4241_v52 = vsel %vm549_vm9, %v8018_v59, %v8015_v42  ;;  %v4030_v42 = vsel %vm543_vm6, %v7679_v36, %v7952_v50  ;;  %v4470_v50 = vld [vmem:[#allocation4] sm:$0xff] }
 0x80b   : > { %4681 = vrot.lane.b32.xlu0 %v4599_v37, %s5024_s15  ;;  %v4457_v8 = vsel %vm553_vm11, %v4456_v47, %v4418_v48  ;;  %v4031_v9 = vsel %vm545_vm7, %v4030_v42, %v8022_v54  ;;  %s4748_s15 = scalar_lea.hbm %s8202_s7, %s4846_s11 }
 0x80c   : > { %v4032_v48 = vsel %vm547_vm8, %v4031_v9, %v8035_v29  ;;  %s4752_s10 = sshll.u32 %s4748_s15, 4  ;;  %s4753_s10 = int_to_ptr.hbm [resolvable:$true] %s4752_s10 }
 0x80d   : > { %v4033_v36 = vsel %vm549_vm9, %v4032_v48, %v8040_v17  ;;  %s4956_s12 = sshra.s32 %s4753_s10, 4  ;;  %s4957_s12 = int_to_ptr.hbm [resolvable:$true] %s4956_s12 }
 0x80e   : > { %s4958_s21 = scalar_lea.hbm %s4957_s12, 8  ;;  %p4963_p0 = scmp.lt.s32.totalorder %s4957_s12, %s8202_s7 }
 0x80f   : > { %4705 = vrot.lane.b32.xlu2 %v8075_v32, %s5019_s8  ;;  %p4959_p6 = scmp.ne.s32.totalorder %s4957_s12, %s4958_s21  ;;  %p4964_p1 = scmp.lt.s32.totalorder %s4962_s29, %s4958_s21 }
 0x811   : > { %v8050_v21 = vpop.permute.xlu0 %4199  ;;  %v4236_v60 = vpop.permute.xlu1 %4235  ;;  %p4960_p9 = pnand %p4959_p6, %p5116_p11  ;;  %p4965_p3 = por %p4964_p1, %p4963_p0 }
 0x812   : > { %v4251_v33 = vsel %vm555_vm12, %v4250_v20, %v4236_v60  ;;  %v4028_v28 = vpop.permute.xlu2 %4027  ;;  %v4242_v34 = vsel %vm551_vm10, %v4241_v52, %v8050_v21 }
 0x813   : > { %v4255_v43 = vrot.slane %v4251_v33, 4  ;;  %p4961_p13 = pneg %p4960_p9 }
 0x815   : > { %4259 = vst [vmem:[#allocation4 + $0x20] sm:$0xf0] %v4255_v43  ;;  %p4966_p4 = pnand %p4965_p3, %p4961_p13 }
 0x817   : > { %4677 = vrot.lane.b32.xlu2 %v4591_v31, %s5019_s8  ;;  %s4831_s8 = sshll.u32 %s5152_s22, 3 }
 0x818   : > { %s298_s16 = scalar_lea.vmem [#allocation8], %s4831_s8 }
 0x819   : > { %v4450_v63 = vpop.permute.xlu0 %4449  ;;  %v3806_v55 = vpop.permute.xlu1 %3805  ;;  %s4750_s20 = sshll.u32 %s298_s16, 4  ;;  %s4751_s20 = int_to_ptr.vmem [resolvable:$true] %s4750_s20 }
 0x81a   : > { %v4465_v22 = vsel %vm555_vm12, %v4464_v11, %v4450_v63  ;;  %v3824_v20 = vsel %vm553_vm11, %v3823_v13, %v3806_v55  ;;  %v3778_v57 = vpop.permute.xlu2 %3777  ;;  %v4468_v63 = vld [vmem:[%s8199_s4] sm:$0xf] }
 0x81b   : > { %4467 = vst [vmem:[#allocation4 + $0x38] sm:$0xf] %v4465_v22  ;;  %v3817_v11 = vsel %vm553_vm11, %v7988_v12, %v3778_v57 }
 0x821   : > { %v4024_v58 = vpop.permute.xlu0 %4023  ;;  %v4204_v39 = vpop.permute.xlu1 %4203 }
 0x822   : > { %v4042_v15 = vsel %vm553_vm11, %v4041_v26, %v4024_v58  ;;  %v4478_v35 = vld [vmem:[#allocation4 + $0x38] sm:$0xf]  ;;  %v4243_v25 = vsel %vm553_vm11, %v4242_v34, %v4204_v39  ;;  %v4000_v22 = vpop.permute.xlu2 %3999 }
 0x823   : > { %v4043_v23 = vsel %vm555_vm12, %v4042_v15, %v4028_v28  ;;  %4838 = vmatpush.msk.msra.mxu3 %vm2291_vm13, %v4478_v35 }
 0x824   : > { %4045 = vst [vmem:[#allocation4 + $0x20] sm:$0xf] %v4043_v23 }
 0x829   : > { %v3810_v60 = vpop.permute.xlu0 %3809  ;;  %v3992_v33 = vpop.permute.xlu1 %3991 }
 0x82a   : > { %v3825_v43 = vsel %vm555_vm12, %v3824_v20, %v3810_v60  ;;  %v4034_v54 = vsel %vm551_vm10, %v4033_v36, %v3992_v33 }
 0x82b   : > { %v3829_v40 = vrot.slane %v3825_v43, 4  ;;  %v4476_v0 = vld [vmem:[#allocation4 + $0x20] sm:$0xff] }
 0x82c   : > { %4520 = vmatpush.msra.mxu3 %v4476_v0 }
 0x82d   : > { %3833 = vst [vmem:[#allocation4 + $0x28] sm:$0xf0] %v3829_v40 }
 0x831   : > { %v4208_v10 = vpop.permute.xlu0 %4207  ;;  %v4422_v61 = vpop.permute.xlu1 %4421 }
 0x832   : > { %v4244_v53 = vsel %vm555_vm12, %v4243_v25, %v4208_v10  ;;  %v4458_v44 = vsel %vm555_vm12, %v4457_v8, %v4422_v61 }
 0x833   : > { %v4254_v59 = vrot.slane %v4244_v53, 4  ;;  %4466 = vst [vmem:[#allocation4 + $0x40] sm:$0xf] %v4458_v44 }
 0x834   : > { %v4474_v21 = vld [vmem:[#allocation4 + $0x28] sm:$0xff] }
 0x835   : > { %4258 = vst [vmem:[#allocation4 + $0x8] sm:$0xf0] %v4254_v59  ;;  %4521 = vmatpush.msra.mxu3 %v4474_v21 }
 0x837   : > { %4522 = vmatpush.msra.mxu3 %v4472_v27 }
 0x839   : > { %v3996_v55 = vpop.permute.xlu0 %3995  ;;  %4523 = vmatpush.msra.mxu3 %v4470_v50  ;;  %v3782_v29 = vpop.permute.xlu1 %3781 }
 0x83a   : > { %v4035_v46 = vsel %vm553_vm11, %v4034_v54, %v3996_v55  ;;  %v3818_v4 = vsel %vm555_vm12, %v3817_v11, %v3782_v29  ;;  %4839 = vmatmul.msk.f32.vlgmr.msra.gmra.mxu3 %vm2287_vm14, %v4468_v63  ;;  %v4477_v16 = vld [vmem:[#allocation4 + $0x40] sm:$0xf] }
 0x83b   : > { %v4036_v19 = vsel %vm555_vm12, %v4035_v46, %v4000_v22  ;;  %v3828_v17 = vrot.slane %v3818_v4, 4  ;;  %4836 = vmatpush.msk.msra.mxu2 %vm2291_vm13, %v4477_v16 }
 0x83c   : > { %4044 = vst [vmem:[#allocation4 + $0x8] sm:$0xf] %v4036_v19 }
 0x83d   : > { %3832 = vst [vmem:[#allocation4 + $0x48] sm:$0xf0] %v3828_v17 }
 0x841   : > { %v4686_v6 = vpop.permute.xlu0 %4685  ;;  %v4690_v3 = vpop.permute.xlu1 %4689 }
 0x842   : > { %v4719_v35 = vsel %vm543_vm6, %v7942_v24, %v4686_v6 }
 0x843   : > { %v4475_v12 = vld [vmem:[#allocation4 + $0x8] sm:$0xff]  ;;  %v4720_v56 = vsel %vm545_vm7, %v4719_v35, %v4690_v3 }
 0x844   : > { %4500 = vmatpush.msra.mxu2 %v4475_v12  ;;  %v4473_v38 = vld [vmem:[#allocation4 + $0x48] sm:$0xff] }
 0x846   : > { %4501 = vmatpush.msra.mxu2 %v4473_v38 }
 0x848   : > { %4502 = vmatpush.msra.mxu2 %v4471_v41 }
 0x849   : > { %v4694_v58 = vpop.permute.xlu0 %4693  ;;  %v4532_v26 = vpop.permute.xlu1 %4531 }
 0x84a   : > { %4503 = vmatpush.msra.mxu2 %v4469_v14  ;;  %v4721_v1 = vsel %vm547_vm8, %v4720_v56, %v4694_v58 }
 0x84b   : > { %4837 = vmatmul.msk.f32.vlgmr.msra.gmra.mxu2 %vm2287_vm14, %v4468_v63 }
 0x851   : > { %v4658_v51 = vpop.permute.xlu2 %4657  ;;  %v4698_v39 = vpop.permute.xlu0 %4697 }
 0x852   : > { %v4666_v28 = vpop.permute.xlu1 %4665  ;;  %v4712_v31 = vsel %vm543_vm6, %v8072_v49, %v4658_v51  ;;  %v4722_v20 = vsel %vm549_vm9, %v4721_v1, %v4698_v39 }
 0x859   : > { %v4662_v32 = vpop.permute.xlu2 %4661  ;;  %v4540_v30 = vpop.permute.xlu0 %4539 }
 0x85a   : > { %v4670_v23 = vpop.permute.xlu1 %4669  ;;  %v4713_v13 = vsel %vm545_vm7, %v4712_v31, %v4662_v32 }
 0x85b   : > { %v4714_v24 = vsel %vm547_vm8, %v4713_v13, %v4666_v28 }
 0x85c   : > { %v4715_v43 = vsel %vm549_vm9, %v4714_v24, %v4670_v23 }
 0x861   : > { %v4702_v15 = vpop.permute.xlu2 %4701 }
 0x862   : > { %v4723_v37 = vsel %vm551_vm10, %v4722_v20, %v4702_v15 }
 0x869   : > { %v4706_v7 = vpop.permute.xlu2 %4705 }
 0x86a   : > { %v4724_v40 = vsel %vm553_vm11, %v4723_v37, %v4706_v7  ;;  %v4710_v0 = vpop.permute.xlu1 %4709 }
 0x86b   : > { %v4725_v18 = vsel %vm555_vm12, %v4724_v40, %v4710_v0 }
 0x871   : > { %v4678_v2 = vpop.permute.xlu2 %4677 }
 0x875   : > { %v4674_v60 = vpop.permute.xlu0 %4673 }
 0x876   : > { %v4716_v45 = vsel %vm551_vm10, %v4715_v43, %v4674_v60 }
 0x877   : > { %v4717_v34 = vsel %vm553_vm11, %v4716_v45, %v4678_v2 }
 0x87d   : > { %v4682_v57 = vpop.permute.xlu0 %4681 }
 0x87e   : > { %v4718_v10 = vsel %vm555_vm12, %v4717_v34, %v4682_v57 }
 0x8bd   : > { %v4525_v62 = vpop.f32.mrf.mxu3 }
 0x8be   : > { %v4535_v33 = vmul.f32 %v4532_v26, %v4525_v62 }
 0x8c0   : > { %v4543_v49 = vadd.f32 %v4540_v30, %v4535_v33 }
 0x8c2   : > { %v4727_v52 = vadd.f32 %v4725_v18, %v4543_v49 }
 0x8c4   : > { %v4729_v8 = vmax.f32 %v4727_v52, 0.0 }
 0x8c6   : > { %v4732_v53 = vrot.slane %v4729_v8, 4 }
 0x8ce   : > { %v4505_v47 = vpop.f32.mrf.mxu2 }
 0x8cf   : > { %v4534_v5 = vmul.f32 %v4532_v26, %v4505_v47 }
 0x8d1   : > { %v4542_v25 = vadd.f32 %v4540_v30, %v4534_v5 }
 0x8d3   : > { %v4726_v61 = vadd.f32 %v4718_v10, %v4542_v25 }
 0x8d5   : > { %v4728_v44 = vmax.f32 %v4726_v61, 0.0 }
 0x8d7   : > { %v4733_v42 = vsel %vm2291_vm13, %v4728_v44, %v4732_v53 }
 0x8d8   : > { %4735 = vst [vmem:[%s298_s16] sm:$0xff] %v4733_v42 }
 0x8d9   : > { %4969 = shalt.err (!%p4966_p4)
}
 0x8da   : > { %4849 = dma.vmem_to_hbm [thread:$0]  (%p5116_p11), %s4751_s20, 128, %s4753_s10, %s4737_s28  }
 0x8db PF: > { %s4764_s22 = sand.u32 1, %s4996_s24   ;;  %p8318_p7 = scmp.ge.s32.totalorder %s5008_s27, 2 }
 0x8dc   : > { %s4765_s11 = scalar_lea.sflag [#allocation7], %s4764_s22 }
 0x8dd   : > { %p4856_p5 = pnand %p8318_p7, %p5120_p12 }
 0x8df   : > { %p4857_p8 = pneg %p4856_p5 }
 0x8e1   : > { %4991 = dma.done.wait (%p4857_p8), %s4765_s11, 128  }
 0x8e2   : > { %4993 = vsyncadd (%p4857_p8), %s4765_s11, 4294967168  ;;  %s8319_s18 = sld [smem:[#allocation11_spill]]  ;;  %p20_p10 = scmp.ge.s32.totalorder %s5091_s30, 4  }
 0x8e3   : > { %s8320_s24 = smov %s5000_s25  ;;  %s8321_s25 = smov %s5004_s26 }
 0x8e4   : > { %s8323_s27 = smov %s5091_s30  ;;  %22 = sbr.rel (!%p20_p10) target bundleno = 5 (0x5), region = 93 }
 0x8e8   : > { %s8322_s26 = smov %s8319_s18 }
 0x8e9   :  { %4771 = vsyncpa [#allocation6], 1 }
 0x8ea   :  { %4773 = vsyncpa [#allocation6 + $0x1], 1 }
 0x8eb   :  { %4774 = vsyncpa [#allocation7], 1 }
 0x8ec   :  { %4776 = vsyncpa [#allocation7 + $0x1], 1 }

</bundles_post_ra>
